<compile_context>
chip_gen: v5e
topology: v5e:2x2
jax: 0.10.0
libtpu: 0.0.40
codegen_flags: <defaults>
</compile_context>

<pallas_src>
import math

import jax
import jax.numpy as jnp
import numpy as np
from jax.experimental import pallas as pl
from jax.experimental.pallas import tpu as pltpu

E_TILE = 256  # edge tile (lane dim of edge blocks); must be a multiple of 128


def _prelu(v, a):
    return jnp.where(v >= 0.0, v, a * v)


# ----------------------------------------------------------------------------
# Fused Pallas kernel: encoder -> 13x NNConv(mean) -> 6 decoder heads
# Grid = (step, edge_tile). Node features live in a VMEM scratch carry.
# ----------------------------------------------------------------------------
def _fused_kernel(
    # graph / node operands
    inall_ref, src_ref, dst_ref, ea_ref, invdeg_ref,
    # encoder params
    eal_ref, ew1_ref, eb1_ref, ew2_ref, eb2_ref, ew3_ref, eb3_ref,
    # conv params (selected per step by the BlockSpec index_map)
    cal_ref, cw1_ref, cb1_ref, cw2_ref, cb2_ref, cw3_ref, cb3_ref,
    cw4_ref, cb4_ref, root_ref, cbias_ref,
    # decoder params (stacked / block-diagonal)
    dw1s_ref, db1s_ref, da1_ref, dw2bd_ref, db2s_ref, da2_ref,
    dw3bd_ref, db3s_ref,
    # output
    out_ref,
    # scratch
    x_sc, aggr_sc, goh_sc, soh_sc,
):
    step = pl.program_id(0)
    et = pl.program_id(1)
    n_steps = pl.num_programs(0)
    n_et = pl.num_programs(1)

    t, n = x_sc.shape
    e_tile = src_ref.shape[1]

    # ---- encoder once (first grid point) -> node-feature carry in VMEM ------
    @pl.when((step == 0) & (et == 0))
    def _():
        eal = eal_ref[...]
        h = _prelu(jnp.dot(ew1_ref[...], inall_ref[...],
                           preferred_element_type=jnp.float32) + eb1_ref[...],
                   eal[0:1, 0:1])
        h = _prelu(jnp.dot(ew2_ref[...], h,
                           preferred_element_type=jnp.float32) + eb2_ref[...],
                   eal[0:1, 1:2])
        x_sc[...] = jnp.dot(ew3_ref[...], h,
                            preferred_element_type=jnp.float32) + eb3_ref[...]

    # ---- build & cache tile-invariant gather/scatter one-hots (step 0 only) -
    @pl.when(step == 0)
    def _():
        node_iota = jax.lax.broadcasted_iota(jnp.int32, (n, e_tile), 0)
        goh_sc[et] = jnp.where(node_iota == src_ref[...], 1.0, 0.0)
        # dst padded with sentinel `n` in the wrapper -> padded edges produce an
        # all-zero scatter column; no extra validity mask needed.
        soh_sc[et] = jnp.where(node_iota == dst_ref[...], 1.0, 0.0)

    # ---- zero the per-step mean-aggregation accumulator at the first tile ---
    @pl.when(et == 0)
    def _():
        aggr_sc[...] = jnp.zeros_like(aggr_sc)

    al = cal_ref[...]                       # [1, 4] PReLU slopes of this step
    a0 = al[0:1, 0:1]
    a1 = al[0:1, 1:2]
    a2 = al[0:1, 2:3]
    a3 = al[0:1, 3:4]

    x = x_sc[...]                           # [T, N] channel-major node features

    # ---- edge MLP (channel-major: h = W @ h + b, free dim = edge lanes) -----
    h = _prelu(jnp.dot(cw1_ref[...], ea_ref[...],
                       preferred_element_type=jnp.float32) + cb1_ref[...], a0)
    h = _prelu(jnp.dot(cw2_ref[...], h,
                       preferred_element_type=jnp.float32) + cb2_ref[...], a1)
    h = _prelu(jnp.dot(cw3_ref[...], h,
                       preferred_element_type=jnp.float32) + cb3_ref[...], a2)

    # ---- gather x_j = x[:, src[e]] via cached one-hot ------------------------
    xj = jnp.dot(x, goh_sc[et], preferred_element_type=jnp.float32)   # [T, Et]

    # ---- fused W4 matmul + per-edge mat-vec (no [T*T, Et] tile ever live) ----
    #      msg[o, e] = sum_t xj[t, e] * (W4 @ h + b4)[t*T + o, e]
    def _msg_term(tt):
        w_chunk = (jnp.dot(cw4_ref[tt * t:(tt + 1) * t, :], h,
                           preferred_element_type=jnp.float32)
                   + cb4_ref[tt * t:(tt + 1) * t, :])                 # [T, Et]
        return w_chunk * xj[tt:tt + 1, :]

    msg = _msg_term(0)
    for tt in range(1, t):                                            # static T
        msg = msg + _msg_term(tt)

    # ---- scatter-add via cached [N, Et] one-hot (contract the Et axes) -------
    aggr_sc[...] += jax.lax.dot_general(
        msg, soh_sc[et], (((1,), (1,)), ((), ())),
        preferred_element_type=jnp.float32)                          # [T, N]

    # ---- finalize this conv step on the last edge tile -----------------------
    @pl.when(et == n_et - 1)
    def _():
        aggr_mean = aggr_sc[...] * invdeg_ref[...]                   # [T,N]*[1,N]
        root_term = jnp.dot(root_ref[...], x,
                            preferred_element_type=jnp.float32)      # [T, N]
        x_sc[...] = _prelu(aggr_mean + root_term + cbias_ref[...], a3)

    # ---- decoder at the very last grid point -> lane-dense [6*oc, N] slab ----
    @pl.when((step == n_steps - 1) & (et == n_et - 1))
    def _():
        xf = x_sc[...]
        h1 = _prelu(jnp.dot(dw1s_ref[...], xf,
                            preferred_element_type=jnp.float32) + db1s_ref[...],
                    da1_ref[...])                                    # [6*T/2, N]
        h2 = _prelu(jnp.dot(dw2bd_ref[...], h1,
                            preferred_element_type=jnp.float32) + db2s_ref[...],
                    da2_ref[...])                                    # [6*T/4, N]
        out_ref[...] = (jnp.dot(dw3bd_ref[...], h2,
                                preferred_element_type=jnp.float32)
                        + db3s_ref[...])                             # [6*oc, N]


# ----------------------------------------------------------------------------
# pallas_call wrapper
# ----------------------------------------------------------------------------
def _cost_estimate(n, e_pad, cin, t, k, f, oc, n_steps, n_heads):
    t2, t4 = t // 2, t // 4
    enc = 2 * n * (cin * t4 + t4 * t2 + t2 * t)
    per_step = (2 * e_pad * (f * k + 2 * k * k + k * t * t)   # edge MLP (+W4)
                + 2 * t * n * e_pad                           # gather
                + 2 * t * t * e_pad                           # per-edge matvec
                + 2 * t * n * e_pad                           # scatter
                + 2 * t * t * n)                              # root term
    dec = 2 * n * (n_heads * t2 * t
                   + (n_heads * t4) * (n_heads * t2)
                   + (n_heads * oc) * (n_heads * t4))
    flops = enc + n_steps * per_step + dec
    bytes_acc = 4 * (cin * n + 2 * e_pad + f * e_pad + n
                     + n_steps * (k * f + 2 * k * k + t * t * k + 3 * k
                                  + 2 * t * t + t + 4)
                     + (cin * t4 + t4 * t2 + t2 * t + t4 + t2 + t + 2)
                     + (n_heads * t2 * (t + 2)
                        + n_heads * t4 * (n_heads * t2 + 2)
                        + n_heads * oc * (n_heads * t4 + 1))
                     + n_heads * oc * n)
    return pl.CostEstimate(flops=int(flops), transcendentals=0,
                           bytes_accessed=int(bytes_acc))


def _fused_call(params, inall_cm, src_row, dst_row, ea_cm, inv_deg):
    ep, cp, dp = params["enc"], params["convs"], params["dec"]
    cin, n = inall_cm.shape
    f, e_pad = ea_cm.shape
    t = ep["w3"].shape[0]
    t2, t4 = t // 2, t // 4
    k = cp["w1"].shape[1]
    ttsq = t * t
    n_steps = cp["w1"].shape[0]
    n_heads, oc = dp["w3"].shape[0], dp["w3"].shape[1]
    assert e_pad % E_TILE == 0
    n_et = e_pad // E_TILE

    # Stacked / block-diagonal decoder parameters (heads fused into 3 matmuls).
    dw1s = dp["w1"].reshape(n_heads * t2, t)
    db1s = dp["b1"].reshape(n_heads * t2, 1)
    da1 = jnp.repeat(dp["alphas"][:, 0], t2).reshape(n_heads * t2, 1)
    dw2bd = jax.scipy.linalg.block_diag(*[dp["w2"][h] for h in range(n_heads)])
    db2s = dp["b2"].reshape(n_heads * t4, 1)
    da2 = jnp.repeat(dp["alphas"][:, 1], t4).reshape(n_heads * t4, 1)
    dw3bd = jax.scipy.linalg.block_diag(*[dp["w3"][h] for h in range(n_heads)])
    db3s = dp["b3"].reshape(n_heads * oc, 1)

    def _const(shape):
        zeros = (0,) * len(shape)
        return pl.BlockSpec(shape, lambda s, e, _z=zeros: _z)

    def _per_step(trailing):
        nd = len(trailing)
        return pl.BlockSpec((None,) + trailing,
                            lambda s, e, _nd=nd: (s,) + (0,) * _nd)

    in_specs = [
        _const((cin, n)),                                    # inall (encoder in)
        pl.BlockSpec((1, E_TILE), lambda s, e: (0, e)),      # src row
        pl.BlockSpec((1, E_TILE), lambda s, e: (0, e)),      # dst row (sentinel-padded)
        pl.BlockSpec((f, E_TILE), lambda s, e: (0, e)),      # edge_attr
        _const((1, n)),                                      # 1/deg
        # encoder params
        _const((1, 2)),
        _const((t4, cin)), _const((t4, 1)),
        _const((t2, t4)), _const((t2, 1)),
        _const((t, t2)), _const((t, 1)),
        # conv params (per step)
        _per_step((1, 4)),
        _per_step((k, f)), _per_step((k, 1)),
        _per_step((k, k)), _per_step((k, 1)),
        _per_step((k, k)), _per_step((k, 1)),
        _per_step((ttsq, k)), _per_step((ttsq, 1)),
        _per_step((t, t)), _per_step((t, 1)),
        # decoder params
        _const((n_heads * t2, t)), _const((n_heads * t2, 1)),
        _const((n_heads * t2, 1)),
        _const((n_heads * t4, n_heads * t2)), _const((n_heads * t4, 1)),
        _const((n_heads * t4, 1)),
        _const((n_heads * oc, n_heads * t4)), _const((n_heads * oc, 1)),
    ]

    grid_spec = pltpu.PrefetchScalarGridSpec(
        num_scalar_prefetch=0,
        grid=(n_steps, n_et),
        in_specs=in_specs,
        out_specs=pl.BlockSpec((n_heads * oc, n), lambda s, e: (0, 0)),
        scratch_shapes=[
            pltpu.VMEM((t, n), jnp.float32),            # x carry
            pltpu.VMEM((t, n), jnp.float32),            # aggr accumulator
            pltpu.VMEM((n_et, n, E_TILE), jnp.float32),  # cached gather one-hots
            pltpu.VMEM((n_et, n, E_TILE), jnp.float32),  # cached scatter one-hots
        ],
    )

    return pl.pallas_call(
        _fused_kernel,
        out_shape=jax.ShapeDtypeStruct((n_heads * oc, n), jnp.float32),
        grid_spec=grid_spec,
        compiler_params=pltpu.CompilerParams(
            # Both axes carry state (x across steps, aggr across edge tiles).
            dimension_semantics=("arbitrary", "arbitrary"),
            # Budgeted for v7x (64 MiB physical VMEM); well within v5e/v6e.
            vmem_limit_bytes=48 * 1024 * 1024,
        ),
        cost_estimate=_cost_estimate(n, e_pad, cin, t, k, f, oc,
                                     n_steps, n_heads),
    )(inall_cm, src_row, dst_row, ea_cm, inv_deg,
      ep["alphas"], ep["w1"], ep["b1"], ep["w2"], ep["b2"], ep["w3"], ep["b3"],
      cp["alphas"], cp["w1"], cp["b1"], cp["w2"], cp["b2"], cp["w3"], cp["b3"],
      cp["w4"], cp["b4"], cp["root_t"], cp["bias"],
      dw1s, db1s, da1, dw2bd, db2s, da2, dw3bd, db3s)


# ----------------------------------------------------------------------------
# Full forward (glue in plain JAX, all compute in the single fused kernel)
# ----------------------------------------------------------------------------
@jax.jit
def cplx_kernel_forward(params, xxinc, xxcord, edge_index, edge_attr):
    n = xxinc.shape[0]
    e_real = edge_attr.shape[0]

    inall_cm = jnp.concatenate([xxinc, xxcord], axis=1).T.astype(jnp.float32)

    src = edge_index[0].astype(jnp.int32)
    dst = edge_index[1].astype(jnp.int32)
    e_pad = ((e_real + E_TILE - 1) // E_TILE) * E_TILE
    pad = e_pad - e_real
    # Padded edges: src -> 0 (harmless gather), dst -> N (out-of-range sentinel
    # so their scatter one-hot column is all zero; no in-kernel mask needed).
    src_row = jnp.pad(src, (0, pad)).reshape(1, e_pad)
    dst_row = jnp.pad(dst, (0, pad), constant_values=n).reshape(1, e_pad)
    ea_cm = jnp.pad(edge_attr, ((0, pad), (0, 0))).T.astype(jnp.float32)

    deg = jnp.zeros((n,), jnp.float32).at[dst].add(1.0)
    inv_deg = jnp.where(deg > 0, 1.0 / jnp.where(deg > 0, deg, 1.0), 0.0)
    inv_deg = inv_deg.reshape(1, n)

    out_cm = _fused_call(params, inall_cm, src_row, dst_row, ea_cm, inv_deg)
    return out_cm.T                                             # [N, 6*oc]


# ----------------------------------------------------------------------------
# Deterministic parameter initialization (synthetic; mirrors module __init__).
# Weights are stored PyTorch-style [out, in] (== channel-major multiplier).
# ----------------------------------------------------------------------------
def _linear_cm(key, fan_in, fan_out):
    kw, kb = jax.random.split(key)
    s = 1.0 / math.sqrt(fan_in)
    w = jax.random.uniform(kw, (fan_out, fan_in), jnp.float32, -s, s)
    b = jax.random.uniform(kb, (fan_out, 1), jnp.float32, -s, s)
    return w, b


def init_cplx_kernel_params(key, inchannel, transchannel, outchannel,
                            ker_width, edgefeasize):
    t = transchannel
    kenc, kconv, kdec = jax.random.split(key, 3)

    ks = jax.random.split(kenc, 3)
    w1, b1 = _linear_cm(ks[0], inchannel, t // 4)
    w2, b2 = _linear_cm(ks[1], t // 4, t // 2)
    w3, b3 = _linear_cm(ks[2], t // 2, t)
    enc = dict(alphas=jnp.full((1, 2), 0.25, jnp.float32),
               w1=w1, b1=b1, w2=w2, b2=b2, w3=w3, b3=b3)

    cnames = ("w1", "b1", "w2", "b2", "w3", "b3", "w4", "b4", "root_t", "bias")
    cacc = {nm: [] for nm in cnames}
    for ck in jax.random.split(kconv, 13):
        k1, k2, k3, k4, k5, k6 = jax.random.split(ck, 6)
        w1e, b1e = _linear_cm(k1, edgefeasize, ker_width)
        w2e, b2e = _linear_cm(k2, ker_width, ker_width)
        w3e, b3e = _linear_cm(k3, ker_width, ker_width)
        w4e, b4e = _linear_cm(k4, ker_width, t * t)
        s = 1.0 / math.sqrt(t)
        root_t = jax.random.uniform(k5, (t, t), jnp.float32, -s, s)  # [out, in]
        bias = jax.random.uniform(k6, (t, 1), jnp.float32, -s, s)
        for nm, v in zip(cnames, (w1e, b1e, w2e, b2e, w3e, b3e,
                                  w4e, b4e, root_t, bias)):
            cacc[nm].append(v)
    convs = {nm: jnp.stack(vs, axis=0) for nm, vs in cacc.items()}
    convs["alphas"] = jnp.full((13, 1, 4), 0.25, jnp.float32)   # 3 edge-MLP + outer

    dnames = ("w1", "b1", "w2", "b2", "w3", "b3")
    dacc = {nm: [] for nm in dnames}
    for dk in jax.random.split(kdec, 6):
        k1, k2, k3 = jax.random.split(dk, 3)
        w1d, b1d = _linear_cm(k1, t, t // 2)
        w2d, b2d = _linear_cm(k2, t // 2, t // 4)
        w3d, b3d = _linear_cm(k3, t // 4, outchannel)
        for nm, v in zip(dnames, (w1d, b1d, w2d, b2d, w3d, b3d)):
            dacc[nm].append(v)
    dec = {nm: jnp.stack(vs, axis=0) for nm, vs in dacc.items()}
    dec["alphas"] = jnp.full((6, 2), 0.25, jnp.float32)

    return {"enc": enc, "convs": convs, "dec": dec}


# ----------------------------------------------------------------------------
# Pure-JAX reference (node-major) for a correctness check
# ----------------------------------------------------------------------------
@jax.jit
def reference_forward(params, xxinc, xxcord, edge_index, edge_attr):
    n = xxinc.shape[0]
    x = jnp.concatenate([xxinc, xxcord], axis=1)
    ep = params["enc"]
    ea_enc = ep["alphas"][0]
    x = _prelu(x @ ep["w1"].T + ep["b1"][:, 0], ea_enc[0])
    x = _prelu(x @ ep["w2"].T + ep["b2"][:, 0], ea_enc[1])
    x = x @ ep["w3"].T + ep["b3"][:, 0]

    src = edge_index[0]
    dst = edge_index[1]
    deg = jnp.zeros((n,), jnp.float32).at[dst].add(1.0)
    inv_deg = jnp.where(deg > 0, 1.0 / jnp.where(deg > 0, deg, 1.0), 0.0)

    cp = params["convs"]
    t = x.shape[1]
    for s in range(cp["w1"].shape[0]):
        al = cp["alphas"][s, 0]
        h = _prelu(edge_attr @ cp["w1"][s].T + cp["b1"][s][:, 0], al[0])
        h = _prelu(h @ cp["w2"][s].T + cp["b2"][s][:, 0], al[1])
        h = _prelu(h @ cp["w3"][s].T + cp["b3"][s][:, 0], al[2])
        wflat = h @ cp["w4"][s].T + cp["b4"][s][:, 0]            # [E, T*T]
        xj = x[src]                                              # [E, T]
        msg = jnp.einsum("et,eto->eo", xj, wflat.reshape(-1, t, t))
        aggr = jnp.zeros((n, t), jnp.float32).at[dst].add(msg) * inv_deg[:, None]
        x = _prelu(aggr + x @ cp["root_t"][s].T + cp["bias"][s][:, 0], al[3])

    dp = params["dec"]
    outs = []
    for hid in range(dp["w1"].shape[0]):
        a0 = dp["alphas"][hid, 0]
        a1 = dp["alphas"][hid, 1]
        h = _prelu(x @ dp["w1"][hid].T + dp["b1"][hid][:, 0], a0)
        h = _prelu(h @ dp["w2"][hid].T + dp["b2"][hid][:, 0], a1)
        outs.append(h @ dp["w3"][hid].T + dp["b3"][hid][:, 0])
    return jnp.concatenate(outs, axis=1)


# ----------------------------------------------------------------------------
# Demo
# ----------------------------------------------------------------------------
if __name__ == "__main__":
    N, E = 32, 200                      # E pads to 256 -> single 256-wide edge tile
    XXINC_DIM, XXCORD_DIM = 4, 2
    INCHANNEL = XXINC_DIM + XXCORD_DIM
    TRANSCHANNEL = 16
    OUTCHANNEL = 2
    KER_WIDTH = 32
    EDGEFEASIZE = 4

    key = jax.random.PRNGKey(0)
    kp, k1, k2, k3, k4, k5 = jax.random.split(key, 6)

    params = init_cplx_kernel_params(kp, INCHANNEL, TRANSCHANNEL, OUTCHANNEL,
                                     KER_WIDTH, EDGEFEASIZE)

    xxinc = jax.random.normal(k1, (N, XXINC_DIM), jnp.float32)
    xxcord = jax.random.normal(k2, (N, XXCORD_DIM), jnp.float32)
    edge_attr = jax.random.normal(k3, (E, EDGEFEASIZE), jnp.float32)
    src = jax.random.randint(k4, (E,), 0, N, jnp.int32)
    dst = jax.random.randint(k5, (E,), 0, N, jnp.int32)
    edge_index = jnp.stack([src, dst], axis=0)                    # [2, E]

    out = cplx_kernel_forward(params, xxinc, xxcord, edge_index, edge_attr)
    out = jax.block_until_ready(out)
    assert out.shape == (N, 6 * OUTCHANNEL), out.shape

    ref = jax.block_until_ready(
        reference_forward(params, xxinc, xxcord, edge_index, edge_attr))
    np.testing.assert_allclose(np.asarray(out), np.asarray(ref),
                               rtol=2e-2, atol=2e-2)
    print("KERNEL_OK")
</pallas_src>

<mosaic_0001>
module attributes {stable_mosaic.version = 11 : i64} {
  func.func @_fused_kernel(%arg0: i32, %arg1: i32, %arg2: memref<6x32xf32, #tpu.memory_space<vmem>>, %arg3: memref<1x256xi32, #tpu.memory_space<vmem>>, %arg4: memref<1x256xi32, #tpu.memory_space<vmem>>, %arg5: memref<4x256xf32, #tpu.memory_space<vmem>>, %arg6: memref<1x32xf32, #tpu.memory_space<vmem>>, %arg7: memref<1x2xf32, #tpu.memory_space<vmem>>, %arg8: memref<4x6xf32, #tpu.memory_space<vmem>>, %arg9: memref<4x1xf32, #tpu.memory_space<vmem>>, %arg10: memref<8x4xf32, #tpu.memory_space<vmem>>, %arg11: memref<8x1xf32, #tpu.memory_space<vmem>>, %arg12: memref<16x8xf32, #tpu.memory_space<vmem>>, %arg13: memref<16x1xf32, #tpu.memory_space<vmem>>, %arg14: memref<1x1x4xf32, #tpu.memory_space<vmem>>, %arg15: memref<1x32x4xf32, #tpu.memory_space<vmem>>, %arg16: memref<1x32x1xf32, #tpu.memory_space<vmem>>, %arg17: memref<1x32x32xf32, #tpu.memory_space<vmem>>, %arg18: memref<1x32x1xf32, #tpu.memory_space<vmem>>, %arg19: memref<1x32x32xf32, #tpu.memory_space<vmem>>, %arg20: memref<1x32x1xf32, #tpu.memory_space<vmem>>, %arg21: memref<1x256x32xf32, #tpu.memory_space<vmem>>, %arg22: memref<1x256x1xf32, #tpu.memory_space<vmem>>, %arg23: memref<1x16x16xf32, #tpu.memory_space<vmem>>, %arg24: memref<1x16x1xf32, #tpu.memory_space<vmem>>, %arg25: memref<48x16xf32, #tpu.memory_space<vmem>>, %arg26: memref<48x1xf32, #tpu.memory_space<vmem>>, %arg27: memref<48x1xf32, #tpu.memory_space<vmem>>, %arg28: memref<24x48xf32, #tpu.memory_space<vmem>>, %arg29: memref<24x1xf32, #tpu.memory_space<vmem>>, %arg30: memref<24x1xf32, #tpu.memory_space<vmem>>, %arg31: memref<12x24xf32, #tpu.memory_space<vmem>>, %arg32: memref<12x1xf32, #tpu.memory_space<vmem>>, %arg33: memref<12x32xf32, #tpu.memory_space<vmem>>, %arg34: memref<16x32xf32, #tpu.memory_space<vmem>>, %arg35: memref<16x32xf32, #tpu.memory_space<vmem>>, %arg36: memref<1x32x256xf32, #tpu.memory_space<vmem>>, %arg37: memref<1x32x256xf32, #tpu.memory_space<vmem>>) attributes {dimension_semantics = [#tpu.dimension_semantics<arbitrary>, #tpu.dimension_semantics<arbitrary>], iteration_bounds = array<i64: 13, 1>, scalar_prefetch = 0 : i64, scratch_operands = 4 : i64, tpu.core_type = #tpu.core_type<tc>, window_params = [{pipeline_mode = #tpu.pipeline_mode<synchronous>, transform_indices = @transform_0, window_bounds = array<i64: 6, 32>}, {transform_indices = @transform_1, window_bounds = array<i64: 1, 256>}, {transform_indices = @transform_2, window_bounds = array<i64: 1, 256>}, {transform_indices = @transform_3, window_bounds = array<i64: 4, 256>}, {pipeline_mode = #tpu.pipeline_mode<synchronous>, transform_indices = @transform_4, window_bounds = array<i64: 1, 32>}, {pipeline_mode = #tpu.pipeline_mode<synchronous>, transform_indices = @transform_5, window_bounds = array<i64: 1, 2>}, {pipeline_mode = #tpu.pipeline_mode<synchronous>, transform_indices = @transform_6, window_bounds = array<i64: 4, 6>}, {pipeline_mode = #tpu.pipeline_mode<synchronous>, transform_indices = @transform_7, window_bounds = array<i64: 4, 1>}, {pipeline_mode = #tpu.pipeline_mode<synchronous>, transform_indices = @transform_8, window_bounds = array<i64: 8, 4>}, {pipeline_mode = #tpu.pipeline_mode<synchronous>, transform_indices = @transform_9, window_bounds = array<i64: 8, 1>}, {pipeline_mode = #tpu.pipeline_mode<synchronous>, transform_indices = @transform_10, window_bounds = array<i64: 16, 8>}, {pipeline_mode = #tpu.pipeline_mode<synchronous>, transform_indices = @transform_11, window_bounds = array<i64: 16, 1>}, {transform_indices = @transform_12, window_bounds = array<i64: 1, 1, 4>}, {transform_indices = @transform_13, window_bounds = array<i64: 1, 32, 4>}, {transform_indices = @transform_14, window_bounds = array<i64: 1, 32, 1>}, {transform_indices = @transform_15, window_bounds = array<i64: 1, 32, 32>}, {transform_indices = @transform_16, window_bounds = array<i64: 1, 32, 1>}, {transform_indices = @transform_17, window_bounds = array<i64: 1, 32, 32>}, {transform_indices = @transform_18, window_bounds = array<i64: 1, 32, 1>}, {transform_indices = @transform_19, window_bounds = array<i64: 1, 256, 32>}, {transform_indices = @transform_20, window_bounds = array<i64: 1, 256, 1>}, {transform_indices = @transform_21, window_bounds = array<i64: 1, 16, 16>}, {transform_indices = @transform_22, window_bounds = array<i64: 1, 16, 1>}, {pipeline_mode = #tpu.pipeline_mode<synchronous>, transform_indices = @transform_23, window_bounds = array<i64: 48, 16>}, {pipeline_mode = #tpu.pipeline_mode<synchronous>, transform_indices = @transform_24, window_bounds = array<i64: 48, 1>}, {pipeline_mode = #tpu.pipeline_mode<synchronous>, transform_indices = @transform_25, window_bounds = array<i64: 48, 1>}, {pipeline_mode = #tpu.pipeline_mode<synchronous>, transform_indices = @transform_26, window_bounds = array<i64: 24, 48>}, {pipeline_mode = #tpu.pipeline_mode<synchronous>, transform_indices = @transform_27, window_bounds = array<i64: 24, 1>}, {pipeline_mode = #tpu.pipeline_mode<synchronous>, transform_indices = @transform_28, window_bounds = array<i64: 24, 1>}, {pipeline_mode = #tpu.pipeline_mode<synchronous>, transform_indices = @transform_29, window_bounds = array<i64: 12, 24>}, {pipeline_mode = #tpu.pipeline_mode<synchronous>, transform_indices = @transform_30, window_bounds = array<i64: 12, 1>}, {pipeline_mode = #tpu.pipeline_mode<synchronous>, transform_indices = @transform_31, window_bounds = array<i64: 12, 32>}]} {
    %c0_i32 = arith.constant 0 : i32
    %0 = arith.cmpi eq, %arg0, %c0_i32 : i32
    %c0_i32_0 = arith.constant 0 : i32
    %1 = arith.cmpi eq, %arg1, %c0_i32_0 : i32
    %2 = arith.andi %0, %1 : i1
    %3 = arith.extui %2 : i1 to i32
    %c0_i32_1 = arith.constant 0 : i32
    %4 = arith.cmpi ne, %3, %c0_i32_1 : i32
    scf.if %4 {
      %c0_146 = arith.constant 0 : index
      %c0_147 = arith.constant 0 : index
      %249 = vector.load %arg7[%c0_146, %c0_147] : memref<1x2xf32, #tpu.memory_space<vmem>>, vector<1x2xf32>
      %c0_148 = arith.constant 0 : index
      %c0_149 = arith.constant 0 : index
      %250 = vector.load %arg8[%c0_148, %c0_149] : memref<4x6xf32, #tpu.memory_space<vmem>>, vector<4x6xf32>
      %c0_150 = arith.constant 0 : index
      %c0_151 = arith.constant 0 : index
      %251 = vector.load %arg2[%c0_150, %c0_151] : memref<6x32xf32, #tpu.memory_space<vmem>>, vector<6x32xf32>
      %cst_152 = arith.constant dense<0.000000e+00> : vector<4x32xf32>
      %252 = tpu.matmul %250, %251, %cst_152 {dimension_numbers = #tpu.dot_dimension_numbers<[1], [0], [0], [1], [0, 0, 1, 1], [], []>} : vector<4x6xf32>, vector<6x32xf32>, vector<4x32xf32> -> vector<4x32xf32>
      %c0_153 = arith.constant 0 : index
      %c0_154 = arith.constant 0 : index
      %253 = vector.load %arg9[%c0_153, %c0_154] : memref<4x1xf32, #tpu.memory_space<vmem>>, vector<4x1xf32>
      %254 = vector.broadcast %253 : vector<4x1xf32> to vector<4x32xf32>
      %255 = arith.addf %252, %254 : vector<4x32xf32>
      %256 = vector.extract_strided_slice %249 {offsets = [0, 0], sizes = [1, 1], strides = [1, 1]} : vector<1x2xf32> to vector<1x1xf32>
      %cst_155 = arith.constant 0.000000e+00 : f32
      %257 = vector.broadcast %cst_155 : f32 to vector<4x32xf32>
      %258 = arith.cmpf oge, %255, %257 : vector<4x32xf32>
      %259 = vector.broadcast %256 : vector<1x1xf32> to vector<4x32xf32>
      %260 = arith.mulf %259, %255 : vector<4x32xf32>
      %261 = arith.select %258, %255, %260 : vector<4x32xi1>, vector<4x32xf32>
      %c0_156 = arith.constant 0 : index
      %c0_157 = arith.constant 0 : index
      %262 = vector.load %arg10[%c0_156, %c0_157] : memref<8x4xf32, #tpu.memory_space<vmem>>, vector<8x4xf32>
      %cst_158 = arith.constant dense<0.000000e+00> : vector<8x32xf32>
      %263 = tpu.matmul %262, %261, %cst_158 {dimension_numbers = #tpu.dot_dimension_numbers<[1], [0], [0], [1], [0, 0, 1, 1], [], []>} : vector<8x4xf32>, vector<4x32xf32>, vector<8x32xf32> -> vector<8x32xf32>
      %c0_159 = arith.constant 0 : index
      %c0_160 = arith.constant 0 : index
      %264 = vector.load %arg11[%c0_159, %c0_160] : memref<8x1xf32, #tpu.memory_space<vmem>>, vector<8x1xf32>
      %265 = vector.broadcast %264 : vector<8x1xf32> to vector<8x32xf32>
      %266 = arith.addf %263, %265 : vector<8x32xf32>
      %267 = vector.extract_strided_slice %249 {offsets = [0, 1], sizes = [1, 1], strides = [1, 1]} : vector<1x2xf32> to vector<1x1xf32>
      %cst_161 = arith.constant 0.000000e+00 : f32
      %268 = vector.broadcast %cst_161 : f32 to vector<8x32xf32>
      %269 = arith.cmpf oge, %266, %268 : vector<8x32xf32>
      %270 = vector.broadcast %267 : vector<1x1xf32> to vector<8x32xf32>
      %271 = arith.mulf %270, %266 : vector<8x32xf32>
      %272 = arith.select %269, %266, %271 : vector<8x32xi1>, vector<8x32xf32>
      %c0_162 = arith.constant 0 : index
      %c0_163 = arith.constant 0 : index
      %273 = vector.load %arg12[%c0_162, %c0_163] : memref<16x8xf32, #tpu.memory_space<vmem>>, vector<16x8xf32>
      %cst_164 = arith.constant dense<0.000000e+00> : vector<16x32xf32>
      %274 = tpu.matmul %273, %272, %cst_164 {dimension_numbers = #tpu.dot_dimension_numbers<[1], [0], [0], [1], [0, 0, 1, 1], [], []>} : vector<16x8xf32>, vector<8x32xf32>, vector<16x32xf32> -> vector<16x32xf32>
      %c0_165 = arith.constant 0 : index
      %c0_166 = arith.constant 0 : index
      %275 = vector.load %arg13[%c0_165, %c0_166] : memref<16x1xf32, #tpu.memory_space<vmem>>, vector<16x1xf32>
      %276 = vector.broadcast %275 : vector<16x1xf32> to vector<16x32xf32>
      %277 = arith.addf %274, %276 : vector<16x32xf32>
      %c0_167 = arith.constant 0 : index
      %c0_168 = arith.constant 0 : index
      %278 = vector.load %arg34[%c0_167, %c0_168] : memref<16x32xf32, #tpu.memory_space<vmem>>, vector<16x32xf32>
      tpu.vector_store %arg34[%c0_167, %c0_168], %277 {strides = array<i32>} : memref<16x32xf32, #tpu.memory_space<vmem>>, vector<16x32xf32>,
    } else {
    }
    %c0_i32_2 = arith.constant 0 : i32
    %5 = arith.cmpi eq, %arg0, %c0_i32_2 : i32
    %6 = arith.extui %5 : i1 to i32
    %c0_i32_3 = arith.constant 0 : i32
    %7 = arith.cmpi ne, %6, %c0_i32_3 : i32
    scf.if %7 {
      %249 = tpu.iota {dimensions = array<i32: 0>} : vector<32x256xi32>
      %c0_146 = arith.constant 0 : index
      %c0_147 = arith.constant 0 : index
      %250 = vector.load %arg3[%c0_146, %c0_147] : memref<1x256xi32, #tpu.memory_space<vmem>>, vector<1x256xi32>
      %251 = vector.broadcast %250 : vector<1x256xi32> to vector<32x256xi32>
      %252 = arith.cmpi eq, %249, %251 : vector<32x256xi32>
      %cst_148 = arith.constant 1.000000e+00 : f32
      %cst_149 = arith.constant 0.000000e+00 : f32
      %253 = vector.broadcast %cst_148 : f32 to vector<32x256xf32>
      %254 = vector.broadcast %cst_149 : f32 to vector<32x256xf32>
      %255 = arith.select %252, %253, %254 : vector<32x256xi1>, vector<32x256xf32>
      %256 = arith.index_cast %arg1 : i32 to index
      %c0_150 = arith.constant 0 : index
      %c0_151 = arith.constant 0 : index
      %257 = vector.load %arg36[%256, %c0_150, %c0_151] : memref<1x32x256xf32, #tpu.memory_space<vmem>>, vector<1x32x256xf32>
      %258 = vector.shape_cast %257 : vector<1x32x256xf32> to vector<32x256xf32>
      %259 = vector.shape_cast %255 : vector<32x256xf32> to vector<1x32x256xf32>
      tpu.vector_store %arg36[%256, %c0_150, %c0_151], %259 {strides = array<i32>} : memref<1x32x256xf32, #tpu.memory_space<vmem>>, vector<1x32x256xf32>,
      %c0_152 = arith.constant 0 : index
      %c0_153 = arith.constant 0 : index
      %260 = vector.load %arg4[%c0_152, %c0_153] : memref<1x256xi32, #tpu.memory_space<vmem>>, vector<1x256xi32>
      %261 = vector.broadcast %260 : vector<1x256xi32> to vector<32x256xi32>
      %262 = arith.cmpi eq, %249, %261 : vector<32x256xi32>
      %cst_154 = arith.constant 1.000000e+00 : f32
      %cst_155 = arith.constant 0.000000e+00 : f32
      %263 = vector.broadcast %cst_154 : f32 to vector<32x256xf32>
      %264 = vector.broadcast %cst_155 : f32 to vector<32x256xf32>
      %265 = arith.select %262, %263, %264 : vector<32x256xi1>, vector<32x256xf32>
      %266 = arith.index_cast %arg1 : i32 to index
      %c0_156 = arith.constant 0 : index
      %c0_157 = arith.constant 0 : index
      %267 = vector.load %arg37[%266, %c0_156, %c0_157] : memref<1x32x256xf32, #tpu.memory_space<vmem>>, vector<1x32x256xf32>
      %268 = vector.shape_cast %267 : vector<1x32x256xf32> to vector<32x256xf32>
      %269 = vector.shape_cast %265 : vector<32x256xf32> to vector<1x32x256xf32>
      tpu.vector_store %arg37[%266, %c0_156, %c0_157], %269 {strides = array<i32>} : memref<1x32x256xf32, #tpu.memory_space<vmem>>, vector<1x32x256xf32>,
    } else {
    }
    %c0_i32_4 = arith.constant 0 : i32
    %8 = arith.cmpi eq, %arg1, %c0_i32_4 : i32
    %9 = arith.extui %8 : i1 to i32
    %c0_i32_5 = arith.constant 0 : i32
    %10 = arith.cmpi ne, %9, %c0_i32_5 : i32
    scf.if %10 {
      %cst_146 = arith.constant 0.000000e+00 : f32
      %249 = vector.broadcast %cst_146 : f32 to vector<16x32xf32>
      %c0_147 = arith.constant 0 : index
      %c0_148 = arith.constant 0 : index
      %250 = vector.load %arg35[%c0_147, %c0_148] : memref<16x32xf32, #tpu.memory_space<vmem>>, vector<16x32xf32>
      tpu.vector_store %arg35[%c0_147, %c0_148], %249 {strides = array<i32>} : memref<16x32xf32, #tpu.memory_space<vmem>>, vector<16x32xf32>,
    } else {
    }
    %c0 = arith.constant 0 : index
    %c0_6 = arith.constant 0 : index
    %c0_7 = arith.constant 0 : index
    %11 = vector.load %arg14[%c0, %c0_6, %c0_7] : memref<1x1x4xf32, #tpu.memory_space<vmem>>, vector<1x1x4xf32>
    %12 = vector.shape_cast %11 : vector<1x1x4xf32> to vector<1x4xf32>
    %13 = vector.extract_strided_slice %12 {offsets = [0, 0], sizes = [1, 1], strides = [1, 1]} : vector<1x4xf32> to vector<1x1xf32>
    %14 = vector.extract_strided_slice %12 {offsets = [0, 1], sizes = [1, 1], strides = [1, 1]} : vector<1x4xf32> to vector<1x1xf32>
    %15 = vector.extract_strided_slice %12 {offsets = [0, 2], sizes = [1, 1], strides = [1, 1]} : vector<1x4xf32> to vector<1x1xf32>
    %16 = vector.extract_strided_slice %12 {offsets = [0, 3], sizes = [1, 1], strides = [1, 1]} : vector<1x4xf32> to vector<1x1xf32>
    %c0_8 = arith.constant 0 : index
    %c0_9 = arith.constant 0 : index
    %17 = vector.load %arg34[%c0_8, %c0_9] : memref<16x32xf32, #tpu.memory_space<vmem>>, vector<16x32xf32>
    %c0_10 = arith.constant 0 : index
    %c0_11 = arith.constant 0 : index
    %c0_12 = arith.constant 0 : index
    %18 = vector.load %arg15[%c0_10, %c0_11, %c0_12] : memref<1x32x4xf32, #tpu.memory_space<vmem>>, vector<1x32x4xf32>
    %19 = vector.shape_cast %18 : vector<1x32x4xf32> to vector<32x4xf32>
    %c0_13 = arith.constant 0 : index
    %c0_14 = arith.constant 0 : index
    %20 = vector.load %arg5[%c0_13, %c0_14] : memref<4x256xf32, #tpu.memory_space<vmem>>, vector<4x256xf32>
    %cst = arith.constant dense<0.000000e+00> : vector<32x256xf32>
    %21 = tpu.matmul %19, %20, %cst {dimension_numbers = #tpu.dot_dimension_numbers<[1], [0], [0], [1], [0, 0, 1, 1], [], []>} : vector<32x4xf32>, vector<4x256xf32>, vector<32x256xf32> -> vector<32x256xf32>
    %c0_15 = arith.constant 0 : index
    %c0_16 = arith.constant 0 : index
    %c0_17 = arith.constant 0 : index
    %22 = vector.load %arg16[%c0_15, %c0_16, %c0_17] : memref<1x32x1xf32, #tpu.memory_space<vmem>>, vector<1x32x1xf32>
    %23 = vector.shape_cast %22 : vector<1x32x1xf32> to vector<32x1xf32>
    %24 = vector.broadcast %23 : vector<32x1xf32> to vector<32x256xf32>
    %25 = arith.addf %21, %24 : vector<32x256xf32>
    %cst_18 = arith.constant 0.000000e+00 : f32
    %26 = vector.broadcast %cst_18 : f32 to vector<32x256xf32>
    %27 = arith.cmpf oge, %25, %26 : vector<32x256xf32>
    %28 = vector.broadcast %13 : vector<1x1xf32> to vector<32x256xf32>
    %29 = arith.mulf %28, %25 : vector<32x256xf32>
    %30 = arith.select %27, %25, %29 : vector<32x256xi1>, vector<32x256xf32>
    %c0_19 = arith.constant 0 : index
    %c0_20 = arith.constant 0 : index
    %c0_21 = arith.constant 0 : index
    %31 = vector.load %arg17[%c0_19, %c0_20, %c0_21] : memref<1x32x32xf32, #tpu.memory_space<vmem>>, vector<1x32x32xf32>
    %32 = vector.shape_cast %31 : vector<1x32x32xf32> to vector<32x32xf32>
    %cst_22 = arith.constant dense<0.000000e+00> : vector<32x256xf32>
    %33 = tpu.matmul %32, %30, %cst_22 {dimension_numbers = #tpu.dot_dimension_numbers<[1], [0], [0], [1], [0, 0, 1, 1], [], []>} : vector<32x32xf32>, vector<32x256xf32>, vector<32x256xf32> -> vector<32x256xf32>
    %c0_23 = arith.constant 0 : index
    %c0_24 = arith.constant 0 : index
    %c0_25 = arith.constant 0 : index
    %34 = vector.load %arg18[%c0_23, %c0_24, %c0_25] : memref<1x32x1xf32, #tpu.memory_space<vmem>>, vector<1x32x1xf32>
    %35 = vector.shape_cast %34 : vector<1x32x1xf32> to vector<32x1xf32>
    %36 = vector.broadcast %35 : vector<32x1xf32> to vector<32x256xf32>
    %37 = arith.addf %33, %36 : vector<32x256xf32>
    %cst_26 = arith.constant 0.000000e+00 : f32
    %38 = vector.broadcast %cst_26 : f32 to vector<32x256xf32>
    %39 = arith.cmpf oge, %37, %38 : vector<32x256xf32>
    %40 = vector.broadcast %14 : vector<1x1xf32> to vector<32x256xf32>
    %41 = arith.mulf %40, %37 : vector<32x256xf32>
    %42 = arith.select %39, %37, %41 : vector<32x256xi1>, vector<32x256xf32>
    %c0_27 = arith.constant 0 : index
    %c0_28 = arith.constant 0 : index
    %c0_29 = arith.constant 0 : index
    %43 = vector.load %arg19[%c0_27, %c0_28, %c0_29] : memref<1x32x32xf32, #tpu.memory_space<vmem>>, vector<1x32x32xf32>
    %44 = vector.shape_cast %43 : vector<1x32x32xf32> to vector<32x32xf32>
    %cst_30 = arith.constant dense<0.000000e+00> : vector<32x256xf32>
    %45 = tpu.matmul %44, %42, %cst_30 {dimension_numbers = #tpu.dot_dimension_numbers<[1], [0], [0], [1], [0, 0, 1, 1], [], []>} : vector<32x32xf32>, vector<32x256xf32>, vector<32x256xf32> -> vector<32x256xf32>
    %c0_31 = arith.constant 0 : index
    %c0_32 = arith.constant 0 : index
    %c0_33 = arith.constant 0 : index
    %46 = vector.load %arg20[%c0_31, %c0_32, %c0_33] : memref<1x32x1xf32, #tpu.memory_space<vmem>>, vector<1x32x1xf32>
    %47 = vector.shape_cast %46 : vector<1x32x1xf32> to vector<32x1xf32>
    %48 = vector.broadcast %47 : vector<32x1xf32> to vector<32x256xf32>
    %49 = arith.addf %45, %48 : vector<32x256xf32>
    %cst_34 = arith.constant 0.000000e+00 : f32
    %50 = vector.broadcast %cst_34 : f32 to vector<32x256xf32>
    %51 = arith.cmpf oge, %49, %50 : vector<32x256xf32>
    %52 = vector.broadcast %15 : vector<1x1xf32> to vector<32x256xf32>
    %53 = arith.mulf %52, %49 : vector<32x256xf32>
    %54 = arith.select %51, %49, %53 : vector<32x256xi1>, vector<32x256xf32>
    %55 = arith.index_cast %arg1 : i32 to index
    %c0_35 = arith.constant 0 : index
    %c0_36 = arith.constant 0 : index
    %56 = vector.load %arg36[%55, %c0_35, %c0_36] : memref<1x32x256xf32, #tpu.memory_space<vmem>>, vector<1x32x256xf32>
    %57 = vector.shape_cast %56 : vector<1x32x256xf32> to vector<32x256xf32>
    %cst_37 = arith.constant dense<0.000000e+00> : vector<16x256xf32>
    %58 = tpu.matmul %17, %57, %cst_37 {dimension_numbers = #tpu.dot_dimension_numbers<[1], [0], [0], [1], [0, 0, 1, 1], [], []>} : vector<16x32xf32>, vector<32x256xf32>, vector<16x256xf32> -> vector<16x256xf32>
    %c0_38 = arith.constant 0 : index
    %c0_39 = arith.constant 0 : index
    %c0_40 = arith.constant 0 : index
    %59 = vector.load %arg21[%c0_38, %c0_39, %c0_40] : memref<1x256x32xf32, #tpu.memory_space<vmem>>, vector<1x16x32xf32>
    %60 = vector.shape_cast %59 : vector<1x16x32xf32> to vector<16x32xf32>
    %cst_41 = arith.constant dense<0.000000e+00> : vector<16x256xf32>
    %61 = tpu.matmul %60, %54, %cst_41 {dimension_numbers = #tpu.dot_dimension_numbers<[1], [0], [0], [1], [0, 0, 1, 1], [], []>} : vector<16x32xf32>, vector<32x256xf32>, vector<16x256xf32> -> vector<16x256xf32>
    %c0_42 = arith.constant 0 : index
    %c0_43 = arith.constant 0 : index
    %c0_44 = arith.constant 0 : index
    %62 = vector.load %arg22[%c0_42, %c0_43, %c0_44] : memref<1x256x1xf32, #tpu.memory_space<vmem>>, vector<1x16x1xf32>
    %63 = vector.shape_cast %62 : vector<1x16x1xf32> to vector<16x1xf32>
    %64 = vector.broadcast %63 : vector<16x1xf32> to vector<16x256xf32>
    %65 = arith.addf %61, %64 : vector<16x256xf32>
    %66 = vector.extract_strided_slice %58 {offsets = [0, 0], sizes = [1, 256], strides = [1, 1]} : vector<16x256xf32> to vector<1x256xf32>
    %67 = vector.broadcast %66 : vector<1x256xf32> to vector<16x256xf32>
    %68 = arith.mulf %65, %67 : vector<16x256xf32>
    %c0_45 = arith.constant 0 : index
    %c16 = arith.constant 16 : index
    %c0_46 = arith.constant 0 : index
    %69 = vector.load %arg21[%c0_45, %c16, %c0_46] : memref<1x256x32xf32, #tpu.memory_space<vmem>>, vector<1x16x32xf32>
    %70 = vector.shape_cast %69 : vector<1x16x32xf32> to vector<16x32xf32>
    %cst_47 = arith.constant dense<0.000000e+00> : vector<16x256xf32>
    %71 = tpu.matmul %70, %54, %cst_47 {dimension_numbers = #tpu.dot_dimension_numbers<[1], [0], [0], [1], [0, 0, 1, 1], [], []>} : vector<16x32xf32>, vector<32x256xf32>, vector<16x256xf32> -> vector<16x256xf32>
    %c0_48 = arith.constant 0 : index
    %c16_49 = arith.constant 16 : index
    %c0_50 = arith.constant 0 : index
    %72 = vector.load %arg22[%c0_48, %c16_49, %c0_50] : memref<1x256x1xf32, #tpu.memory_space<vmem>>, vector<1x16x1xf32>
    %73 = vector.shape_cast %72 : vector<1x16x1xf32> to vector<16x1xf32>
    %74 = vector.broadcast %73 : vector<16x1xf32> to vector<16x256xf32>
    %75 = arith.addf %71, %74 : vector<16x256xf32>
    %76 = vector.extract_strided_slice %58 {offsets = [1, 0], sizes = [1, 256], strides = [1, 1]} : vector<16x256xf32> to vector<1x256xf32>
    %77 = vector.broadcast %76 : vector<1x256xf32> to vector<16x256xf32>
    %78 = arith.mulf %75, %77 : vector<16x256xf32>
    %79 = arith.addf %68, %78 : vector<16x256xf32>
    %c0_51 = arith.constant 0 : index
    %c32 = arith.constant 32 : index
    %c0_52 = arith.constant 0 : index
    %80 = vector.load %arg21[%c0_51, %c32, %c0_52] : memref<1x256x32xf32, #tpu.memory_space<vmem>>, vector<1x16x32xf32>
    %81 = vector.shape_cast %80 : vector<1x16x32xf32> to vector<16x32xf32>
    %cst_53 = arith.constant dense<0.000000e+00> : vector<16x256xf32>
    %82 = tpu.matmul %81, %54, %cst_53 {dimension_numbers = #tpu.dot_dimension_numbers<[1], [0], [0], [1], [0, 0, 1, 1], [], []>} : vector<16x32xf32>, vector<32x256xf32>, vector<16x256xf32> -> vector<16x256xf32>
    %c0_54 = arith.constant 0 : index
    %c32_55 = arith.constant 32 : index
    %c0_56 = arith.constant 0 : index
    %83 = vector.load %arg22[%c0_54, %c32_55, %c0_56] : memref<1x256x1xf32, #tpu.memory_space<vmem>>, vector<1x16x1xf32>
    %84 = vector.shape_cast %83 : vector<1x16x1xf32> to vector<16x1xf32>
    %85 = vector.broadcast %84 : vector<16x1xf32> to vector<16x256xf32>
    %86 = arith.addf %82, %85 : vector<16x256xf32>
    %87 = vector.extract_strided_slice %58 {offsets = [2, 0], sizes = [1, 256], strides = [1, 1]} : vector<16x256xf32> to vector<1x256xf32>
    %88 = vector.broadcast %87 : vector<1x256xf32> to vector<16x256xf32>
    %89 = arith.mulf %86, %88 : vector<16x256xf32>
    %90 = arith.addf %79, %89 : vector<16x256xf32>
    %c0_57 = arith.constant 0 : index
    %c48 = arith.constant 48 : index
    %c0_58 = arith.constant 0 : index
    %91 = vector.load %arg21[%c0_57, %c48, %c0_58] : memref<1x256x32xf32, #tpu.memory_space<vmem>>, vector<1x16x32xf32>
    %92 = vector.shape_cast %91 : vector<1x16x32xf32> to vector<16x32xf32>
    %cst_59 = arith.constant dense<0.000000e+00> : vector<16x256xf32>
    %93 = tpu.matmul %92, %54, %cst_59 {dimension_numbers = #tpu.dot_dimension_numbers<[1], [0], [0], [1], [0, 0, 1, 1], [], []>} : vector<16x32xf32>, vector<32x256xf32>, vector<16x256xf32> -> vector<16x256xf32>
    %c0_60 = arith.constant 0 : index
    %c48_61 = arith.constant 48 : index
    %c0_62 = arith.constant 0 : index
    %94 = vector.load %arg22[%c0_60, %c48_61, %c0_62] : memref<1x256x1xf32, #tpu.memory_space<vmem>>, vector<1x16x1xf32>
    %95 = vector.shape_cast %94 : vector<1x16x1xf32> to vector<16x1xf32>
    %96 = vector.broadcast %95 : vector<16x1xf32> to vector<16x256xf32>
    %97 = arith.addf %93, %96 : vector<16x256xf32>
    %98 = vector.extract_strided_slice %58 {offsets = [3, 0], sizes = [1, 256], strides = [1, 1]} : vector<16x256xf32> to vector<1x256xf32>
    %99 = vector.broadcast %98 : vector<1x256xf32> to vector<16x256xf32>
    %100 = arith.mulf %97, %99 : vector<16x256xf32>
    %101 = arith.addf %90, %100 : vector<16x256xf32>
    %c0_63 = arith.constant 0 : index
    %c64 = arith.constant 64 : index
    %c0_64 = arith.constant 0 : index
    %102 = vector.load %arg21[%c0_63, %c64, %c0_64] : memref<1x256x32xf32, #tpu.memory_space<vmem>>, vector<1x16x32xf32>
    %103 = vector.shape_cast %102 : vector<1x16x32xf32> to vector<16x32xf32>
    %cst_65 = arith.constant dense<0.000000e+00> : vector<16x256xf32>
    %104 = tpu.matmul %103, %54, %cst_65 {dimension_numbers = #tpu.dot_dimension_numbers<[1], [0], [0], [1], [0, 0, 1, 1], [], []>} : vector<16x32xf32>, vector<32x256xf32>, vector<16x256xf32> -> vector<16x256xf32>
    %c0_66 = arith.constant 0 : index
    %c64_67 = arith.constant 64 : index
    %c0_68 = arith.constant 0 : index
    %105 = vector.load %arg22[%c0_66, %c64_67, %c0_68] : memref<1x256x1xf32, #tpu.memory_space<vmem>>, vector<1x16x1xf32>
    %106 = vector.shape_cast %105 : vector<1x16x1xf32> to vector<16x1xf32>
    %107 = vector.broadcast %106 : vector<16x1xf32> to vector<16x256xf32>
    %108 = arith.addf %104, %107 : vector<16x256xf32>
    %109 = vector.extract_strided_slice %58 {offsets = [4, 0], sizes = [1, 256], strides = [1, 1]} : vector<16x256xf32> to vector<1x256xf32>
    %110 = vector.broadcast %109 : vector<1x256xf32> to vector<16x256xf32>
    %111 = arith.mulf %108, %110 : vector<16x256xf32>
    %112 = arith.addf %101, %111 : vector<16x256xf32>
    %c0_69 = arith.constant 0 : index
    %c80 = arith.constant 80 : index
    %c0_70 = arith.constant 0 : index
    %113 = vector.load %arg21[%c0_69, %c80, %c0_70] : memref<1x256x32xf32, #tpu.memory_space<vmem>>, vector<1x16x32xf32>
    %114 = vector.shape_cast %113 : vector<1x16x32xf32> to vector<16x32xf32>
    %cst_71 = arith.constant dense<0.000000e+00> : vector<16x256xf32>
    %115 = tpu.matmul %114, %54, %cst_71 {dimension_numbers = #tpu.dot_dimension_numbers<[1], [0], [0], [1], [0, 0, 1, 1], [], []>} : vector<16x32xf32>, vector<32x256xf32>, vector<16x256xf32> -> vector<16x256xf32>
    %c0_72 = arith.constant 0 : index
    %c80_73 = arith.constant 80 : index
    %c0_74 = arith.constant 0 : index
    %116 = vector.load %arg22[%c0_72, %c80_73, %c0_74] : memref<1x256x1xf32, #tpu.memory_space<vmem>>, vector<1x16x1xf32>
    %117 = vector.shape_cast %116 : vector<1x16x1xf32> to vector<16x1xf32>
    %118 = vector.broadcast %117 : vector<16x1xf32> to vector<16x256xf32>
    %119 = arith.addf %115, %118 : vector<16x256xf32>
    %120 = vector.extract_strided_slice %58 {offsets = [5, 0], sizes = [1, 256], strides = [1, 1]} : vector<16x256xf32> to vector<1x256xf32>
    %121 = vector.broadcast %120 : vector<1x256xf32> to vector<16x256xf32>
    %122 = arith.mulf %119, %121 : vector<16x256xf32>
    %123 = arith.addf %112, %122 : vector<16x256xf32>
    %c0_75 = arith.constant 0 : index
    %c96 = arith.constant 96 : index
    %c0_76 = arith.constant 0 : index
    %124 = vector.load %arg21[%c0_75, %c96, %c0_76] : memref<1x256x32xf32, #tpu.memory_space<vmem>>, vector<1x16x32xf32>
    %125 = vector.shape_cast %124 : vector<1x16x32xf32> to vector<16x32xf32>
    %cst_77 = arith.constant dense<0.000000e+00> : vector<16x256xf32>
    %126 = tpu.matmul %125, %54, %cst_77 {dimension_numbers = #tpu.dot_dimension_numbers<[1], [0], [0], [1], [0, 0, 1, 1], [], []>} : vector<16x32xf32>, vector<32x256xf32>, vector<16x256xf32> -> vector<16x256xf32>
    %c0_78 = arith.constant 0 : index
    %c96_79 = arith.constant 96 : index
    %c0_80 = arith.constant 0 : index
    %127 = vector.load %arg22[%c0_78, %c96_79, %c0_80] : memref<1x256x1xf32, #tpu.memory_space<vmem>>, vector<1x16x1xf32>
    %128 = vector.shape_cast %127 : vector<1x16x1xf32> to vector<16x1xf32>
    %129 = vector.broadcast %128 : vector<16x1xf32> to vector<16x256xf32>
    %130 = arith.addf %126, %129 : vector<16x256xf32>
    %131 = vector.extract_strided_slice %58 {offsets = [6, 0], sizes = [1, 256], strides = [1, 1]} : vector<16x256xf32> to vector<1x256xf32>
    %132 = vector.broadcast %131 : vector<1x256xf32> to vector<16x256xf32>
    %133 = arith.mulf %130, %132 : vector<16x256xf32>
    %134 = arith.addf %123, %133 : vector<16x256xf32>
    %c0_81 = arith.constant 0 : index
    %c112 = arith.constant 112 : index
    %c0_82 = arith.constant 0 : index
    %135 = vector.load %arg21[%c0_81, %c112, %c0_82] : memref<1x256x32xf32, #tpu.memory_space<vmem>>, vector<1x16x32xf32>
    %136 = vector.shape_cast %135 : vector<1x16x32xf32> to vector<16x32xf32>
    %cst_83 = arith.constant dense<0.000000e+00> : vector<16x256xf32>
    %137 = tpu.matmul %136, %54, %cst_83 {dimension_numbers = #tpu.dot_dimension_numbers<[1], [0], [0], [1], [0, 0, 1, 1], [], []>} : vector<16x32xf32>, vector<32x256xf32>, vector<16x256xf32> -> vector<16x256xf32>
    %c0_84 = arith.constant 0 : index
    %c112_85 = arith.constant 112 : index
    %c0_86 = arith.constant 0 : index
    %138 = vector.load %arg22[%c0_84, %c112_85, %c0_86] : memref<1x256x1xf32, #tpu.memory_space<vmem>>, vector<1x16x1xf32>
    %139 = vector.shape_cast %138 : vector<1x16x1xf32> to vector<16x1xf32>
    %140 = vector.broadcast %139 : vector<16x1xf32> to vector<16x256xf32>
    %141 = arith.addf %137, %140 : vector<16x256xf32>
    %142 = vector.extract_strided_slice %58 {offsets = [7, 0], sizes = [1, 256], strides = [1, 1]} : vector<16x256xf32> to vector<1x256xf32>
    %143 = vector.broadcast %142 : vector<1x256xf32> to vector<16x256xf32>
    %144 = arith.mulf %141, %143 : vector<16x256xf32>
    %145 = arith.addf %134, %144 : vector<16x256xf32>
    %c0_87 = arith.constant 0 : index
    %c128 = arith.constant 128 : index
    %c0_88 = arith.constant 0 : index
    %146 = vector.load %arg21[%c0_87, %c128, %c0_88] : memref<1x256x32xf32, #tpu.memory_space<vmem>>, vector<1x16x32xf32>
    %147 = vector.shape_cast %146 : vector<1x16x32xf32> to vector<16x32xf32>
    %cst_89 = arith.constant dense<0.000000e+00> : vector<16x256xf32>
    %148 = tpu.matmul %147, %54, %cst_89 {dimension_numbers = #tpu.dot_dimension_numbers<[1], [0], [0], [1], [0, 0, 1, 1], [], []>} : vector<16x32xf32>, vector<32x256xf32>, vector<16x256xf32> -> vector<16x256xf32>
    %c0_90 = arith.constant 0 : index
    %c128_91 = arith.constant 128 : index
    %c0_92 = arith.constant 0 : index
    %149 = vector.load %arg22[%c0_90, %c128_91, %c0_92] : memref<1x256x1xf32, #tpu.memory_space<vmem>>, vector<1x16x1xf32>
    %150 = vector.shape_cast %149 : vector<1x16x1xf32> to vector<16x1xf32>
    %151 = vector.broadcast %150 : vector<16x1xf32> to vector<16x256xf32>
    %152 = arith.addf %148, %151 : vector<16x256xf32>
    %153 = vector.extract_strided_slice %58 {offsets = [8, 0], sizes = [1, 256], strides = [1, 1]} : vector<16x256xf32> to vector<1x256xf32>
    %154 = vector.broadcast %153 : vector<1x256xf32> to vector<16x256xf32>
    %155 = arith.mulf %152, %154 : vector<16x256xf32>
    %156 = arith.addf %145, %155 : vector<16x256xf32>
    %c0_93 = arith.constant 0 : index
    %c144 = arith.constant 144 : index
    %c0_94 = arith.constant 0 : index
    %157 = vector.load %arg21[%c0_93, %c144, %c0_94] : memref<1x256x32xf32, #tpu.memory_space<vmem>>, vector<1x16x32xf32>
    %158 = vector.shape_cast %157 : vector<1x16x32xf32> to vector<16x32xf32>
    %cst_95 = arith.constant dense<0.000000e+00> : vector<16x256xf32>
    %159 = tpu.matmul %158, %54, %cst_95 {dimension_numbers = #tpu.dot_dimension_numbers<[1], [0], [0], [1], [0, 0, 1, 1], [], []>} : vector<16x32xf32>, vector<32x256xf32>, vector<16x256xf32> -> vector<16x256xf32>
    %c0_96 = arith.constant 0 : index
    %c144_97 = arith.constant 144 : index
    %c0_98 = arith.constant 0 : index
    %160 = vector.load %arg22[%c0_96, %c144_97, %c0_98] : memref<1x256x1xf32, #tpu.memory_space<vmem>>, vector<1x16x1xf32>
    %161 = vector.shape_cast %160 : vector<1x16x1xf32> to vector<16x1xf32>
    %162 = vector.broadcast %161 : vector<16x1xf32> to vector<16x256xf32>
    %163 = arith.addf %159, %162 : vector<16x256xf32>
    %164 = vector.extract_strided_slice %58 {offsets = [9, 0], sizes = [1, 256], strides = [1, 1]} : vector<16x256xf32> to vector<1x256xf32>
    %165 = vector.broadcast %164 : vector<1x256xf32> to vector<16x256xf32>
    %166 = arith.mulf %163, %165 : vector<16x256xf32>
    %167 = arith.addf %156, %166 : vector<16x256xf32>
    %c0_99 = arith.constant 0 : index
    %c160 = arith.constant 160 : index
    %c0_100 = arith.constant 0 : index
    %168 = vector.load %arg21[%c0_99, %c160, %c0_100] : memref<1x256x32xf32, #tpu.memory_space<vmem>>, vector<1x16x32xf32>
    %169 = vector.shape_cast %168 : vector<1x16x32xf32> to vector<16x32xf32>
    %cst_101 = arith.constant dense<0.000000e+00> : vector<16x256xf32>
    %170 = tpu.matmul %169, %54, %cst_101 {dimension_numbers = #tpu.dot_dimension_numbers<[1], [0], [0], [1], [0, 0, 1, 1], [], []>} : vector<16x32xf32>, vector<32x256xf32>, vector<16x256xf32> -> vector<16x256xf32>
    %c0_102 = arith.constant 0 : index
    %c160_103 = arith.constant 160 : index
    %c0_104 = arith.constant 0 : index
    %171 = vector.load %arg22[%c0_102, %c160_103, %c0_104] : memref<1x256x1xf32, #tpu.memory_space<vmem>>, vector<1x16x1xf32>
    %172 = vector.shape_cast %171 : vector<1x16x1xf32> to vector<16x1xf32>
    %173 = vector.broadcast %172 : vector<16x1xf32> to vector<16x256xf32>
    %174 = arith.addf %170, %173 : vector<16x256xf32>
    %175 = vector.extract_strided_slice %58 {offsets = [10, 0], sizes = [1, 256], strides = [1, 1]} : vector<16x256xf32> to vector<1x256xf32>
    %176 = vector.broadcast %175 : vector<1x256xf32> to vector<16x256xf32>
    %177 = arith.mulf %174, %176 : vector<16x256xf32>
    %178 = arith.addf %167, %177 : vector<16x256xf32>
    %c0_105 = arith.constant 0 : index
    %c176 = arith.constant 176 : index
    %c0_106 = arith.constant 0 : index
    %179 = vector.load %arg21[%c0_105, %c176, %c0_106] : memref<1x256x32xf32, #tpu.memory_space<vmem>>, vector<1x16x32xf32>
    %180 = vector.shape_cast %179 : vector<1x16x32xf32> to vector<16x32xf32>
    %cst_107 = arith.constant dense<0.000000e+00> : vector<16x256xf32>
    %181 = tpu.matmul %180, %54, %cst_107 {dimension_numbers = #tpu.dot_dimension_numbers<[1], [0], [0], [1], [0, 0, 1, 1], [], []>} : vector<16x32xf32>, vector<32x256xf32>, vector<16x256xf32> -> vector<16x256xf32>
    %c0_108 = arith.constant 0 : index
    %c176_109 = arith.constant 176 : index
    %c0_110 = arith.constant 0 : index
    %182 = vector.load %arg22[%c0_108, %c176_109, %c0_110] : memref<1x256x1xf32, #tpu.memory_space<vmem>>, vector<1x16x1xf32>
    %183 = vector.shape_cast %182 : vector<1x16x1xf32> to vector<16x1xf32>
    %184 = vector.broadcast %183 : vector<16x1xf32> to vector<16x256xf32>
    %185 = arith.addf %181, %184 : vector<16x256xf32>
    %186 = vector.extract_strided_slice %58 {offsets = [11, 0], sizes = [1, 256], strides = [1, 1]} : vector<16x256xf32> to vector<1x256xf32>
    %187 = vector.broadcast %186 : vector<1x256xf32> to vector<16x256xf32>
    %188 = arith.mulf %185, %187 : vector<16x256xf32>
    %189 = arith.addf %178, %188 : vector<16x256xf32>
    %c0_111 = arith.constant 0 : index
    %c192 = arith.constant 192 : index
    %c0_112 = arith.constant 0 : index
    %190 = vector.load %arg21[%c0_111, %c192, %c0_112] : memref<1x256x32xf32, #tpu.memory_space<vmem>>, vector<1x16x32xf32>
    %191 = vector.shape_cast %190 : vector<1x16x32xf32> to vector<16x32xf32>
    %cst_113 = arith.constant dense<0.000000e+00> : vector<16x256xf32>
    %192 = tpu.matmul %191, %54, %cst_113 {dimension_numbers = #tpu.dot_dimension_numbers<[1], [0], [0], [1], [0, 0, 1, 1], [], []>} : vector<16x32xf32>, vector<32x256xf32>, vector<16x256xf32> -> vector<16x256xf32>
    %c0_114 = arith.constant 0 : index
    %c192_115 = arith.constant 192 : index
    %c0_116 = arith.constant 0 : index
    %193 = vector.load %arg22[%c0_114, %c192_115, %c0_116] : memref<1x256x1xf32, #tpu.memory_space<vmem>>, vector<1x16x1xf32>
    %194 = vector.shape_cast %193 : vector<1x16x1xf32> to vector<16x1xf32>
    %195 = vector.broadcast %194 : vector<16x1xf32> to vector<16x256xf32>
    %196 = arith.addf %192, %195 : vector<16x256xf32>
    %197 = vector.extract_strided_slice %58 {offsets = [12, 0], sizes = [1, 256], strides = [1, 1]} : vector<16x256xf32> to vector<1x256xf32>
    %198 = vector.broadcast %197 : vector<1x256xf32> to vector<16x256xf32>
    %199 = arith.mulf %196, %198 : vector<16x256xf32>
    %200 = arith.addf %189, %199 : vector<16x256xf32>
    %c0_117 = arith.constant 0 : index
    %c208 = arith.constant 208 : index
    %c0_118 = arith.constant 0 : index
    %201 = vector.load %arg21[%c0_117, %c208, %c0_118] : memref<1x256x32xf32, #tpu.memory_space<vmem>>, vector<1x16x32xf32>
    %202 = vector.shape_cast %201 : vector<1x16x32xf32> to vector<16x32xf32>
    %cst_119 = arith.constant dense<0.000000e+00> : vector<16x256xf32>
    %203 = tpu.matmul %202, %54, %cst_119 {dimension_numbers = #tpu.dot_dimension_numbers<[1], [0], [0], [1], [0, 0, 1, 1], [], []>} : vector<16x32xf32>, vector<32x256xf32>, vector<16x256xf32> -> vector<16x256xf32>
    %c0_120 = arith.constant 0 : index
    %c208_121 = arith.constant 208 : index
    %c0_122 = arith.constant 0 : index
    %204 = vector.load %arg22[%c0_120, %c208_121, %c0_122] : memref<1x256x1xf32, #tpu.memory_space<vmem>>, vector<1x16x1xf32>
    %205 = vector.shape_cast %204 : vector<1x16x1xf32> to vector<16x1xf32>
    %206 = vector.broadcast %205 : vector<16x1xf32> to vector<16x256xf32>
    %207 = arith.addf %203, %206 : vector<16x256xf32>
    %208 = vector.extract_strided_slice %58 {offsets = [13, 0], sizes = [1, 256], strides = [1, 1]} : vector<16x256xf32> to vector<1x256xf32>
    %209 = vector.broadcast %208 : vector<1x256xf32> to vector<16x256xf32>
    %210 = arith.mulf %207, %209 : vector<16x256xf32>
    %211 = arith.addf %200, %210 : vector<16x256xf32>
    %c0_123 = arith.constant 0 : index
    %c224 = arith.constant 224 : index
    %c0_124 = arith.constant 0 : index
    %212 = vector.load %arg21[%c0_123, %c224, %c0_124] : memref<1x256x32xf32, #tpu.memory_space<vmem>>, vector<1x16x32xf32>
    %213 = vector.shape_cast %212 : vector<1x16x32xf32> to vector<16x32xf32>
    %cst_125 = arith.constant dense<0.000000e+00> : vector<16x256xf32>
    %214 = tpu.matmul %213, %54, %cst_125 {dimension_numbers = #tpu.dot_dimension_numbers<[1], [0], [0], [1], [0, 0, 1, 1], [], []>} : vector<16x32xf32>, vector<32x256xf32>, vector<16x256xf32> -> vector<16x256xf32>
    %c0_126 = arith.constant 0 : index
    %c224_127 = arith.constant 224 : index
    %c0_128 = arith.constant 0 : index
    %215 = vector.load %arg22[%c0_126, %c224_127, %c0_128] : memref<1x256x1xf32, #tpu.memory_space<vmem>>, vector<1x16x1xf32>
    %216 = vector.shape_cast %215 : vector<1x16x1xf32> to vector<16x1xf32>
    %217 = vector.broadcast %216 : vector<16x1xf32> to vector<16x256xf32>
    %218 = arith.addf %214, %217 : vector<16x256xf32>
    %219 = vector.extract_strided_slice %58 {offsets = [14, 0], sizes = [1, 256], strides = [1, 1]} : vector<16x256xf32> to vector<1x256xf32>
    %220 = vector.broadcast %219 : vector<1x256xf32> to vector<16x256xf32>
    %221 = arith.mulf %218, %220 : vector<16x256xf32>
    %222 = arith.addf %211, %221 : vector<16x256xf32>
    %c0_129 = arith.constant 0 : index
    %c240 = arith.constant 240 : index
    %c0_130 = arith.constant 0 : index
    %223 = vector.load %arg21[%c0_129, %c240, %c0_130] : memref<1x256x32xf32, #tpu.memory_space<vmem>>, vector<1x16x32xf32>
    %224 = vector.shape_cast %223 : vector<1x16x32xf32> to vector<16x32xf32>
    %cst_131 = arith.constant dense<0.000000e+00> : vector<16x256xf32>
    %225 = tpu.matmul %224, %54, %cst_131 {dimension_numbers = #tpu.dot_dimension_numbers<[1], [0], [0], [1], [0, 0, 1, 1], [], []>} : vector<16x32xf32>, vector<32x256xf32>, vector<16x256xf32> -> vector<16x256xf32>
    %c0_132 = arith.constant 0 : index
    %c240_133 = arith.constant 240 : index
    %c0_134 = arith.constant 0 : index
    %226 = vector.load %arg22[%c0_132, %c240_133, %c0_134] : memref<1x256x1xf32, #tpu.memory_space<vmem>>, vector<1x16x1xf32>
    %227 = vector.shape_cast %226 : vector<1x16x1xf32> to vector<16x1xf32>
    %228 = vector.broadcast %227 : vector<16x1xf32> to vector<16x256xf32>
    %229 = arith.addf %225, %228 : vector<16x256xf32>
    %230 = vector.extract_strided_slice %58 {offsets = [15, 0], sizes = [1, 256], strides = [1, 1]} : vector<16x256xf32> to vector<1x256xf32>
    %231 = vector.broadcast %230 : vector<1x256xf32> to vector<16x256xf32>
    %232 = arith.mulf %229, %231 : vector<16x256xf32>
    %233 = arith.addf %222, %232 : vector<16x256xf32>
    %c0_135 = arith.constant 0 : index
    %c0_136 = arith.constant 0 : index
    %234 = vector.load %arg35[%c0_135, %c0_136] : memref<16x32xf32, #tpu.memory_space<vmem>>, vector<16x32xf32>
    %235 = arith.index_cast %arg1 : i32 to index
    %c0_137 = arith.constant 0 : index
    %c0_138 = arith.constant 0 : index
    %236 = vector.load %arg37[%235, %c0_137, %c0_138] : memref<1x32x256xf32, #tpu.memory_space<vmem>>, vector<1x32x256xf32>
    %237 = vector.shape_cast %236 : vector<1x32x256xf32> to vector<32x256xf32>
    %cst_139 = arith.constant dense<0.000000e+00> : vector<16x32xf32>
    %238 = tpu.matmul %233, %237, %cst_139 {dimension_numbers = #tpu.dot_dimension_numbers<[1], [1], [0], [0], [0, 0, 1, 0], [], []>} : vector<16x256xf32>, vector<32x256xf32>, vector<16x32xf32> -> vector<16x32xf32>
    %239 = arith.addf %234, %238 : vector<16x32xf32>
    %c0_140 = arith.constant 0 : index
    %c0_141 = arith.constant 0 : index
    %240 = vector.load %arg35[%c0_140, %c0_141] : memref<16x32xf32, #tpu.memory_space<vmem>>, vector<16x32xf32>
    tpu.vector_store %arg35[%c0_140, %c0_141], %239 {strides = array<i32>} : memref<16x32xf32, #tpu.memory_space<vmem>>, vector<16x32xf32>,
    %c0_i32_142 = arith.constant 0 : i32
    %241 = arith.cmpi eq, %arg1, %c0_i32_142 : i32
    %242 = arith.extui %241 : i1 to i32
    %c0_i32_143 = arith.constant 0 : i32
    %243 = arith.cmpi ne, %242, %c0_i32_143 : i32
    scf.if %243 {
      %c0_146 = arith.constant 0 : index
      %c0_147 = arith.constant 0 : index
      %249 = vector.load %arg35[%c0_146, %c0_147] : memref<16x32xf32, #tpu.memory_space<vmem>>, vector<16x32xf32>
      %c0_148 = arith.constant 0 : index
      %c0_149 = arith.constant 0 : index
      %250 = vector.load %arg6[%c0_148, %c0_149] : memref<1x32xf32, #tpu.memory_space<vmem>>, vector<1x32xf32>
      %251 = vector.broadcast %250 : vector<1x32xf32> to vector<16x32xf32>
      %252 = arith.mulf %249, %251 : vector<16x32xf32>
      %c0_150 = arith.constant 0 : index
      %c0_151 = arith.constant 0 : index
      %c0_152 = arith.constant 0 : index
      %253 = vector.load %arg23[%c0_150, %c0_151, %c0_152] : memref<1x16x16xf32, #tpu.memory_space<vmem>>, vector<1x16x16xf32>
      %254 = vector.shape_cast %253 : vector<1x16x16xf32> to vector<16x16xf32>
      %cst_153 = arith.constant dense<0.000000e+00> : vector<16x32xf32>
      %255 = tpu.matmul %254, %17, %cst_153 {dimension_numbers = #tpu.dot_dimension_numbers<[1], [0], [0], [1], [0, 0, 1, 1], [], []>} : vector<16x16xf32>, vector<16x32xf32>, vector<16x32xf32> -> vector<16x32xf32>
      %256 = arith.addf %252, %255 : vector<16x32xf32>
      %c0_154 = arith.constant 0 : index
      %c0_155 = arith.constant 0 : index
      %c0_156 = arith.constant 0 : index
      %257 = vector.load %arg24[%c0_154, %c0_155, %c0_156] : memref<1x16x1xf32, #tpu.memory_space<vmem>>, vector<1x16x1xf32>
      %258 = vector.shape_cast %257 : vector<1x16x1xf32> to vector<16x1xf32>
      %259 = vector.broadcast %258 : vector<16x1xf32> to vector<16x32xf32>
      %260 = arith.addf %256, %259 : vector<16x32xf32>
      %cst_157 = arith.constant 0.000000e+00 : f32
      %261 = vector.broadcast %cst_157 : f32 to vector<16x32xf32>
      %262 = arith.cmpf oge, %260, %261 : vector<16x32xf32>
      %263 = vector.broadcast %16 : vector<1x1xf32> to vector<16x32xf32>
      %264 = arith.mulf %263, %260 : vector<16x32xf32>
      %265 = arith.select %262, %260, %264 : vector<16x32xi1>, vector<16x32xf32>
      %c0_158 = arith.constant 0 : index
      %c0_159 = arith.constant 0 : index
      %266 = vector.load %arg34[%c0_158, %c0_159] : memref<16x32xf32, #tpu.memory_space<vmem>>, vector<16x32xf32>
      tpu.vector_store %arg34[%c0_158, %c0_159], %265 {strides = array<i32>} : memref<16x32xf32, #tpu.memory_space<vmem>>, vector<16x32xf32>,
    } else {
    }
    %c12_i32 = arith.constant 12 : i32
    %244 = arith.cmpi eq, %arg0, %c12_i32 : i32
    %c0_i32_144 = arith.constant 0 : i32
    %245 = arith.cmpi eq, %arg1, %c0_i32_144 : i32
    %246 = arith.andi %244, %245 : i1
    %247 = arith.extui %246 : i1 to i32
    %c0_i32_145 = arith.constant 0 : i32
    %248 = arith.cmpi ne, %247, %c0_i32_145 : i32
    scf.if %248 {
      %c0_146 = arith.constant 0 : index
      %c0_147 = arith.constant 0 : index
      %249 = vector.load %arg34[%c0_146, %c0_147] : memref<16x32xf32, #tpu.memory_space<vmem>>, vector<16x32xf32>
      %c0_148 = arith.constant 0 : index
      %c0_149 = arith.constant 0 : index
      %250 = vector.load %arg25[%c0_148, %c0_149] : memref<48x16xf32, #tpu.memory_space<vmem>>, vector<48x16xf32>
      %cst_150 = arith.constant dense<0.000000e+00> : vector<48x32xf32>
      %251 = tpu.matmul %250, %249, %cst_150 {dimension_numbers = #tpu.dot_dimension_numbers<[1], [0], [0], [1], [0, 0, 1, 1], [], []>} : vector<48x16xf32>, vector<16x32xf32>, vector<48x32xf32> -> vector<48x32xf32>
      %c0_151 = arith.constant 0 : index
      %c0_152 = arith.constant 0 : index
      %252 = vector.load %arg26[%c0_151, %c0_152] : memref<48x1xf32, #tpu.memory_space<vmem>>, vector<48x1xf32>
      %253 = vector.broadcast %252 : vector<48x1xf32> to vector<48x32xf32>
      %254 = arith.addf %251, %253 : vector<48x32xf32>
      %c0_153 = arith.constant 0 : index
      %c0_154 = arith.constant 0 : index
      %255 = vector.load %arg27[%c0_153, %c0_154] : memref<48x1xf32, #tpu.memory_space<vmem>>, vector<48x1xf32>
      %cst_155 = arith.constant 0.000000e+00 : f32
      %256 = vector.broadcast %cst_155 : f32 to vector<48x32xf32>
      %257 = arith.cmpf oge, %254, %256 : vector<48x32xf32>
      %258 = vector.broadcast %255 : vector<48x1xf32> to vector<48x32xf32>
      %259 = arith.mulf %258, %254 : vector<48x32xf32>
      %260 = arith.select %257, %254, %259 : vector<48x32xi1>, vector<48x32xf32>
      %c0_156 = arith.constant 0 : index
      %c0_157 = arith.constant 0 : index
      %261 = vector.load %arg28[%c0_156, %c0_157] : memref<24x48xf32, #tpu.memory_space<vmem>>, vector<24x48xf32>
      %cst_158 = arith.constant dense<0.000000e+00> : vector<24x32xf32>
      %262 = tpu.matmul %261, %260, %cst_158 {dimension_numbers = #tpu.dot_dimension_numbers<[1], [0], [0], [1], [0, 0, 1, 1], [], []>} : vector<24x48xf32>, vector<48x32xf32>, vector<24x32xf32> -> vector<24x32xf32>
      %c0_159 = arith.constant 0 : index
      %c0_160 = arith.constant 0 : index
      %263 = vector.load %arg29[%c0_159, %c0_160] : memref<24x1xf32, #tpu.memory_space<vmem>>, vector<24x1xf32>
      %264 = vector.broadcast %263 : vector<24x1xf32> to vector<24x32xf32>
      %265 = arith.addf %262, %264 : vector<24x32xf32>
      %c0_161 = arith.constant 0 : index
      %c0_162 = arith.constant 0 : index
      %266 = vector.load %arg30[%c0_161, %c0_162] : memref<24x1xf32, #tpu.memory_space<vmem>>, vector<24x1xf32>
      %cst_163 = arith.constant 0.000000e+00 : f32
      %267 = vector.broadcast %cst_163 : f32 to vector<24x32xf32>
      %268 = arith.cmpf oge, %265, %267 : vector<24x32xf32>
      %269 = vector.broadcast %266 : vector<24x1xf32> to vector<24x32xf32>
      %270 = arith.mulf %269, %265 : vector<24x32xf32>
      %271 = arith.select %268, %265, %270 : vector<24x32xi1>, vector<24x32xf32>
      %c0_164 = arith.constant 0 : index
      %c0_165 = arith.constant 0 : index
      %272 = vector.load %arg31[%c0_164, %c0_165] : memref<12x24xf32, #tpu.memory_space<vmem>>, vector<12x24xf32>
      %cst_166 = arith.constant dense<0.000000e+00> : vector<12x32xf32>
      %273 = tpu.matmul %272, %271, %cst_166 {dimension_numbers = #tpu.dot_dimension_numbers<[1], [0], [0], [1], [0, 0, 1, 1], [], []>} : vector<12x24xf32>, vector<24x32xf32>, vector<12x32xf32> -> vector<12x32xf32>
      %c0_167 = arith.constant 0 : index
      %c0_168 = arith.constant 0 : index
      %274 = vector.load %arg32[%c0_167, %c0_168] : memref<12x1xf32, #tpu.memory_space<vmem>>, vector<12x1xf32>
      %275 = vector.broadcast %274 : vector<12x1xf32> to vector<12x32xf32>
      %276 = arith.addf %273, %275 : vector<12x32xf32>
      %c0_169 = arith.constant 0 : index
      %c0_170 = arith.constant 0 : index
      %277 = vector.load %arg33[%c0_169, %c0_170] : memref<12x32xf32, #tpu.memory_space<vmem>>, vector<12x32xf32>
      tpu.vector_store %arg33[%c0_169, %c0_170], %276 {strides = array<i32>} : memref<12x32xf32, #tpu.memory_space<vmem>>, vector<12x32xf32>,
    } else {
    }
    return
  }
  func.func @transform_0(%arg0: i32, %arg1: i32) -> (i32, i32) {
    %c0_i32 = arith.constant 0 : i32
    %c0_i32_0 = arith.constant 0 : i32
    %c0_i32_1 = arith.constant 0 : i32
    return %c0_i32, %c0_i32_0 : i32, i32
  }
  func.func @transform_1(%arg0: i32, %arg1: i32) -> (i32, i32) {
    %c0_i32 = arith.constant 0 : i32
    %c0_i32_0 = arith.constant 0 : i32
    return %c0_i32, %arg1 : i32, i32
  }
  func.func @transform_2(%arg0: i32, %arg1: i32) -> (i32, i32) {
    %c0_i32 = arith.constant 0 : i32
    %c0_i32_0 = arith.constant 0 : i32
    return %c0_i32, %arg1 : i32, i32
  }
  func.func @transform_3(%arg0: i32, %arg1: i32) -> (i32, i32) {
    %c0_i32 = arith.constant 0 : i32
    %c0_i32_0 = arith.constant 0 : i32
    return %c0_i32, %arg1 : i32, i32
  }
  func.func @transform_4(%arg0: i32, %arg1: i32) -> (i32, i32) {
    %c0_i32 = arith.constant 0 : i32
    %c0_i32_0 = arith.constant 0 : i32
    %c0_i32_1 = arith.constant 0 : i32
    return %c0_i32, %c0_i32_0 : i32, i32
  }
  func.func @transform_5(%arg0: i32, %arg1: i32) -> (i32, i32) {
    %c0_i32 = arith.constant 0 : i32
    %c0_i32_0 = arith.constant 0 : i32
    %c0_i32_1 = arith.constant 0 : i32
    return %c0_i32, %c0_i32_0 : i32, i32
  }
  func.func @transform_6(%arg0: i32, %arg1: i32) -> (i32, i32) {
    %c0_i32 = arith.constant 0 : i32
    %c0_i32_0 = arith.constant 0 : i32
    %c0_i32_1 = arith.constant 0 : i32
    return %c0_i32, %c0_i32_0 : i32, i32
  }
  func.func @transform_7(%arg0: i32, %arg1: i32) -> (i32, i32) {
    %c0_i32 = arith.constant 0 : i32
    %c0_i32_0 = arith.constant 0 : i32
    %c0_i32_1 = arith.constant 0 : i32
    return %c0_i32, %c0_i32_0 : i32, i32
  }
  func.func @transform_8(%arg0: i32, %arg1: i32) -> (i32, i32) {
    %c0_i32 = arith.constant 0 : i32
    %c0_i32_0 = arith.constant 0 : i32
    %c0_i32_1 = arith.constant 0 : i32
    return %c0_i32, %c0_i32_0 : i32, i32
  }
  func.func @transform_9(%arg0: i32, %arg1: i32) -> (i32, i32) {
    %c0_i32 = arith.constant 0 : i32
    %c0_i32_0 = arith.constant 0 : i32
    %c0_i32_1 = arith.constant 0 : i32
    return %c0_i32, %c0_i32_0 : i32, i32
  }
  func.func @transform_10(%arg0: i32, %arg1: i32) -> (i32, i32) {
    %c0_i32 = arith.constant 0 : i32
    %c0_i32_0 = arith.constant 0 : i32
    %c0_i32_1 = arith.constant 0 : i32
    return %c0_i32, %c0_i32_0 : i32, i32
  }
  func.func @transform_11(%arg0: i32, %arg1: i32) -> (i32, i32) {
    %c0_i32 = arith.constant 0 : i32
    %c0_i32_0 = arith.constant 0 : i32
    %c0_i32_1 = arith.constant 0 : i32
    return %c0_i32, %c0_i32_0 : i32, i32
  }
  func.func @transform_12(%arg0: i32, %arg1: i32) -> (i32, i32, i32) {
    %c0_i32 = arith.constant 0 : i32
    %c0_i32_0 = arith.constant 0 : i32
    %c0_i32_1 = arith.constant 0 : i32
    return %arg0, %c0_i32, %c0_i32_0 : i32, i32, i32
  }
  func.func @transform_13(%arg0: i32, %arg1: i32) -> (i32, i32, i32) {
    %c0_i32 = arith.constant 0 : i32
    %c0_i32_0 = arith.constant 0 : i32
    %c0_i32_1 = arith.constant 0 : i32
    return %arg0, %c0_i32, %c0_i32_0 : i32, i32, i32
  }
  func.func @transform_14(%arg0: i32, %arg1: i32) -> (i32, i32, i32) {
    %c0_i32 = arith.constant 0 : i32
    %c0_i32_0 = arith.constant 0 : i32
    %c0_i32_1 = arith.constant 0 : i32
    return %arg0, %c0_i32, %c0_i32_0 : i32, i32, i32
  }
  func.func @transform_15(%arg0: i32, %arg1: i32) -> (i32, i32, i32) {
    %c0_i32 = arith.constant 0 : i32
    %c0_i32_0 = arith.constant 0 : i32
    %c0_i32_1 = arith.constant 0 : i32
    return %arg0, %c0_i32, %c0_i32_0 : i32, i32, i32
  }
  func.func @transform_16(%arg0: i32, %arg1: i32) -> (i32, i32, i32) {
    %c0_i32 = arith.constant 0 : i32
    %c0_i32_0 = arith.constant 0 : i32
    %c0_i32_1 = arith.constant 0 : i32
    return %arg0, %c0_i32, %c0_i32_0 : i32, i32, i32
  }
  func.func @transform_17(%arg0: i32, %arg1: i32) -> (i32, i32, i32) {
    %c0_i32 = arith.constant 0 : i32
    %c0_i32_0 = arith.constant 0 : i32
    %c0_i32_1 = arith.constant 0 : i32
    return %arg0, %c0_i32, %c0_i32_0 : i32, i32, i32
  }
  func.func @transform_18(%arg0: i32, %arg1: i32) -> (i32, i32, i32) {
    %c0_i32 = arith.constant 0 : i32
    %c0_i32_0 = arith.constant 0 : i32
    %c0_i32_1 = arith.constant 0 : i32
    return %arg0, %c0_i32, %c0_i32_0 : i32, i32, i32
  }
  func.func @transform_19(%arg0: i32, %arg1: i32) -> (i32, i32, i32) {
    %c0_i32 = arith.constant 0 : i32
    %c0_i32_0 = arith.constant 0 : i32
    %c0_i32_1 = arith.constant 0 : i32
    return %arg0, %c0_i32, %c0_i32_0 : i32, i32, i32
  }
  func.func @transform_20(%arg0: i32, %arg1: i32) -> (i32, i32, i32) {
    %c0_i32 = arith.constant 0 : i32
    %c0_i32_0 = arith.constant 0 : i32
    %c0_i32_1 = arith.constant 0 : i32
    return %arg0, %c0_i32, %c0_i32_0 : i32, i32, i32
  }
  func.func @transform_21(%arg0: i32, %arg1: i32) -> (i32, i32, i32) {
    %c0_i32 = arith.constant 0 : i32
    %c0_i32_0 = arith.constant 0 : i32
    %c0_i32_1 = arith.constant 0 : i32
    return %arg0, %c0_i32, %c0_i32_0 : i32, i32, i32
  }
  func.func @transform_22(%arg0: i32, %arg1: i32) -> (i32, i32, i32) {
    %c0_i32 = arith.constant 0 : i32
    %c0_i32_0 = arith.constant 0 : i32
    %c0_i32_1 = arith.constant 0 : i32
    return %arg0, %c0_i32, %c0_i32_0 : i32, i32, i32
  }
  func.func @transform_23(%arg0: i32, %arg1: i32) -> (i32, i32) {
    %c0_i32 = arith.constant 0 : i32
    %c0_i32_0 = arith.constant 0 : i32
    %c0_i32_1 = arith.constant 0 : i32
    return %c0_i32, %c0_i32_0 : i32, i32
  }
  func.func @transform_24(%arg0: i32, %arg1: i32) -> (i32, i32) {
    %c0_i32 = arith.constant 0 : i32
    %c0_i32_0 = arith.constant 0 : i32
    %c0_i32_1 = arith.constant 0 : i32
    return %c0_i32, %c0_i32_0 : i32, i32
  }
  func.func @transform_25(%arg0: i32, %arg1: i32) -> (i32, i32) {
    %c0_i32 = arith.constant 0 : i32
    %c0_i32_0 = arith.constant 0 : i32
    %c0_i32_1 = arith.constant 0 : i32
    return %c0_i32, %c0_i32_0 : i32, i32
  }
  func.func @transform_26(%arg0: i32, %arg1: i32) -> (i32, i32) {
    %c0_i32 = arith.constant 0 : i32
    %c0_i32_0 = arith.constant 0 : i32
    %c0_i32_1 = arith.constant 0 : i32
    return %c0_i32, %c0_i32_0 : i32, i32
  }
  func.func @transform_27(%arg0: i32, %arg1: i32) -> (i32, i32) {
    %c0_i32 = arith.constant 0 : i32
    %c0_i32_0 = arith.constant 0 : i32
    %c0_i32_1 = arith.constant 0 : i32
    return %c0_i32, %c0_i32_0 : i32, i32
  }
  func.func @transform_28(%arg0: i32, %arg1: i32) -> (i32, i32) {
    %c0_i32 = arith.constant 0 : i32
    %c0_i32_0 = arith.constant 0 : i32
    %c0_i32_1 = arith.constant 0 : i32
    return %c0_i32, %c0_i32_0 : i32, i32
  }
  func.func @transform_29(%arg0: i32, %arg1: i32) -> (i32, i32) {
    %c0_i32 = arith.constant 0 : i32
    %c0_i32_0 = arith.constant 0 : i32
    %c0_i32_1 = arith.constant 0 : i32
    return %c0_i32, %c0_i32_0 : i32, i32
  }
  func.func @transform_30(%arg0: i32, %arg1: i32) -> (i32, i32) {
    %c0_i32 = arith.constant 0 : i32
    %c0_i32_0 = arith.constant 0 : i32
    %c0_i32_1 = arith.constant 0 : i32
    return %c0_i32, %c0_i32_0 : i32, i32
  }
  func.func @transform_31(%arg0: i32, %arg1: i32) -> (i32, i32) {
    %c0_i32 = arith.constant 0 : i32
    %c0_i32_0 = arith.constant 0 : i32
    %c0_i32_1 = arith.constant 0 : i32
    return %c0_i32, %c0_i32_0 : i32, i32
  }
}

</mosaic_0001>

<bundles_post_ra>
// kernel: cplx_kernel_forward.1
= control target key start
LH: loop header
LB: loop body
LE: loop exit
PB: predicated region body
PF: predicated region fallthrough
CT: control target
= control target key end

     0   :  { %s4081_s6 = smov 1   ;;  %s4082_s10 = smov 2   ;;  %s4894_s0 = inlined_call_operand.smem [shape: u32[32], index: -1, kind: input, shape index: {}] }
   0x1   :  { %s4132_s5 = sld [smem:[%s4894_s0]]   ;;  %s4083_s14 = smov 3  }
   0x2   :  { %s4137_s9 = sld [smem:[%s4894_s0 + %s4081_s6]]   ;;  %s4084_s18 = smov 4  }
   0x3   :  { %s4142_s13 = sld [smem:[%s4894_s0 + %s4082_s10]]   ;;  %s4085_s22 = smov 5  }
   0x4   :  { %s4147_s17 = sld [smem:[%s4894_s0 + %s4083_s14]]   ;;  %s4086_s26 = smov 6  }
   0x5   :  { %s4152_s21 = sld [smem:[%s4894_s0 + %s4084_s18]]   ;;  %s4087_s30 = smov 7  }
   0x6   :  { %s4157_s25 = sld [smem:[%s4894_s0 + %s4085_s22]]   ;;  %s4088_s4 = smov 8  }
   0x7   :  { %s4162_s29 = sld [smem:[%s4894_s0 + %s4086_s26]]   ;;  %s4089_s10 = smov 9  }
   0x8   :  { %4905 = sst [smem:[#allocation9_spill]] %s4137_s9  ;;  %s4090_s15 = smov 10  }
   0x9   :  { %4906 = sst [smem:[#allocation10_spill]] %s4142_s13  ;;  %s4091_s20 = smov 11  }
   0xa   :  { %4907 = sst [smem:[#allocation11_spill]] %s4147_s17  ;;  %s4092_s26 = smov 12  }
   0xb   :  { %4908 = sst [smem:[#allocation12_spill]] %s4152_s21  ;;  %s4093_s1 = smov 13  }
   0xc   :  { %4909 = sst [smem:[#allocation13_spill]] %s4157_s25  ;;  %s4094_s7 = smov 14  }
   0xd   :  { %s4167_s3 = sld [smem:[%s4894_s0 + %s4087_s30]]   ;;  %s4096_s22 = smov 16  }
   0xe   :  { %s4172_s8 = sld [smem:[%s4894_s0 + %s4088_s4]]   ;;  %s4097_s28 = smov 17  }
   0xf   :  { %s4177_s14 = sld [smem:[%s4894_s0 + %s4089_s10]]  }
  0x10   :  { %s4182_s19 = sld [smem:[%s4894_s0 + %s4090_s15]]   ;;  %s4095_s15 = smov 15  }
  0x11   :  { %s4187_s24 = sld [smem:[%s4894_s0 + %s4091_s20]]  }
  0x12   :  { %s4192_s30 = sld [smem:[%s4894_s0 + %s4092_s26]]  }
  0x13   :  { %s4197_s6 = sld [smem:[%s4894_s0 + %s4093_s1]]  }
  0x14   :  { %4910 = sst [smem:[#allocation14_spill]] %s4172_s8 }
  0x15   :  { %4911 = sst [smem:[#allocation15_spill]] %s4177_s14 }
  0x16   :  { %4912 = sst [smem:[#allocation16_spill]] %s4182_s19 }
  0x17   :  { %4913 = sst [smem:[#allocation17_spill]] %s4187_s24 }
  0x18   :  { %4914 = sst [smem:[#allocation18_spill]] %s4192_s30 }
  0x19   :  { %4915 = sst [smem:[#allocation19_spill]] %s4197_s6 }
  0x1a   :  { %s4202_s12 = sld [smem:[%s4894_s0 + %s4094_s7]]   ;;  %s4098_s7 = smov 18  }
  0x1b   :  { %s4207_s20 = sld [smem:[%s4894_s0 + %s4095_s15]]   ;;  %s4099_s15 = smov 19  }
  0x1c   :  { %s4212_s27 = sld [smem:[%s4894_s0 + %s4096_s22]]   ;;  %s4100_s22 = smov 20  }
  0x1d   :  { %s4217_s4 = sld [smem:[%s4894_s0 + %s4097_s28]]   ;;  %s4101_s28 = smov 21  }
  0x1e   :  { %s4222_s21 = sld [smem:[%s4894_s0 + %s4098_s7]]   ;;  %s4102_s7 = smov 22  }
  0x1f   :  { %s4227_s17 = sld [smem:[%s4894_s0 + %s4099_s15]]   ;;  %s4103_s15 = smov 23  }
  0x20   :  { %4916 = sst [smem:[#allocation20_spill]] %s4202_s12 }
  0x21   :  { %s4232_s13 = sld [smem:[%s4894_s0 + %s4100_s22]]   ;;  %s4104_s22 = smov 24  }
  0x22   :  { %s4237_s9 = sld [smem:[%s4894_s0 + %s4101_s28]]   ;;  %s4105_s28 = smov 25  }
  0x23   :  { %4917 = sst [smem:[#allocation21_spill]] %s4217_s4 }
  0x24   :  { %s4242_s19 = sld [smem:[%s4894_s0 + %s4102_s7]]   ;;  %s4106_s7 = smov 26  }
  0x25   :  { %s4247_s24 = sld [smem:[%s4894_s0 + %s4103_s15]]   ;;  %s4107_s15 = smov 27  }
  0x26   :  { %s4252_s8 = sld [smem:[%s4894_s0 + %s4104_s22]]   ;;  %s4108_s22 = smov 28  }
  0x27   :  { %s4257_s14 = sld [smem:[%s4894_s0 + %s4105_s28]]   ;;  %s4109_s28 = smov 29  }
  0x28   :  { %s4262_s25 = sld [smem:[%s4894_s0 + %s4106_s7]]   ;;  %s4110_s7 = smov 30  }
  0x2b   :  { %4918 = sst [smem:[#allocation22_spill]] %s4247_s24 }
  0x2c   :  { %4919 = sst [smem:[#allocation23_spill]] %s4252_s8 }
  0x2d   :  { %4920 = sst [smem:[#allocation24_spill]] %s4257_s14 }
  0x2e   :  { %4921 = sst [smem:[#allocation25_spill]] %s4262_s25 }
  0x2f   :  { %s4267_s24 = sld [smem:[%s4894_s0 + %s4107_s15]]   ;;  %s4111_s15 = smov 31  }
  0x30   :  { %s4272_s8 = sld [smem:[%s4894_s0 + %s4108_s22]]  }
  0x31   :  { %s4277_s14 = sld [smem:[%s4894_s0 + %s4109_s28]]  }
  0x32   :  { %s4282_s25 = sld [smem:[%s4894_s0 + %s4110_s7]]  }
  0x35   :  { %4922 = sst [smem:[#allocation26_spill]] %s4267_s24 }
  0x36   :  { %s4287_s24 = sld [smem:[%s4894_s0 + %s4111_s15]]  }
  0x3c   :  { %4923 = sst [smem:[#allocation27_spill]] %s4287_s24 }
  0x3d   :  { %68 = vsyncpa [#allocation7], 0  ;;  %s4289_s22 = smov 0   ;;  %s4291_s23 = smov 0  }
  0x3e   :  { %s4293_s26 = smov 0  }
  0x3f LB: > { %4924 = sst [smem:[#allocation28_spill]] %s4075_s23  ;;  %s86_s28 = sadd.s32 1, %s4075_s23  ;;  %s4079_s26 = sphi %s4293_s26, %s74_s26   ;;  %s4075_s23 = sphi %s4291_s23, %s4953_s23   ;;  %s4071_s22 = sphi %s4289_s22, %s4952_s22  }
  0x40   : > { %4925 = sst [smem:[#allocation29_spill]] %s4079_s26  ;;  %p88_p0 = scmp.ge.s32.totalorder %s86_s28, 13 }
  0x41   : > { %p3776_p1 = scmp.ge.s32.totalorder %s4079_s26, 1  ;;  %p1006_p2 = scmp.lt.s32.totalorder %s4079_s26, 14 }
  0x42   : > { %s4955_s28 = smov (%p88_p0, %s86_s28), 0 }
  0x43   : > { %4926 = sst [smem:[#allocation30_spill]] %s4955_s28  ;;  %p1007_p3 = pnand %p3776_p1, %p1006_p2 }
  0x44   : > { %s4927_s30 = sld [smem:[#allocation18_spill]] (!%p1007_p3)  ;;  %p1158_p4 = scmp.lt.s32.totalorder (!%p1007_p3), %s4071_s22, 12 }
  0x45   : > { %1010 = sbr.rel (%p1007_p3) target bundleno = 1936 (0x790), region = 144  ;;  %s4928_s6 = sld [smem:[#allocation19_spill]] (!%p1007_p3) }
  0x46   : > { %s4929_s12 = sld [smem:[#allocation20_spill]] (!%p1007_p3)  ;;  %p1211_p5 = scmp.eq.s32.totalorder (!%p1007_p3), %s4071_s22, 0 }
  0x47   : > { %s4930_s4 = sld [smem:[#allocation21_spill]] (!%p1007_p3) }
  0x4a   : > { %s1159_s1 = scalar_select %p1158_p4, %s4071_s22, 12  ;;  %v1219_v0 = vld [vmem:[%s4132_s5] sm:$0x3f] (%p1211_p5)  ;;  %vm1230_vm0 = vcmask (%p1211_p5), 1045504   ;;  %v4112_v2 = vmov (%p1211_p5), 0   ;;  %vm1226_vm1 = vcmask (%p1211_p5), 48128  }
  0x4b   : > { %v1220_v1 = vld [vmem:[%s4167_s3] sm:$0xf] (%p1211_p5)  ;;  %4006 = vset.pattern.permute.xlu0 (%p1211_p5), %v4112_v2  ;;  %3798 = vmatpush.msk.msra.mxu0 (%p1211_p5), %vm1230_vm0, %v1219_v0  ;;  %v4113_v6 = vmov (%p1211_p5), 1   ;;  %vm1274_vm3 = vcmask (%p1211_p5), 1043456   ;;  %vm1270_vm4 = vcmask (%p1211_p5), 31744   ;;  %vm1319_vm6 = vcmask (%p1211_p5), 64512  }
  0x4c   : > { %s4314_s2 = scalar_lea.vmem %s4927_s30, %s1159_s1  ;;  %s3917_s7 = sshll.u32 %s1159_s1, 5  ;;  %v1218_v3 = vld [vmem:[%s4162_s29] sm:$0xf] (%p1211_p5)  ;;  %1223 = vperm.xlu0 (%p1211_p5), %4006, %v1220_v1   ;;  %4007 = vset.pattern.permute.xlu1 (%p1211_p5), %v4112_v2  ;;  %vm1349_vm7 = vcmask (%p1211_p5), 261120  }
  0x4d   : > { %s4317_s10 = scalar_lea.vmem %s4928_s6, %s3917_s7  ;;  %s4320_s11 = scalar_lea.vmem %s4929_s12, %s3917_s7  ;;  %3799 = vmatmul.msk.f32.vlgmr.msra.gmra.mxu0 (%p1211_p5), %vm1226_vm1, %v1218_v3  ;;  %4009 = vset.pattern.permute.xlu2 (%p1211_p5), %v4112_v2 }
  0x4e   : > { %s4323_s15 = scalar_lea.vmem %s4207_s20, %s3917_s7  ;;  %s4326_s16 = scalar_lea.vmem %s4212_s27, %s3917_s7 }
  0x4f   : > { %s4329_s18 = scalar_lea.vmem %s4930_s4, %s3917_s7  ;;  %s4332_s0 = scalar_lea.vmem %s4222_s21, %s3917_s7 }
  0x50   : > { %s3923_s28 = sshll.u32 %s1159_s1, 8  ;;  %s3925_s23 = sshll.u32 %s1159_s1, 4 }
  0x51   : > { %s4335_s24 = scalar_lea.vmem %s4227_s17, %s3923_s28  ;;  %s4338_s26 = scalar_lea.vmem %s4232_s13, %s3923_s28 }
  0x52   : > { %s4341_s30 = scalar_lea.vmem %s4237_s9, %s3925_s23  ;;  %s4344_s6 = scalar_lea.vmem %s4242_s19, %s3925_s23 }
  0x53   : > { %1216 = sbr.rel (!%p1211_p5) target bundleno = 477 (0x1dd), region = 148  ;;  %s4931_s4 = sld [smem:[#allocation13_spill]] (%p1211_p5) }
  0x54   : > { %s4932_s12 = sld [smem:[#allocation15_spill]] (%p1211_p5) }
  0x55   : > { %s4933_s23 = sld [smem:[#allocation14_spill]] (%p1211_p5) }
  0x56   : > { %s4934_s28 = sld [smem:[#allocation17_spill]] (%p1211_p5) }
  0x57   : > { %s4935_s1 = sld [smem:[#allocation16_spill]] (%p1211_p5) }
  0x59   : > { %v4010_v4 = vld [vmem:[%s4931_s4] ss:$0 sm:$0xff] }
  0x5a   : > { %1258 = vperm.xlu0 %4006, %v4010_v4   ;;  %v1264_v5 = vld [vmem:[%s4932_s12] sm:$0xff] }
  0x5b   : > { %1267 = vperm.xlu1 %4007, %v1264_v5   ;;  %v1263_v12 = vld [vmem:[%s4933_s23] sm:$0xff] }
  0x5c   : > { %v1307_v14 = vld [vmem:[%s4934_s28] sm:$0xff]  ;;  %v1308_v15 = vld [vmem:[%s4934_s28 + $0x8] sm:$0xff] }
  0x5d   : > { %1311 = vperm.xlu2 %4009, %v1307_v14   ;;  %v1305_v21 = vld [vmem:[%s4935_s1] sm:$0xff]  ;;  %v1306_v22 = vld [vmem:[%s4935_s1 + $0x8] sm:$0xff] }
  0x63   : > { %4008 = vset.pattern.permute.xlu1 %v4113_v6 }
  0x64   : > { %1300 = vperm.xlu1 %4008, %v4010_v4  }
  0x65   : > { %1316 = vperm.xlu2 %4009, %v1308_v15  }
  0xb7   : > { %v1312_v24 = vpop.permute.xlu2 %1311 }
  0xbe   : > { %v1224_v7 = vpop.permute.xlu0 %1223 }
  0xbf   : > { %v1317_v25 = vpop.permute.xlu2 %1316 }
  0xca   : > { %v1251_v8 = vpop.f32.mrf.mxu0 }
  0xcb   : > { %v1252_v9 = vadd.f32 %v1251_v8, %v1224_v7 }
  0xcc   : > { %v1259_v10 = vpop.permute.xlu0 %1258 }
  0xcd   : > { %vm1254_vm2 = vcmp.ge.f32.partialorder %v1252_v9, 0.0  ;;  %v1261_v11 = vmul.f32 %v1259_v10, %v1252_v9  ;;  %v1268_v16 = vpop.permute.xlu1 %1267 }
  0xcf   : > { %v1262_v13 = vsel %vm1254_vm2, %v1252_v9, %v1261_v11 }
  0xd0   : > { %3800 = vmatpush.msk.msra.mxu1 %vm1274_vm3, %v1262_v13 }
  0xd1   : > { %3801 = vmatmul.msk.f32.vlgmr.msra.gmra.mxu1 %vm1270_vm4, %v1263_v12 }
  0xd6   : > { %v1301_v18 = vpop.permute.xlu1 %1300 }
 0x14e   : > { %v1295_v17 = vpop.f32.mrf.mxu1 }
 0x14f   : > { %v1296_v19 = vadd.f32 %v1295_v17, %v1268_v16 }
 0x151   : > { %v1303_v20 = vmul.f32 %v1301_v18, %v1296_v19  ;;  %vm1298_vm5 = vcmp.ge.f32.partialorder %v1296_v19, 0.0 }
 0x153   : > { %v1304_v23 = vsel %vm1298_vm5, %v1296_v19, %v1303_v20 }
 0x154   : > { %1341 = vmatpush.msra.mxu2 %v1304_v23  ;;  %3929 = vmatpush.msra.mxu3 %v1304_v23 }
 0x155   : > { %3802 = vmatmul.msk.f32.vlgmr.msra.gmra.mxu2 %vm1319_vm6, %v1305_v21  ;;  %3803 = vmatmul.msk.f32.vlgmr.msra.gmra.mxu3 %vm1319_vm6, %v1306_v22 }
 0x1d8   : > { %v1343_v26 = vpop.f32.mrf.mxu2  ;;  %v1346_v27 = vpop.f32.mrf.mxu3 }
 0x1d9   : > { %v1344_v28 = vadd.f32 %v1343_v26, %v1312_v24  ;;  %v1347_v29 = vadd.f32 %v1346_v27, %v1317_v25 }
 0x1db   : > { %1350 = vst.msk [vmem:[#allocation2] sm:$0xff] %vm1349_vm7, %v1344_v28 }
 0x1dc   : > { %1351 = vst.msk [vmem:[#allocation2 + $0x8] sm:$0xff] %vm1349_vm7, %v1347_v29 }
 0x1dd PF: > { %p3804_p6 = scmp.ne.s32.totalorder %s4071_s22, 0 }
 0x1de   : > { %s4936_s12 = sld [smem:[#allocation9_spill]] (!%p3804_p6) }
 0x1df   : > { %1354 = sbr.rel (%p3804_p6) target bundleno = 506 (0x1fa), region = 152  ;;  %s4937_s4 = sld [smem:[#allocation10_spill]] (!%p3804_p6) }
 0x1e4   : > { %v1355_v30 = vlaneseq  ;;  %v1360_v31 = vld [vmem:[%s4936_s12] sm:$0x3]  ;;  %v4114_v39 = vmov 0.0  }
 0x1e5   : > { %v1390_v32 = vld [vmem:[%s4937_s4] sm:$0x3]  ;;  %v1361_v33 = vperm.slane %v1360_v31, 0  ;;  %v1362_v34 = vperm.slane %v1360_v31, 1 }
 0x1e6   : > { %v1356_v35 = vshrl.u32 %v1355_v30, 7  ;;  %v1391_v36 = vperm.slane %v1390_v32, 0  ;;  %v1392_v43 = vperm.slane %v1390_v32, 1 }
 0x1e8   : > { %vm1363_vm8 = vcmp.eq.s32.totalorder %v1356_v35, %v1361_v33  ;;  %vm1364_vm9 = vcmp.eq.s32.totalorder %v1356_v35, %v1362_v34  ;;  %v1357_v37 = vadd.s32 8, %v1356_v35  ;;  %v1358_v38 = vadd.s32 16, %v1356_v35 }
 0x1e9   : > { %v1371_v40 = vsel %vm1363_vm8, 1.0, %v4114_v39  ;;  %v1372_v41 = vsel %vm1364_vm9, 1.0, %v4114_v39  ;;  %v1359_v42 = vadd.s32 24, %v1356_v35  ;;  %vm1393_vm0 = vcmp.eq.s32.totalorder %v1356_v35, %v1391_v36 }
 0x1ea   : > { %1382 = vst [vmem:[#allocation4 + $0x30] sm:$0xff] %v1371_v40  ;;  %vm1365_vm10 = vcmp.eq.s32.totalorder %v1357_v37, %v1361_v33  ;;  %vm1366_vm11 = vcmp.eq.s32.totalorder %v1357_v37, %v1362_v34  ;;  %vm1367_vm12 = vcmp.eq.s32.totalorder %v1358_v38, %v1361_v33  ;;  %vm1368_vm13 = vcmp.eq.s32.totalorder %v1358_v38, %v1362_v34 }
 0x1eb   : > { %1383 = vst [vmem:[#allocation4] sm:$0xff] %v1372_v41  ;;  %v1373_v44 = vsel %vm1365_vm10, 1.0, %v4114_v39  ;;  %v1374_v45 = vsel %vm1366_vm11, 1.0, %v4114_v39  ;;  %v1375_v46 = vsel %vm1367_vm12, 1.0, %v4114_v39  ;;  %v1376_v47 = vsel %vm1368_vm13, 1.0, %v4114_v39 }
 0x1ec   : > { %1384 = vst [vmem:[#allocation4 + $0x18] sm:$0xff] %v1373_v44  ;;  %vm1369_vm14 = vcmp.eq.s32.totalorder %v1359_v42, %v1361_v33  ;;  %vm1370_vm15 = vcmp.eq.s32.totalorder %v1359_v42, %v1362_v34  ;;  %vm1394_vm1 = vcmp.eq.s32.totalorder %v1356_v35, %v1392_v43  ;;  %vm1395_vm2 = vcmp.eq.s32.totalorder %v1357_v37, %v1391_v36 }
 0x1ed   : > { %1385 = vst [vmem:[#allocation4 + $0x10] sm:$0xff] %v1374_v45  ;;  %v1377_v48 = vsel %vm1369_vm14, 1.0, %v4114_v39  ;;  %v1378_v49 = vsel %vm1370_vm15, 1.0, %v4114_v39  ;;  %v1401_v50 = vsel %vm1393_vm0, 1.0, %v4114_v39  ;;  %vm1396_vm3 = vcmp.eq.s32.totalorder %v1357_v37, %v1392_v43 }
 0x1ee   : > { %1386 = vst [vmem:[#allocation4 + $0x8] sm:$0xff] %v1375_v46  ;;  %v1402_v51 = vsel %vm1394_vm1, 1.0, %v4114_v39  ;;  %vm1397_vm4 = vcmp.eq.s32.totalorder %v1358_v38, %v1391_v36  ;;  %v1403_v52 = vsel %vm1395_vm2, 1.0, %v4114_v39  ;;  %vm1398_vm5 = vcmp.eq.s32.totalorder %v1358_v38, %v1392_v43 }
 0x1ef   : > { %1387 = vst [vmem:[#allocation4 + $0x20] sm:$0xff] %v1376_v47  ;;  %v1404_v53 = vsel %vm1396_vm3, 1.0, %v4114_v39  ;;  %vm1399_vm6 = vcmp.eq.s32.totalorder %v1359_v42, %v1391_v36  ;;  %v1405_v54 = vsel %vm1397_vm4, 1.0, %v4114_v39  ;;  %vm1400_vm7 = vcmp.eq.s32.totalorder %v1359_v42, %v1392_v43 }
 0x1f0   : > { %1388 = vst [vmem:[#allocation4 + $0x28] sm:$0xff] %v1377_v48  ;;  %v1406_v55 = vsel %vm1398_vm5, 1.0, %v4114_v39  ;;  %v1407_v56 = vsel %vm1399_vm6, 1.0, %v4114_v39  ;;  %v1408_v57 = vsel %vm1400_vm7, 1.0, %v4114_v39 }
 0x1f1   : > { %1389 = vst [vmem:[#allocation4 + $0x38] sm:$0xff] %v1378_v49 }
 0x1f2   : > { %1411 = vst [vmem:[#allocation5] sm:$0xff] %v1401_v50 }
 0x1f3   : > { %1412 = vst [vmem:[#allocation5 + $0x18] sm:$0xff] %v1402_v51 }
 0x1f4   : > { %1413 = vst [vmem:[#allocation5 + $0x10] sm:$0xff] %v1403_v52 }
 0x1f5   : > { %1414 = vst [vmem:[#allocation5 + $0x20] sm:$0xff] %v1404_v53 }
 0x1f6   : > { %1415 = vst [vmem:[#allocation5 + $0x28] sm:$0xff] %v1405_v54 }
 0x1f7   : > { %1416 = vst [vmem:[#allocation5 + $0x8] sm:$0xff] %v1406_v55 }
 0x1f8   : > { %1417 = vst [vmem:[#allocation5 + $0x30] sm:$0xff] %v1407_v56 }
 0x1f9   : > { %1418 = vst [vmem:[#allocation5 + $0x38] sm:$0xff] %v1408_v57 }
 0x1fa PF: > { %s4938_s7 = sld [smem:[#allocation11_spill]]  ;;  %v1433_v58 = vld [vmem:[%s4320_s11] sm:$0xff]  ;;  %v4115_v60 = vmov 0   ;;  %v1436_v61 = vld [vmem:[%s4320_s11 + $0x18] sm:$0xff]  ;;  %vm1474_vm8 = vcmask 1043456   ;;  %vm1461_vm9 = vcmask 31744  }
 0x1fb   : > { %4013 = vset.pattern.permute.xlu2 %v4115_v60  ;;  %4011 = vset.pattern.permute.xlu0 %v4115_v60  ;;  %v4368_v62 = vld [vmem:[%s4314_s2] ss:$0 sm:$0xff]  ;;  %v1574_v63 = vld [vmem:[%s4326_s16 + $0x18] sm:$0xff]  ;;  %v1435_v3 = vld [vmem:[%s4320_s11 + $0x10] sm:$0xff]  ;;  %v4116_v36 = vmov 1   ;;  %vm1422_vm14 = vcmask 261120  }
 0x1fc   : > { %1439 = vperm.xlu2 %4013, %v1433_v58   ;;  %4012 = vset.pattern.permute.xlu1 %v4115_v60  ;;  %v1428_v0 = vld [vmem:[%s4317_s10] sm:$0xff]  ;;  %v1431_v2 = vld [vmem:[%s4317_s10 + $0x18] sm:$0xff]  ;;  %v1434_v5 = vld [vmem:[%s4320_s11 + $0x8] sm:$0xff]  ;;  %p3228_p7 = scmp.eq.s32.totalorder %s4071_s22, 12 }
 0x1fd   : > { %1454 = vperm.xlu0 %4011, %v1436_v61   ;;  %1548 = vperm.xlu1 %4012, %v4368_v62   ;;  %v1572_v6 = vld [vmem:[%s4326_s16 + $0x8] sm:$0xff]  ;;  %v1573_v8 = vld [vmem:[%s4326_s16 + $0x10] sm:$0xff]  ;;  %v1571_v11 = vld [vmem:[%s4326_s16] sm:$0xff]  ;;  %s4944_s22 = sld [smem:[#allocation26_spill]] (%p3228_p7) }
 0x1fe   : > { %v1429_v7 = vld [vmem:[%s4317_s10 + $0x8] sm:$0xff]  ;;  %v1700_v9 = vld [vmem:[%s4332_s0 + $0x10] sm:$0xff]  ;;  %v1698_v12 = vld [vmem:[%s4332_s0] sm:$0xff] }
 0x1ff   : > { %v1430_v10 = vld [vmem:[%s4317_s10 + $0x10] sm:$0xff]  ;;  %v2185_v14 = vld [vmem:[%s4338_s26 + $0x40] sm:$0xff]  ;;  %v1958_v15 = vld [vmem:[%s4338_s26 + $0x18] sm:$0xff]  ;;  %s4946_s10 = sld [smem:[#allocation25_spill]] (%p3228_p7) }
 0x200   : > { %v1432_v59 = vld [vmem:[%s4938_s7] sm:$0xff]  ;;  %v1957_v13 = vld [vmem:[%s4338_s26 + $0x10] sm:$0xff]  ;;  %v2186_v17 = vld [vmem:[%s4338_s26 + $0x48] sm:$0xff] }
 0x201   : > { %1458 = vst [vmem:[#allocation1] ss:$2 sm:$0xff] %v1432_v59  ;;  %v2337_v16 = vld [vmem:[%s4338_s26 + $0x60] sm:$0xff]  ;;  %v2565_v18 = vld [vmem:[%s4338_s26 + $0x90] sm:$0xff]  ;;  %v2414_v19 = vld [vmem:[%s4338_s26 + $0x78] sm:$0xff] }
 0x202   : > { %v2793_v20 = vld [vmem:[%s4338_s26 + $0xc0] sm:$0xff]  ;;  %v2642_v21 = vld [vmem:[%s4338_s26 + $0xa8] sm:$0xff]  ;;  %v3021_v22 = vld [vmem:[%s4338_s26 + $0xf0] sm:$0xff] }
 0x203   : > { %v2946_v23 = vld [vmem:[%s4338_s26 + $0xe8] sm:$0xff]  ;;  %v1567_v48 = vld [vmem:[%s4323_s15] sm:$0xff] }
 0x204   : > { %1592 = vperm.xlu2 %4013, %v1574_v63   ;;  %v3203_v24 = vld [vmem:[%s4344_s6 + $0x8] sm:$0xff] }
 0x205   : > { %1449 = vperm.xlu0 %4011, %v1435_v3   ;;  %1444 = vperm.xlu1 %4012, %v1434_v5   ;;  %v1568_v52 = vld [vmem:[%s4323_s15 + $0x8] sm:$0xff]  ;;  %v1701_v5 = vld [vmem:[%s4332_s0 + $0x18] sm:$0xff] }
 0x208   : > { %v1459_v1 = vld.sshfl [vmem:[#allocation1] sm:$0xff pattern:$0x75316420]  ;;  %v1460_v4 = vld.sshfl [vmem:[#allocation1 + $0x8] sm:$0xff pattern:$0x75316420] }
 0x209   : > { %3805 = vmatpush.msk.msra.mxu0 %vm1474_vm8, %v1459_v1  ;;  %3930 = vmatpush.msk.msra.mxu1 %vm1474_vm8, %v1459_v1 }
 0x20a   : > { %3806 = vmatmul.msk.f32.vlgmr.msra.gmra.mxu0 %vm1461_vm9, %v1428_v0  ;;  %3809 = vmatmul.msk.f32.vlgmr.msra.gmra.mxu1 %vm1461_vm9, %v1431_v2 }
 0x20b   : > { %3810 = vmatpush.msk.msrb.mxu1 %vm1474_vm8, %v1460_v4  ;;  %v1570_v4 = vld [vmem:[%s4323_s15 + $0x18] sm:$0xff] }
 0x20c   : > { %1582 = vperm.xlu2 %4013, %v1572_v6   ;;  %v1699_v6 = vld [vmem:[%s4332_s0 + $0x8] sm:$0xff] }
 0x20d   : > { %1587 = vperm.xlu0 %4011, %v1573_v8   ;;  %4014 = vset.pattern.permute.xlu1 %v4116_v36  ;;  %v2109_v8 = vld [vmem:[%s4338_s26 + $0x30] sm:$0xff] }
 0x20e   : > { %1675 = vperm.xlu1 %4014, %v4368_v62  }
 0x212   : > { %3807 = vmatmul.msk.f32.gmra.mxu0 %vm1461_vm9, %v1429_v7  ;;  %3811 = vmatmul.msk.f32.vlgmr.msrb.gmra.mxu1 %vm1461_vm9, %v1428_v0  ;;  %v1569_v0 = vld [vmem:[%s4323_s15 + $0x10] sm:$0xff] }
 0x214   : > { %1714 = vperm.xlu2 %4013, %v1700_v9   ;;  %v1886_v9 = vld [vmem:[%s4338_s26 + $0x8] sm:$0xff] }
 0x215   : > { %1577 = vperm.xlu0 %4011, %v1571_v11   ;;  %v2413_v11 = vld [vmem:[%s4338_s26 + $0x70] sm:$0xff] }
 0x216   : > { %4015 = vset.pattern.permute.xlu1 %v4115_v60 }
 0x217   : > { %1719 = vperm.xlu1 %4015, %v1701_v5   ;;  %v1828_v5 = vld [vmem:[#allocation4 + $0x20] sm:$0xff] }
 0x21a   : > { %3808 = vmatmul.msk.f32.gmra.mxu0 %vm1461_vm9, %v1430_v10  ;;  %3812 = vmatmul.msk.f32.gmra.mxu1 %vm1461_vm9, %v1429_v7  ;;  %v1885_v7 = vld [vmem:[%s4338_s26] sm:$0xff] }
 0x21c   : > { %1704 = vperm.xlu2 %4013, %v1698_v12  }
 0x21f   : > { %1709 = vperm.xlu1 %4015, %v1699_v6   ;;  %v1826_v6 = vld [vmem:[#allocation4 + $0x10] sm:$0xff] }
 0x222   : > { %3813 = vmatmul.msk.f32.gmra.mxu1 %vm1461_vm9, %v1430_v10  ;;  %v2034_v10 = vld [vmem:[%s4338_s26 + $0x28] sm:$0xff] }
 0x224   : > { %1961 = vperm.xlu2 %4013, %v1957_v13   ;;  %v2262_v13 = vld [vmem:[%s4338_s26 + $0x58] sm:$0xff] }
 0x227   : > { %1889 = vperm.xlu1 %4015, %v1885_v7   ;;  %v1824_v7 = vld [vmem:[#allocation4] sm:$0xff] }
 0x22a   : > { %3814 = vmatmul.msk.f32.gmra.mxu1 %vm1461_vm9, %v1431_v2 }
 0x22c   : > { %2189 = vperm.xlu2 %4013, %v2185_v14  }
 0x22f   : > { %2113 = vperm.xlu1 %4015, %v2109_v8  }
 0x234   : > { %1966 = vperm.xlu2 %4013, %v1958_v15  }
 0x237   : > { %1894 = vperm.xlu1 %4015, %v1886_v9  }
 0x23c   : > { %2341 = vperm.xlu2 %4013, %v2337_v16   ;;  %v2641_v16 = vld [vmem:[%s4338_s26 + $0xa0] sm:$0xff] }
 0x23f   : > { %2042 = vperm.xlu1 %4015, %v2034_v10  }
 0x244   : > { %2194 = vperm.xlu2 %4013, %v2186_v17  }
 0x247   : > { %2417 = vperm.xlu1 %4015, %v2413_v11  }
 0x24c   : > { %2569 = vperm.xlu2 %4013, %v2565_v18  }
 0x24f   : > { %2270 = vperm.xlu1 %4015, %v2262_v13   ;;  %v2033_v13 = vld [vmem:[%s4338_s26 + $0x20] sm:$0xff] }
 0x254   : > { %2422 = vperm.xlu2 %4013, %v2414_v19   ;;  %v4117_v19 = vmov 2  }
 0x255   : > { %4016 = vset.pattern.permute.xlu0 %v4117_v19 }
 0x256   : > { %v1440_v37 = vpop.permute.xlu2 %1439  ;;  %1801 = vperm.xlu0 %4016, %v4368_v62  }
 0x257   : > { %2645 = vperm.xlu1 %4015, %v2641_v16  }
 0x25c   : > { %2797 = vperm.xlu2 %4013, %v2793_v20  }
 0x25e   : > { %v1593_v15 = vpop.permute.xlu2 %1592  ;;  %4017 = vset.pattern.permute.xlu0 %v4115_v60  ;;  %v2718_v60 = vld [vmem:[%s4338_s26 + $0xb8] sm:$0xff] }
 0x25f   : > { %2037 = vperm.xlu0 %4017, %v2033_v13   ;;  %v2945_v13 = vld [vmem:[%s4338_s26 + $0xe0] sm:$0xff] }
 0x264   : > { %2650 = vperm.xlu2 %4013, %v2642_v21   ;;  %v2490_v21 = vld [vmem:[%s4338_s26 + $0x88] sm:$0xff] }
 0x265   : > { %2498 = vperm.xlu1 %4015, %v2490_v21  }
 0x26c   : > { %3025 = vperm.xlu2 %4013, %v3021_v22  }
 0x26f   : > { %v1455_v25 = vpop.permute.xlu0 %1454  ;;  %v1549_v28 = vpop.permute.xlu1 %1548 }
 0x274   : > { %2954 = vperm.xlu2 %4013, %v2946_v23   ;;  %v1583_v23 = vpop.permute.xlu2 %1582 }
 0x277   : > { %v1445_v34 = vpop.permute.xlu1 %1444  ;;  %v1450_v38 = vpop.permute.xlu0 %1449 }
 0x27c   : > { %3211 = vperm.xlu2 %4013, %v3203_v24   ;;  %v1715_v10 = vpop.permute.xlu2 %1714 }
 0x27f   : > { %v1588_v17 = vpop.permute.xlu0 %1587 }
 0x284   : > { %v1705_v19 = vpop.permute.xlu2 %1704 }
 0x287   : > { %v1496_v26 = vpop.f32.mrf.mxu0  ;;  %v1505_v27 = vpop.f32.mrf.mxu1 }
 0x288   : > { %v1506_v29 = vadd.f32 %v1505_v27, %v1455_v25  ;;  %v1497_v40 = vadd.f32 %v1496_v26, %v1440_v37  ;;  %v1578_v27 = vpop.permute.xlu0 %1577 }
 0x28a   : > { %vm1543_vm10 = vcmp.ge.f32.partialorder %v1506_v29, 0.0  ;;  %v1557_v30 = vmul.f32 %v1549_v28, %v1506_v29  ;;  %v1551_v47 = vmul.f32 %v1549_v28, %v1497_v40  ;;  %vm1537_vm13 = vcmp.ge.f32.partialorder %v1497_v40, 0.0 }
 0x28c   : > { %v1565_v31 = vsel %vm1543_vm10, %v1506_v29, %v1557_v30  ;;  %v1559_v50 = vsel %vm1537_vm13, %v1497_v40, %v1551_v47 }
 0x28d   : > { %1620 = vmatpush.msra.mxu2 %v1565_v31 }
 0x28f   : > { %v1499_v32 = vpop.f32.mrf.mxu0  ;;  %v1525_v33 = vpop.f32.mrf.mxu1 }
 0x290   : > { %v1500_v35 = vadd.f32 %v1499_v32, %v1445_v34  ;;  %v1526_v56 = vadd.f32 %v1525_v33, %v1440_v37 }
 0x292   : > { %v1553_v43 = vmul.f32 %v1549_v28, %v1500_v35  ;;  %vm1539_vm11 = vcmp.ge.f32.partialorder %v1500_v35, 0.0  ;;  %v1552_v1 = vmul.f32 %v1549_v28, %v1526_v56  ;;  %vm1538_vm2 = vcmp.ge.f32.partialorder %v1526_v56, 0.0 }
 0x294   : > { %v1561_v46 = vsel %vm1539_vm11, %v1500_v35, %v1553_v43  ;;  %v1560_v3 = vsel %vm1538_vm2, %v1526_v56, %v1552_v1  ;;  %v3202_v56 = vld [vmem:[%s4344_s6] sm:$0xff]  ;;  %v4445_v1 = vld [vmem:[#allocation2] sm:$0xff]  ;;  %s4941_s6 = sld [smem:[#allocation23_spill]] (%p3228_p7) }
 0x297   : > { %v1502_v39 = vpop.f32.mrf.mxu0  ;;  %v1528_v42 = vpop.f32.mrf.mxu1 }
 0x298   : > { %v1503_v41 = vadd.f32 %v1502_v39, %v1450_v38  ;;  %v1529_v54 = vadd.f32 %v1528_v42, %v1445_v34  ;;  %v2869_v34 = vld [vmem:[%s4338_s26 + $0xd0] sm:$0xff]  ;;  %v1695_v42 = vld [vmem:[%s4329_s18 + $0x8] sm:$0xff] }
 0x299   : > { %2873 = vperm.xlu1 %4015, %v2869_v34   ;;  %v2110_v34 = vld [vmem:[%s4338_s26 + $0x38] sm:$0xff] }
 0x29a   : > { %vm1541_vm12 = vcmp.ge.f32.partialorder %v1503_v41, 0.0  ;;  %v1555_v44 = vmul.f32 %v1549_v28, %v1503_v41  ;;  %v1554_v61 = vmul.f32 %v1549_v28, %v1529_v54  ;;  %vm1540_vm1 = vcmp.ge.f32.partialorder %v1529_v54, 0.0 }
 0x29c   : > { %v1563_v45 = vsel %vm1541_vm12, %v1503_v41, %v1555_v44  ;;  %v1562_v2 = vsel %vm1540_vm1, %v1529_v54, %v1554_v61  ;;  %v1696_v54 = vld [vmem:[%s4329_s18 + $0x10] sm:$0xff] }
 0x29d   : > { %1621 = vmatpush.msra.mxu2 %v1563_v45  ;;  %v1827_v61 = vld [vmem:[#allocation4 + $0x8] sm:$0xff] }
 0x29f   : > { %1622 = vmatpush.msra.mxu2 %v1561_v46  ;;  %v1531_v49 = vpop.f32.mrf.mxu1 }
 0x2a0   : > { %v1532_v51 = vadd.f32 %v1531_v49, %v1450_v38  ;;  %v1694_v38 = vld [vmem:[%s4329_s18] sm:$0xff]  ;;  %v2870_v49 = vld [vmem:[%s4338_s26 + $0xd8] sm:$0xff] }
 0x2a1   : > { %1623 = vmatpush.msra.mxu2 %v1559_v50  ;;  %2726 = vperm.xlu1 %4015, %v2718_v60  }
 0x2a2   : > { %3815 = vmatmul.msk.f32.vlgmr.msra.gmra.mxu2 %vm1422_vm14, %v1567_v48  ;;  %v1556_v58 = vmul.f32 %v1549_v28, %v1532_v51  ;;  %vm1542_vm0 = vcmp.ge.f32.partialorder %v1532_v51, 0.0 }
 0x2a4   : > { %v1564_v63 = vsel %vm1542_vm0, %v1532_v51, %v1556_v58  ;;  %v1697_v58 = vld [vmem:[%s4329_s18 + $0x18] sm:$0xff] }
 0x2a7   : > { %v1534_v53 = vpop.f32.mrf.mxu1 }
 0x2a8   : > { %v1535_v55 = vadd.f32 %v1534_v53, %v1455_v25 }
 0x2a9   : > { %2878 = vperm.xlu1 %4015, %v2870_v49  }
 0x2aa   : > { %3816 = vmatmul.msk.f32.gmra.mxu2 %vm1422_vm14, %v1568_v52  ;;  %vm1544_vm15 = vcmp.ge.f32.partialorder %v1535_v55, 0.0  ;;  %v1558_v57 = vmul.f32 %v1549_v28, %v1535_v55  ;;  %v1676_v28 = vpop.permute.xlu1 %1675 }
 0x2ac   : > { %v1566_v59 = vsel %vm1544_vm15, %v1535_v55, %v1558_v57 }
 0x2ad   : > { %1649 = vmatpush.msra.mxu3 %v1566_v59  ;;  %v1829_v59 = vld [vmem:[#allocation4 + $0x28] sm:$0xff] }
 0x2ae   : > { %1849 = vmatpush.msrb.mxu2 %v1829_v59  ;;  %v2335_v59 = vld [vmem:[%s4335_s24 + $0x60] sm:$0xff] }
 0x2af   : > { %1650 = vmatpush.msra.mxu3 %v1564_v63  ;;  %v1825_v63 = vld [vmem:[#allocation4 + $0x18] sm:$0xff] }
 0x2b0   : > { %1850 = vmatpush.msrb.mxu2 %v1827_v61  ;;  %v2411_v61 = vld [vmem:[%s4335_s24 + $0x70] sm:$0xff] }
 0x2b1   : > { %1651 = vmatpush.msra.mxu3 %v1562_v2  ;;  %3206 = vperm.xlu1 %4015, %v3202_v56   ;;  %v4449_v2 = vld [vmem:[#allocation2 + $0x8] sm:$0xff]  ;;  %v2184_v56 = vld [vmem:[%s4335_s24 + $0x48] sm:$0xff] }
 0x2b2   : > { %3817 = vmatmul.msk.f32.gmra.mxu2 %vm1422_vm14, %v1569_v0  ;;  %v1720_v9 = vpop.permute.xlu1 %1719 }
 0x2b3   : > { %1652 = vmatpush.msra.mxu3 %v1560_v3  ;;  %1851 = vmatpush.msrb.mxu2 %v1825_v63  ;;  %v2336_v63 = vld [vmem:[%s4335_s24 + $0x68] sm:$0xff] }
 0x2b4   : > { %3819 = vmatmul.msk.f32.vlgmr.msra.gmra.mxu3 %vm1422_vm14, %v1567_v48 }
 0x2ba   : > { %3818 = vmatmul.msk.f32.gmra.mxu2 %vm1422_vm14, %v1570_v4 }
 0x2bc   : > { %3820 = vmatmul.msk.f32.gmra.mxu3 %vm1422_vm14, %v1568_v52 }
 0x2c4   : > { %3821 = vmatmul.msk.f32.gmra.mxu3 %vm1422_vm14, %v1569_v0  ;;  %v1823_v0 = vld [vmem:[#allocation4 + $0x30] sm:$0xff] }
 0x2c5   : > { %1852 = vmatpush.msrb.mxu2 %v1823_v0  ;;  %v2412_v0 = vld [vmem:[%s4335_s24 + $0x78] sm:$0xff] }
 0x2c6   : > { %3831 = vmatmul.msk.f32.vlgmr.msrb.gmra.mxu2 %vm1422_vm14, %v4445_v1 }
 0x2cc   : > { %3822 = vmatmul.msk.f32.gmra.mxu3 %vm1422_vm14, %v1570_v4  ;;  %v1830_v4 = vld [vmem:[#allocation4 + $0x38] sm:$0xff] }
 0x2cd   : > { %1872 = vmatpush.msrb.mxu3 %v1830_v4  ;;  %v2487_v4 = vld [vmem:[%s4335_s24 + $0x80] sm:$0xff] }
 0x2ce   : > { %3832 = vmatmul.msk.f32.gmra.mxu2 %vm1422_vm14, %v4449_v2 }
 0x2cf   : > { %1873 = vmatpush.msrb.mxu3 %v1828_v5  ;;  %v2563_v5 = vld [vmem:[%s4335_s24 + $0x90] sm:$0xff] }
 0x2d1   : > { %1874 = vmatpush.msrb.mxu3 %v1826_v6  ;;  %v2488_v6 = vld [vmem:[%s4335_s24 + $0x88] sm:$0xff] }
 0x2d3   : > { %1875 = vmatpush.msrb.mxu3 %v1824_v7  ;;  %v2564_v7 = vld [vmem:[%s4335_s24 + $0x98] sm:$0xff] }
 0x2d4   : > { %3833 = vmatmul.msk.f32.vlgmr.msrb.gmra.mxu3 %vm1422_vm14, %v4445_v1 }
 0x2dc   : > { %3834 = vmatmul.msk.f32.gmra.mxu3 %vm1422_vm14, %v4449_v2 }
 0x325   : > { %v1625_v12 = vpop.f32.mrf.mxu2 }
 0x326   : > { %v1626_v29 = vadd.f32 %v1625_v12, %v1578_v27 }
 0x328   : > { %v1678_v36 = vmul.f32 %v1676_v28, %v1626_v29  ;;  %vm1666_vm6 = vcmp.ge.f32.partialorder %v1626_v29, 0.0 }
 0x32a   : > { %v1686_v40 = vsel %vm1666_vm6, %v1626_v29, %v1678_v36  ;;  %v2261_v29 = vld [vmem:[%s4338_s26 + $0x50] sm:$0xff] }
 0x32b   : > { %2265 = vperm.xlu0 %4017, %v2261_v29  }
 0x32d   : > { %v1628_v14 = vpop.f32.mrf.mxu2 }
 0x32e   : > { %v1629_v25 = vadd.f32 %v1628_v14, %v1583_v23 }
 0x330   : > { %v1680_v33 = vmul.f32 %v1676_v28, %v1629_v25  ;;  %vm1668_vm5 = vcmp.ge.f32.partialorder %v1629_v25, 0.0 }
 0x332   : > { %v1688_v37 = vsel %vm1668_vm5, %v1629_v25, %v1680_v33 }
 0x333   : > { %2118 = vperm.xlu0 %4017, %v2110_v34  }
 0x335   : > { %v1631_v18 = vpop.f32.mrf.mxu2 }
 0x336   : > { %v1632_v22 = vadd.f32 %v1631_v18, %v1588_v17 }
 0x337   : > { %v1654_v20 = vpop.f32.mrf.mxu3 }
 0x338   : > { %v1682_v32 = vmul.f32 %v1676_v28, %v1632_v22  ;;  %vm1670_vm4 = vcmp.ge.f32.partialorder %v1632_v22, 0.0  ;;  %v1655_v46 = vadd.f32 %v1654_v20, %v1578_v27  ;;  %v4458_v20 = vpop.permute.xlu0 %1801 }
 0x33a   : > { %v1690_v35 = vsel %vm1670_vm4, %v1632_v22, %v1682_v32  ;;  %v1679_v52 = vmul.f32 %v1676_v28, %v1655_v46  ;;  %vm1667_vm10 = vcmp.ge.f32.partialorder %v1655_v46, 0.0  ;;  %v1955_v32 = vld [vmem:[%s4335_s24 + $0x10] sm:$0xff]  ;;  %vm3170_vm4 = vcmask 130048  }
 0x33c   : > { %v1687_v57 = vsel %vm1667_vm10, %v1655_v46, %v1679_v52  ;;  %v2108_v52 = vld [vmem:[%s4335_s24 + $0x38] sm:$0xff] }
 0x33d   : > { %v1634_v24 = vpop.f32.mrf.mxu2 }
 0x33e   : > { %v1635_v26 = vadd.f32 %v1634_v24, %v1593_v15 }
 0x33f   : > { %v1657_v30 = vpop.f32.mrf.mxu3 }
 0x340   : > { %vm1672_vm3 = vcmp.ge.f32.partialorder %v1635_v26, 0.0  ;;  %v1684_v31 = vmul.f32 %v1676_v28, %v1635_v26  ;;  %v1658_v44 = vadd.f32 %v1657_v30, %v1583_v23 }
 0x342   : > { %v1692_v62 = vsel %vm1672_vm3, %v1635_v26, %v1684_v31  ;;  %v1681_v50 = vmul.f32 %v1676_v28, %v1658_v44  ;;  %vm1669_vm9 = vcmp.ge.f32.partialorder %v1658_v44, 0.0  ;;  %v1883_v31 = vld [vmem:[%s4335_s24] sm:$0xff] }
 0x343   : > { %1746 = vmatpush.msrb.mxu0 %v1692_v62 }
 0x344   : > { %v1689_v55 = vsel %vm1669_vm9, %v1658_v44, %v1681_v50 }
 0x345   : > { %1747 = vmatpush.msrb.mxu0 %v1690_v35 }
 0x347   : > { %1748 = vmatpush.msrb.mxu0 %v1688_v37  ;;  %v1660_v39 = vpop.f32.mrf.mxu3  ;;  %v4493_v37 = vld [vmem:[%s4335_s24 + $0x8] sm:$0xff] }
 0x348   : > { %v1661_v41 = vadd.f32 %v1660_v39, %v1588_v17 }
 0x349   : > { %1749 = vmatpush.msrb.mxu0 %v1686_v40 }
 0x34a   : > { %3823 = vmatmul.msk.f32.vlgmr.msrb.gmra.mxu0 %vm1422_vm14, %v1694_v38  ;;  %v1683_v47 = vmul.f32 %v1676_v28, %v1661_v41  ;;  %vm1671_vm8 = vcmp.ge.f32.partialorder %v1661_v41, 0.0 }
 0x34c   : > { %v1691_v53 = vsel %vm1671_vm8, %v1661_v41, %v1683_v47  ;;  %v2031_v47 = vld [vmem:[%s4335_s24 + $0x20] sm:$0xff] }
 0x34f   : > { %v1663_v43 = vpop.f32.mrf.mxu3 }
 0x350   : > { %v1664_v45 = vadd.f32 %v1663_v43, %v1593_v15  ;;  %v1710_v15 = vpop.permute.xlu1 %1709 }
 0x352   : > { %3824 = vmatmul.msk.f32.gmra.mxu0 %vm1422_vm14, %v1695_v42  ;;  %vm1673_vm7 = vcmp.ge.f32.partialorder %v1664_v45, 0.0  ;;  %v1685_v48 = vmul.f32 %v1676_v28, %v1664_v45 }
 0x354   : > { %v1693_v51 = vsel %vm1673_vm7, %v1664_v45, %v1685_v48  ;;  %v2107_v48 = vld [vmem:[%s4335_s24 + $0x30] sm:$0xff] }
 0x355   : > { %1775 = vmatpush.msra.mxu1 %v1693_v51  ;;  %v2032_v51 = vld [vmem:[%s4335_s24 + $0x28] sm:$0xff] }
 0x357   : > { %1776 = vmatpush.msra.mxu1 %v1691_v53  ;;  %v2489_v53 = vld [vmem:[%s4338_s26 + $0x80] sm:$0xff] }
 0x358   : > { %2493 = vperm.xlu0 %4017, %v2489_v53  }
 0x359   : > { %1777 = vmatpush.msra.mxu1 %v1689_v55  ;;  %v2259_v55 = vld [vmem:[%s4335_s24 + $0x50] sm:$0xff] }
 0x35a   : > { %3825 = vmatmul.msk.f32.gmra.mxu0 %vm1422_vm14, %v1696_v54 }
 0x35b   : > { %1778 = vmatpush.msra.mxu1 %v1687_v57  ;;  %v2260_v57 = vld [vmem:[%s4335_s24 + $0x58] sm:$0xff] }
 0x35c   : > { %3827 = vmatmul.msk.f32.vlgmr.msra.gmra.mxu1 %vm1422_vm14, %v1694_v38  ;;  %v4496_v38 = vld [vmem:[%s4335_s24 + $0x18] sm:$0xff] }
 0x362   : > { %3826 = vmatmul.msk.f32.gmra.mxu0 %vm1422_vm14, %v1697_v58 }
 0x364   : > { %3828 = vmatmul.msk.f32.gmra.mxu1 %vm1422_vm14, %v1695_v42 }
 0x36c   : > { %3829 = vmatmul.msk.f32.gmra.mxu1 %vm1422_vm14, %v1696_v54  ;;  %v2183_v54 = vld [vmem:[%s4335_s24 + $0x40] sm:$0xff] }
 0x374   : > { %3830 = vmatmul.msk.f32.gmra.mxu1 %vm1422_vm14, %v1697_v58  ;;  %v2338_v58 = vld [vmem:[%s4338_s26 + $0x68] sm:$0xff] }
 0x375   : > { %2346 = vperm.xlu0 %4017, %v2338_v58  }
 0x3c7   : > { %v1751_v3 = vpop.f32.mrf.mxu0 }
 0x3c8   : > { %v1752_v21 = vadd.f32 %v1751_v3, %v1705_v19  ;;  %v2717_v3 = vld [vmem:[%s4338_s26 + $0xb0] sm:$0xff] }
 0x3c9   : > { %2721 = vperm.xlu0 %4017, %v2717_v3  }
 0x3ca   : > { %v1804_v27 = vmul.f32 %v4458_v20, %v1752_v21  ;;  %vm1792_vm15 = vcmp.ge.f32.partialorder %v1752_v21, 0.0 }
 0x3cc   : > { %v4479_v62 = vsel %vm1792_vm15, %v1752_v21, %v1804_v27  ;;  %v3019_v21 = vld [vmem:[%s4335_s24 + $0xf0] sm:$0xff]  ;;  %v3020_v27 = vld [vmem:[%s4335_s24 + $0xf8] sm:$0xff] }
 0x3cf   : > { %v1754_v8 = vpop.f32.mrf.mxu0 }
 0x3d0   : > { %v1755_v17 = vadd.f32 %v1754_v8, %v1710_v15  ;;  %v2566_v8 = vld [vmem:[%s4338_s26 + $0x98] sm:$0xff] }
 0x3d1   : > { %2574 = vperm.xlu0 %4017, %v2566_v8  }
 0x3d2   : > { %v1806_v25 = vmul.f32 %v4458_v20, %v1755_v17  ;;  %vm1794_vm13 = vcmp.ge.f32.partialorder %v1755_v17, 0.0 }
 0x3d4   : > { %v4473_v30 = vsel %vm1794_vm13, %v1755_v17, %v1806_v25  ;;  %v2792_v17 = vld [vmem:[%s4335_s24 + $0xc8] sm:$0xff]  ;;  %vm3406_vm13 = vcmask (%p3228_p7), 392192  }
 0x3d7   : > { %v1757_v11 = vpop.f32.mrf.mxu0 }
 0x3d8   : > { %v1758_v14 = vadd.f32 %v1757_v11, %v1715_v10  ;;  %v2640_v11 = vld [vmem:[%s4335_s24 + $0xa8] sm:$0xff] }
 0x3d9   : > { %v1780_v12 = vpop.f32.mrf.mxu1  ;;  %2949 = vperm.xlu0 %4017, %v2945_v13  }
 0x3da   : > { %v1808_v22 = vmul.f32 %v4458_v20, %v1758_v14  ;;  %vm1796_vm12 = vcmp.ge.f32.partialorder %v1758_v14, 0.0  ;;  %v1781_v42 = vadd.f32 %v1780_v12, %v1705_v19  ;;  %v2716_v12 = vld [vmem:[%s4335_s24 + $0xb8] sm:$0xff]  ;;  %v1962_v19 = vpop.permute.xlu2 %1961 }
 0x3dc   : > { %v4468_v28 = vsel %vm1796_vm12, %v1758_v14, %v1808_v22  ;;  %v1805_v46 = vmul.f32 %v4458_v20, %v1781_v42  ;;  %vm1793_vm3 = vcmp.ge.f32.partialorder %v1781_v42, 0.0  ;;  %v2791_v14 = vld [vmem:[%s4335_s24 + $0xc0] sm:$0xff]  ;;  %v1890_v22 = vpop.permute.xlu1 %1889 }
 0x3de   : > { %v4532_v50 = vsel %vm1793_vm3, %v1781_v42, %v1805_v46  ;;  %vm3514_vm3 = vcmask (%p3228_p7), 257024  }
 0x3df   : > { %v1760_v16 = vpop.f32.mrf.mxu0 }
 0x3e0   : > { %v1761_v18 = vadd.f32 %v1760_v16, %v1720_v9  ;;  %v2794_v16 = vld [vmem:[%s4338_s26 + $0xc8] sm:$0xff] }
 0x3e1   : > { %v1783_v24 = vpop.f32.mrf.mxu1  ;;  %2802 = vperm.xlu0 %4017, %v2794_v16  }
 0x3e2   : > { %vm1798_vm11 = vcmp.ge.f32.partialorder %v1761_v18, 0.0  ;;  %v1810_v23 = vmul.f32 %v4458_v20, %v1761_v18  ;;  %v1784_v39 = vadd.f32 %v1783_v24, %v1710_v15  ;;  %v2867_v15 = vld [vmem:[%s4335_s24 + $0xd0] sm:$0xff]  ;;  %v4721_v24 = vpop.permute.xlu2 %2189 }
 0x3e4   : > { %v4463_v26 = vsel %vm1798_vm11, %v1761_v18, %v1810_v23  ;;  %v1807_v43 = vmul.f32 %v4458_v20, %v1784_v39  ;;  %vm1795_vm2 = vcmp.ge.f32.partialorder %v1784_v39, 0.0  ;;  %v4704_v18 = vpop.f32.mrf.mxu2 }
 0x3e5   : > { %1915 = vmatpush.msra.mxu2 %v4463_v26  ;;  %1987 = vmatpush.msra.mxu0 %v4463_v26  ;;  %v2021_v25 = vperm.slane %v4704_v18, 1  ;;  %v2097_v58 = vperm.slane %v4704_v18, 2 }
 0x3e6   : > { %v4524_v49 = vsel %vm1795_vm2, %v1784_v39, %v1807_v43  ;;  %vm3483_vm2 = vcmask (%p3228_p7), 195584  }
 0x3e7   : > { %1916 = vmatpush.msra.mxu2 %v4468_v28  ;;  %1988 = vmatpush.msra.mxu0 %v4468_v28 }
 0x3e9   : > { %1917 = vmatpush.msra.mxu2 %v4473_v30  ;;  %1989 = vmatpush.msra.mxu0 %v4473_v30  ;;  %v1786_v33 = vpop.f32.mrf.mxu1 }
 0x3ea   : > { %v1787_v35 = vadd.f32 %v1786_v33, %v1715_v10  ;;  %v2715_v10 = vld [vmem:[%s4335_s24 + $0xb0] sm:$0xff]  ;;  %v4731_v33 = vpop.f32.mrf.mxu3 }
 0x3eb   : > { %1918 = vmatpush.msra.mxu2 %v4479_v62  ;;  %1990 = vmatpush.msra.mxu0 %v4479_v62 }
 0x3ec   : > { %3835 = vmatmul.msk.f32.vlgmr.msra.gmra.mxu2 %vm1422_vm14, %v1883_v31  ;;  %3839 = vmatmul.msk.f32.vlgmr.msra.gmra.mxu0 %vm1422_vm14, %v1955_v32  ;;  %v1809_v60 = vmul.f32 %v4458_v20, %v1787_v35  ;;  %vm1797_vm1 = vcmp.ge.f32.partialorder %v1787_v35, 0.0  ;;  %v4717_v23 = vpop.f32.mrf.mxu2 }
 0x3ed   : > { %2063 = vmatpush.msrb.mxu2 %v4463_v26  ;;  %2139 = vmatpush.msrb.mxu0 %v4463_v26 }
 0x3ee   : > { %v4515_v45 = vsel %vm1797_vm1, %v1787_v35, %v1809_v60  ;;  %v4733_v35 = vpop.permute.xlu0 %2037 }
 0x3ef   : > { %2064 = vmatpush.msrb.mxu2 %v4468_v28  ;;  %2140 = vmatpush.msrb.mxu0 %v4468_v28 }
 0x3f1   : > { %2065 = vmatpush.msrb.mxu2 %v4473_v30  ;;  %2141 = vmatpush.msrb.mxu0 %v4473_v30  ;;  %v1789_v36 = vpop.f32.mrf.mxu1 }
 0x3f2   : > { %v1790_v40 = vadd.f32 %v1789_v36, %v1720_v9  ;;  %v2639_v9 = vld [vmem:[%s4335_s24 + $0xa0] sm:$0xff]  ;;  %v1967_v36 = vpop.permute.xlu2 %1966 }
 0x3f3   : > { %2066 = vmatpush.msrb.mxu2 %v4479_v62  ;;  %2142 = vmatpush.msrb.mxu0 %v4479_v62 }
 0x3f4   : > { %vm1799_vm0 = vcmp.ge.f32.partialorder %v1790_v40, 0.0  ;;  %v1811_v41 = vmul.f32 %v4458_v20, %v1790_v40  ;;  %3836 = vmatmul.msk.f32.gmra.mxu2 %vm1422_vm14, %v4493_v37  ;;  %3840 = vmatmul.msk.f32.gmra.mxu0 %vm1422_vm14, %v4496_v38  ;;  %v2943_v20 = vld [vmem:[%s4335_s24 + $0xe0] sm:$0xff] }
 0x3f5   : > { %2215 = vmatpush.msra.mxu2 %v4463_v26  ;;  %2291 = vmatpush.msra.mxu0 %v4463_v26 }
 0x3f6   : > { %v4511_v44 = vsel %vm1799_vm0, %v1790_v40, %v1811_v41 }
 0x3f7   : > { %2216 = vmatpush.msra.mxu2 %v4468_v28  ;;  %2292 = vmatpush.msra.mxu0 %v4468_v28 }
 0x3f8   : > { %1938 = vmatpush.msra.mxu3 %v4511_v44  ;;  %2010 = vmatpush.msrb.mxu1 %v4511_v44 }
 0x3f9   : > { %2217 = vmatpush.msra.mxu2 %v4473_v30  ;;  %2293 = vmatpush.msra.mxu0 %v4473_v30 }
 0x3fa   : > { %1939 = vmatpush.msra.mxu3 %v4515_v45  ;;  %2011 = vmatpush.msrb.mxu1 %v4515_v45 }
 0x3fb   : > { %2218 = vmatpush.msra.mxu2 %v4479_v62  ;;  %2294 = vmatpush.msra.mxu0 %v4479_v62 }
 0x3fc   : > { %1940 = vmatpush.msra.mxu3 %v4524_v49  ;;  %2012 = vmatpush.msrb.mxu1 %v4524_v49 }
 0x3fd   : > { %3843 = vmatmul.msk.f32.vlgmr.msrb.gmra.mxu2 %vm1422_vm14, %v2031_v47  ;;  %3847 = vmatmul.msk.f32.vlgmr.msrb.gmra.mxu0 %vm1422_vm14, %v2107_v48 }
 0x3fe   : > { %2367 = vmatpush.msrb.mxu2 %v4463_v26  ;;  %2443 = vmatpush.msrb.mxu0 %v4463_v26 }
 0x3ff   : > { %1941 = vmatpush.msra.mxu3 %v4532_v50  ;;  %2013 = vmatpush.msrb.mxu1 %v4532_v50 }
 0x400   : > { %3837 = vmatmul.msk.f32.vlgmr.msra.gmra.mxu3 %vm1422_vm14, %v1883_v31  ;;  %3841 = vmatmul.msk.f32.vlgmr.msrb.gmra.mxu1 %vm1422_vm14, %v1955_v32  ;;  %v2114_v31 = vpop.permute.xlu1 %2113  ;;  %v1949_v32 = vperm.slane %v4704_v18, 0 }
 0x401   : > { %2086 = vmatpush.msrb.mxu3 %v4511_v44  ;;  %2162 = vmatpush.msra.mxu1 %v4511_v44 }
 0x402   : > { %2368 = vmatpush.msrb.mxu2 %v4468_v28  ;;  %2444 = vmatpush.msrb.mxu0 %v4468_v28 }
 0x403   : > { %2087 = vmatpush.msrb.mxu3 %v4515_v45  ;;  %2163 = vmatpush.msra.mxu1 %v4515_v45 }
 0x404   : > { %2369 = vmatpush.msrb.mxu2 %v4473_v30  ;;  %2445 = vmatpush.msrb.mxu0 %v4473_v30 }
 0x405   : > { %2088 = vmatpush.msrb.mxu3 %v4524_v49  ;;  %2164 = vmatpush.msra.mxu1 %v4524_v49 }
 0x406   : > { %2370 = vmatpush.msrb.mxu2 %v4479_v62  ;;  %2446 = vmatpush.msrb.mxu0 %v4479_v62 }
 0x407   : > { %3844 = vmatmul.msk.f32.gmra.mxu2 %vm1422_vm14, %v2032_v51  ;;  %2089 = vmatpush.msrb.mxu3 %v4532_v50 }
 0x408   : > { %3848 = vmatmul.msk.f32.gmra.mxu0 %vm1422_vm14, %v2108_v52  ;;  %2165 = vmatpush.msra.mxu1 %v4532_v50  ;;  %v1895_v41 = vpop.permute.xlu1 %1894 }
 0x409   : > { %2238 = vmatpush.msra.mxu3 %v4511_v44  ;;  %3842 = vmatmul.msk.f32.gmra.mxu1 %vm1422_vm14, %v4496_v38 }
 0x40a   : > { %2314 = vmatpush.msrb.mxu1 %v4511_v44  ;;  %3838 = vmatmul.msk.f32.gmra.mxu3 %vm1422_vm14, %v4493_v37 }
 0x40b   : > { %2239 = vmatpush.msra.mxu3 %v4515_v45 }
 0x40c   : > { %2315 = vmatpush.msrb.mxu1 %v4515_v45 }
 0x40d   : > { %2240 = vmatpush.msra.mxu3 %v4524_v49 }
 0x40e   : > { %2316 = vmatpush.msrb.mxu1 %v4524_v49 }
 0x40f   : > { %2241 = vmatpush.msra.mxu3 %v4532_v50  ;;  %3851 = vmatmul.msk.f32.vlgmr.msra.gmra.mxu2 %vm1422_vm14, %v2183_v54 }
 0x410   : > { %2317 = vmatpush.msrb.mxu1 %v4532_v50  ;;  %3855 = vmatmul.msk.f32.vlgmr.msra.gmra.mxu0 %vm1422_vm14, %v2259_v55 }
 0x411   : > { %2519 = vmatpush.msra.mxu2 %v4463_v26  ;;  %2595 = vmatpush.msra.mxu0 %v4463_v26 }
 0x412   : > { %3845 = vmatmul.msk.f32.vlgmr.msrb.gmra.mxu3 %vm1422_vm14, %v2031_v47  ;;  %3849 = vmatmul.msk.f32.vlgmr.msra.gmra.mxu1 %vm1422_vm14, %v2107_v48  ;;  %v2173_v48 = vperm.slane %v4704_v18, 3 }
 0x413   : > { %2390 = vmatpush.msrb.mxu3 %v4511_v44  ;;  %2466 = vmatpush.msra.mxu1 %v4511_v44 }
 0x414   : > { %2520 = vmatpush.msra.mxu2 %v4468_v28  ;;  %2596 = vmatpush.msra.mxu0 %v4468_v28 }
 0x415   : > { %2391 = vmatpush.msrb.mxu3 %v4515_v45  ;;  %2467 = vmatpush.msra.mxu1 %v4515_v45 }
 0x416   : > { %2521 = vmatpush.msra.mxu2 %v4473_v30  ;;  %2597 = vmatpush.msra.mxu0 %v4473_v30 }
 0x417   : > { %2392 = vmatpush.msrb.mxu3 %v4524_v49  ;;  %2468 = vmatpush.msra.mxu1 %v4524_v49 }
 0x418   : > { %2522 = vmatpush.msra.mxu2 %v4479_v62  ;;  %2598 = vmatpush.msra.mxu0 %v4479_v62 }
 0x419   : > { %3852 = vmatmul.msk.f32.gmra.mxu2 %vm1422_vm14, %v2184_v56  ;;  %3856 = vmatmul.msk.f32.gmra.mxu0 %vm1422_vm14, %v2260_v57 }
 0x41a   : > { %2393 = vmatpush.msrb.mxu3 %v4532_v50  ;;  %2469 = vmatpush.msra.mxu1 %v4532_v50 }
 0x41b   : > { %3846 = vmatmul.msk.f32.gmra.mxu3 %vm1422_vm14, %v2032_v51  ;;  %3850 = vmatmul.msk.f32.gmra.mxu1 %vm1422_vm14, %v2108_v52 }
 0x421   : > { %3859 = vmatmul.msk.f32.vlgmr.msrb.gmra.mxu2 %vm1422_vm14, %v2335_v59  ;;  %3863 = vmatmul.msk.f32.vlgmr.msrb.gmra.mxu0 %vm1422_vm14, %v2411_v61 }
 0x422   : > { %2671 = vmatpush.msrb.mxu2 %v4463_v26  ;;  %2747 = vmatpush.msrb.mxu0 %v4463_v26 }
 0x423   : > { %3853 = vmatmul.msk.f32.vlgmr.msra.gmra.mxu3 %vm1422_vm14, %v2183_v54  ;;  %3857 = vmatmul.msk.f32.vlgmr.msrb.gmra.mxu1 %vm1422_vm14, %v2259_v55  ;;  %v2022_v54 = vperm.slane %v4731_v33, 1 }
 0x424   : > { %2542 = vmatpush.msra.mxu3 %v4511_v44  ;;  %2618 = vmatpush.msrb.mxu1 %v4511_v44 }
 0x425   : > { %2672 = vmatpush.msrb.mxu2 %v4468_v28  ;;  %2748 = vmatpush.msrb.mxu0 %v4468_v28 }
 0x426   : > { %2543 = vmatpush.msra.mxu3 %v4515_v45  ;;  %2619 = vmatpush.msrb.mxu1 %v4515_v45 }
 0x427   : > { %2673 = vmatpush.msrb.mxu2 %v4473_v30  ;;  %2749 = vmatpush.msrb.mxu0 %v4473_v30 }
 0x428   : > { %2544 = vmatpush.msra.mxu3 %v4524_v49  ;;  %2620 = vmatpush.msrb.mxu1 %v4524_v49 }
 0x429   : > { %2674 = vmatpush.msrb.mxu2 %v4479_v62  ;;  %2750 = vmatpush.msrb.mxu0 %v4479_v62 }
 0x42a   : > { %3860 = vmatmul.msk.f32.gmra.mxu2 %vm1422_vm14, %v2336_v63  ;;  %3864 = vmatmul.msk.f32.gmra.mxu0 %vm1422_vm14, %v2412_v0 }
 0x42b   : > { %2545 = vmatpush.msra.mxu3 %v4532_v50  ;;  %2621 = vmatpush.msrb.mxu1 %v4532_v50 }
 0x42c   : > { %3854 = vmatmul.msk.f32.gmra.mxu3 %vm1422_vm14, %v2184_v56  ;;  %3858 = vmatmul.msk.f32.gmra.mxu1 %vm1422_vm14, %v2260_v57 }
 0x432   : > { %3867 = vmatmul.msk.f32.vlgmr.msra.gmra.mxu2 %vm1422_vm14, %v2487_v4  ;;  %3871 = vmatmul.msk.f32.vlgmr.msra.gmra.mxu0 %vm1422_vm14, %v2563_v5 }
 0x433   : > { %2823 = vmatpush.msra.mxu2 %v4463_v26  ;;  %2899 = vmatpush.msra.mxu0 %v4463_v26 }
 0x434   : > { %3861 = vmatmul.msk.f32.vlgmr.msrb.gmra.mxu3 %vm1422_vm14, %v2335_v59  ;;  %3865 = vmatmul.msk.f32.vlgmr.msra.gmra.mxu1 %vm1422_vm14, %v2411_v61 }
 0x435   : > { %2694 = vmatpush.msrb.mxu3 %v4511_v44  ;;  %2770 = vmatpush.msra.mxu1 %v4511_v44 }
 0x436   : > { %2824 = vmatpush.msra.mxu2 %v4468_v28  ;;  %2900 = vmatpush.msra.mxu0 %v4468_v28 }
 0x437   : > { %2695 = vmatpush.msrb.mxu3 %v4515_v45  ;;  %2771 = vmatpush.msra.mxu1 %v4515_v45 }
 0x438   : > { %2825 = vmatpush.msra.mxu2 %v4473_v30  ;;  %2901 = vmatpush.msra.mxu0 %v4473_v30 }
 0x439   : > { %2696 = vmatpush.msrb.mxu3 %v4524_v49  ;;  %2772 = vmatpush.msra.mxu1 %v4524_v49 }
 0x43a   : > { %2826 = vmatpush.msra.mxu2 %v4479_v62  ;;  %2902 = vmatpush.msra.mxu0 %v4479_v62 }
 0x43b   : > { %3868 = vmatmul.msk.f32.gmra.mxu2 %vm1422_vm14, %v2488_v6  ;;  %3872 = vmatmul.msk.f32.gmra.mxu0 %vm1422_vm14, %v2564_v7 }
 0x43c   : > { %2697 = vmatpush.msrb.mxu3 %v4532_v50  ;;  %2773 = vmatpush.msra.mxu1 %v4532_v50 }
 0x43d   : > { %3862 = vmatmul.msk.f32.gmra.mxu3 %vm1422_vm14, %v2336_v63  ;;  %3866 = vmatmul.msk.f32.gmra.mxu1 %vm1422_vm14, %v2412_v0  ;;  %v1950_v0 = vperm.slane %v4731_v33, 0 }
 0x443   : > { %3875 = vmatmul.msk.f32.vlgmr.msrb.gmra.mxu2 %vm1422_vm14, %v2639_v9  ;;  %3879 = vmatmul.msk.f32.vlgmr.msrb.gmra.mxu0 %vm1422_vm14, %v2715_v10 }
 0x444   : > { %2975 = vmatpush.msrb.mxu2 %v4463_v26  ;;  %3051 = vmatpush.msrb.mxu0 %v4463_v26  ;;  %v2944_v26 = vld [vmem:[%s4335_s24 + $0xe8] sm:$0xff] }
 0x445   : > { %3869 = vmatmul.msk.f32.vlgmr.msra.gmra.mxu3 %vm1422_vm14, %v2487_v4  ;;  %3873 = vmatmul.msk.f32.vlgmr.msrb.gmra.mxu1 %vm1422_vm14, %v2563_v5 }
 0x446   : > { %2846 = vmatpush.msra.mxu3 %v4511_v44  ;;  %2922 = vmatpush.msrb.mxu1 %v4511_v44 }
 0x447   : > { %2976 = vmatpush.msrb.mxu2 %v4468_v28  ;;  %3052 = vmatpush.msrb.mxu0 %v4468_v28 }
 0x448   : > { %2847 = vmatpush.msra.mxu3 %v4515_v45  ;;  %2923 = vmatpush.msrb.mxu1 %v4515_v45 }
 0x449   : > { %2977 = vmatpush.msrb.mxu2 %v4473_v30  ;;  %3053 = vmatpush.msrb.mxu0 %v4473_v30 }
 0x44a   : > { %2848 = vmatpush.msra.mxu3 %v4524_v49  ;;  %2924 = vmatpush.msrb.mxu1 %v4524_v49 }
 0x44b   : > { %2978 = vmatpush.msrb.mxu2 %v4479_v62  ;;  %3054 = vmatpush.msrb.mxu0 %v4479_v62 }
 0x44c   : > { %3876 = vmatmul.msk.f32.gmra.mxu2 %vm1422_vm14, %v2640_v11  ;;  %3880 = vmatmul.msk.f32.gmra.mxu0 %vm1422_vm14, %v2716_v12 }
 0x44d   : > { %2849 = vmatpush.msra.mxu3 %v4532_v50  ;;  %2925 = vmatpush.msrb.mxu1 %v4532_v50 }
 0x44e   : > { %3870 = vmatmul.msk.f32.gmra.mxu3 %vm1422_vm14, %v2488_v6  ;;  %3874 = vmatmul.msk.f32.gmra.mxu1 %vm1422_vm14, %v2564_v7 }
 0x454   : > { %3883 = vmatmul.msk.f32.vlgmr.msra.gmra.mxu2 %vm1422_vm14, %v2791_v14  ;;  %3887 = vmatmul.msk.f32.vlgmr.msra.gmra.mxu0 %vm1422_vm14, %v2867_v15 }
 0x455   : > { %3191 = vmatpush.msra.mxu0 %v4449_v2  ;;  %v2868_v2 = vld [vmem:[%s4335_s24 + $0xd8] sm:$0xff]  ;;  %s4939_s24 = sld [smem:[#allocation12_spill]] }
 0x456   : > { %3877 = vmatmul.msk.f32.vlgmr.msrb.gmra.mxu3 %vm1422_vm14, %v2639_v9  ;;  %3881 = vmatmul.msk.f32.vlgmr.msra.gmra.mxu1 %vm1422_vm14, %v2715_v10  ;;  %v2043_v10 = vpop.permute.xlu1 %2042 }
 0x457   : > { %2998 = vmatpush.msrb.mxu3 %v4511_v44  ;;  %3074 = vmatpush.msra.mxu1 %v4511_v44  ;;  %v4737_v44 = vpop.f32.mrf.mxu3 }
 0x458   : > { %3192 = vmatpush.msra.mxu0 %v4445_v1  ;;  %v3022_v1 = vld [vmem:[%s4338_s26 + $0xf8] sm:$0xff]  ;;  %s4942_s26 = sld [smem:[#allocation22_spill]] (%p3228_p7) }
 0x459   : > { %2999 = vmatpush.msrb.mxu3 %v4515_v45  ;;  %3075 = vmatpush.msra.mxu1 %v4515_v45 }
 0x45a   : > { %3030 = vperm.xlu0 %4017, %v3022_v1  }
 0x45b   : > { %3000 = vmatpush.msrb.mxu3 %v4524_v49  ;;  %3076 = vmatpush.msra.mxu1 %v4524_v49  ;;  %v4740_v49 = vpop.permute.xlu0 %2265 }
 0x45c   : > { %3884 = vmatmul.msk.f32.gmra.mxu2 %vm1422_vm14, %v2792_v17  ;;  %3888 = vmatmul.msk.f32.gmra.mxu0 %vm1422_vm14, %v2868_v2 }
 0x45d   : > { %3001 = vmatpush.msrb.mxu3 %v4532_v50  ;;  %3077 = vmatpush.msra.mxu1 %v4532_v50 }
 0x45e   : > { %3878 = vmatmul.msk.f32.gmra.mxu3 %vm1422_vm14, %v2640_v11  ;;  %3882 = vmatmul.msk.f32.gmra.mxu1 %vm1422_vm14, %v2716_v12  ;;  %s4943_s0 = smov (%p3228_p7), %s4942_s26 }
 0x463   : > { %v2119_v5 = vpop.permute.xlu0 %2118 }
 0x464   : > { %3891 = vmatmul.msk.f32.vlgmr.msrb.gmra.mxu2 %vm1422_vm14, %v2943_v20  ;;  %3895 = vmatmul.msk.f32.vlgmr.msrb.gmra.mxu0 %vm1422_vm14, %v3019_v21 }
 0x466   : > { %3885 = vmatmul.msk.f32.vlgmr.msra.gmra.mxu3 %vm1422_vm14, %v2791_v14  ;;  %3889 = vmatmul.msk.f32.vlgmr.msrb.gmra.mxu1 %vm1422_vm14, %v2867_v15 }
 0x469   : > { %v1992_v28 = vpop.f32.mrf.mxu0 }
 0x46a   : > { %v1993_v29 = vadd.f32 %v1992_v28, %v1962_v19 }
 0x46c   : > { %3892 = vmatmul.msk.f32.gmra.mxu2 %vm1422_vm14, %v2944_v26  ;;  %3896 = vmatmul.msk.f32.gmra.mxu0 %vm1422_vm14, %v3020_v27  ;;  %v2023_v30 = vmul.f32 %v2021_v25, %v1993_v29  ;;  %v4751_v29 = vpop.permute.xlu1 %2417 }
 0x46e   : > { %3886 = vmatmul.msk.f32.gmra.mxu3 %vm1422_vm14, %v2792_v17  ;;  %3890 = vmatmul.msk.f32.gmra.mxu1 %vm1422_vm14, %v2868_v2 }
 0x46f   : > { %v1920_v62 = vpop.f32.mrf.mxu2 }
 0x470   : > { %v1921_v34 = vadd.f32 %v1920_v62, %v1890_v22 }
 0x471   : > { %v1995_v38 = vpop.f32.mrf.mxu0 }
 0x472   : > { %v1951_v37 = vmul.f32 %v1949_v32, %v1921_v34  ;;  %v1996_v39 = vadd.f32 %v1995_v38, %v1967_v36 }
 0x474   : > { %v2027_v40 = vadd.f32 %v2023_v30, %v1951_v37  ;;  %v2025_v60 = vmul.f32 %v2021_v25, %v1996_v39  ;;  %v2249_v37 = vperm.slane %v4704_v18, 4  ;;  %v2325_v39 = vperm.slane %v4704_v18, 5 }
 0x476   : > { %3893 = vmatmul.msk.f32.vlgmr.msrb.gmra.mxu3 %vm1422_vm14, %v2943_v20  ;;  %3897 = vmatmul.msk.f32.vlgmr.msra.gmra.mxu1 %vm1422_vm14, %v3019_v21  ;;  %v4748_v20 = vpop.permute.xlu2 %2341 }
 0x477   : > { %v1923_v42 = vpop.f32.mrf.mxu2 }
 0x478   : > { %v1924_v43 = vadd.f32 %v1923_v42, %v1895_v41 }
 0x47a   : > { %v2144_v45 = vpop.f32.mrf.mxu0  ;;  %v1953_v46 = vmul.f32 %v1949_v32, %v1924_v43 }
 0x47b   : > { %v2145_v47 = vadd.f32 %v2144_v45, %v2114_v31 }
 0x47c   : > { %v2029_v50 = vadd.f32 %v2025_v60, %v1953_v46  ;;  %v2098_v60 = vperm.slane %v4731_v33, 2 }
 0x47d   : > { %v2175_v51 = vmul.f32 %v2173_v48, %v2145_v47  ;;  %v2015_v52 = vpop.f32.mrf.mxu1 }
 0x47e   : > { %3894 = vmatmul.msk.f32.gmra.mxu3 %vm1422_vm14, %v2944_v26  ;;  %3898 = vmatmul.msk.f32.gmra.mxu1 %vm1422_vm14, %v3020_v27  ;;  %v2016_v53 = vadd.f32 %v2015_v52, %v1962_v19  ;;  %v2174_v27 = vperm.slane %v4731_v33, 3  ;;  %v2195_v47 = vpop.permute.xlu2 %2194 }
 0x480   : > { %v2024_v55 = vmul.f32 %v2022_v54, %v2016_v53  ;;  %v2068_v56 = vpop.f32.mrf.mxu2  ;;  %v2271_v53 = vpop.permute.xlu1 %2270 }
 0x481   : > { %v2069_v57 = vadd.f32 %v2068_v56, %v4733_v35 }
 0x483   : > { %v2099_v59 = vmul.f32 %v2097_v58, %v2069_v57  ;;  %v1943_v61 = vpop.f32.mrf.mxu3 }
 0x484   : > { %v1944_v63 = vadd.f32 %v1943_v61, %v1890_v22 }
 0x485   : > { %v2103_v3 = vadd.f32 %v2099_v59, %v2027_v40  ;;  %v2147_v4 = vpop.f32.mrf.mxu0 }
 0x486   : > { %v1952_v6 = vmul.f32 %v1950_v0, %v1944_v63  ;;  %v2148_v7 = vadd.f32 %v2147_v4, %v2119_v5  ;;  %v2018_v8 = vpop.f32.mrf.mxu1  ;;  %v4759_v63 = vpop.permute.xlu0 %2493 }
 0x487   : > { %v2179_v9 = vadd.f32 %v2175_v51, %v2103_v3  ;;  %v2019_v12 = vadd.f32 %v2018_v8, %v1967_v36 }
 0x488   : > { %v2028_v11 = vadd.f32 %v2024_v55, %v1952_v6  ;;  %v2177_v13 = vmul.f32 %v2173_v48, %v2148_v7  ;;  %v4761_v7 = vpop.permute.xlu2 %2569 }
 0x489   : > { %v2026_v14 = vmul.f32 %v2022_v54, %v2019_v12 }
 0x48a   : > { %v2071_v15 = vpop.f32.mrf.mxu2 }
 0x48b   : > { %v2072_v16 = vadd.f32 %v2071_v15, %v2043_v10 }
 0x48d   : > { %v2101_v17 = vmul.f32 %v2097_v58, %v2072_v16  ;;  %v1946_v2 = vpop.f32.mrf.mxu3  ;;  %v2296_v1 = vpop.f32.mrf.mxu0 }
 0x48e   : > { %v1947_v19 = vadd.f32 %v1946_v2, %v1895_v41  ;;  %v2297_v34 = vadd.f32 %v2296_v1, %v4740_v49  ;;  %v2250_v1 = vperm.slane %v4731_v33, 4 }
 0x48f   : > { %v2105_v21 = vadd.f32 %v2101_v17, %v2029_v50  ;;  %v2167_v22 = vpop.f32.mrf.mxu1 }
 0x490   : > { %v1954_v25 = vmul.f32 %v1950_v0, %v1947_v19  ;;  %v2168_v26 = vadd.f32 %v2167_v22, %v2114_v31  ;;  %v2327_v42 = vmul.f32 %v2325_v39, %v2297_v34  ;;  %v2326_v22 = vperm.slane %v4731_v33, 5 }
 0x491   : > { %v2181_v28 = vadd.f32 %v2177_v13, %v2105_v21  ;;  %v2401_v13 = vperm.slane %v4704_v18, 6 }
 0x492   : > { %v2030_v30 = vadd.f32 %v2026_v14, %v1954_v25  ;;  %v2176_v32 = vmul.f32 %v2174_v27, %v2168_v26  ;;  %v2220_v62 = vpop.f32.mrf.mxu2 }
 0x493   : > { %v2221_v36 = vadd.f32 %v2220_v62, %v4721_v24 }
 0x495   : > { %v2091_v38 = vpop.f32.mrf.mxu3  ;;  %v2251_v40 = vmul.f32 %v2249_v37, %v2221_v36 }
 0x496   : > { %v2092_v31 = vadd.f32 %v2091_v38, %v4733_v35  ;;  %v2299_v41 = vpop.f32.mrf.mxu0 }
 0x497   : > { %v2255_v43 = vadd.f32 %v2251_v40, %v2179_v9  ;;  %v2300_v56 = vadd.f32 %v2299_v41, %v2271_v53 }
 0x498   : > { %v2100_v45 = vmul.f32 %v2098_v60, %v2092_v31  ;;  %v2170_v46 = vpop.f32.mrf.mxu1 }
 0x499   : > { %v2171_v48 = vadd.f32 %v2170_v46, %v2119_v5  ;;  %v2331_v51 = vadd.f32 %v2327_v42, %v2255_v43  ;;  %v2329_v3 = vmul.f32 %v2325_v39, %v2300_v56 }
 0x49a   : > { %v2104_v50 = vadd.f32 %v2100_v45, %v2028_v11 }
 0x49b   : > { %v2178_v52 = vmul.f32 %v2174_v27, %v2171_v48 }
 0x49c   : > { %v2223_v54 = vpop.f32.mrf.mxu2  ;;  %v2180_v55 = vadd.f32 %v2176_v32, %v2104_v50 }
 0x49d   : > { %v2224_v57 = vadd.f32 %v2223_v54, %v2195_v47 }
 0x49e   : > { %v2094_v58 = vpop.f32.mrf.mxu3  ;;  %v2448_v59 = vpop.f32.mrf.mxu0 }
 0x49f   : > { %v2253_v35 = vmul.f32 %v2249_v37, %v2224_v57  ;;  %v2095_v61 = vadd.f32 %v2094_v58, %v2043_v10  ;;  %v2449_v11 = vadd.f32 %v2448_v59, %v4751_v29  ;;  %v2477_v10 = vperm.slane %v4704_v18, 7  ;;  %v2423_v18 = vpop.permute.xlu2 %2422 }
 0x4a0   : > { %v2319_v0 = vpop.f32.mrf.mxu1  ;;  %v2402_v57 = vperm.slane %v4731_v33, 6  ;;  %v2629_v58 = vperm.slane %v4717_v23, 1 }
 0x4a1   : > { %v2257_v4 = vadd.f32 %v2253_v35, %v2181_v28  ;;  %v2102_v6 = vmul.f32 %v2098_v60, %v2095_v61  ;;  %v2320_v16 = vadd.f32 %v2319_v0, %v4740_v49  ;;  %v2479_v21 = vmul.f32 %v2477_v10, %v2449_v11  ;;  %v2347_v28 = vpop.permute.xlu0 %2346  ;;  %v4771_v60 = vpop.permute.xlu1 %2645 }
 0x4a3   : > { %v2106_v5 = vadd.f32 %v2102_v6, %v2030_v30  ;;  %v2333_v8 = vadd.f32 %v2329_v3, %v2257_v4  ;;  %v2328_v30 = vmul.f32 %v2326_v22, %v2320_v16  ;;  %v2478_v4 = vperm.slane %v4731_v33, 7 }
 0x4a4   : > { %v2372_v9 = vpop.f32.mrf.mxu2 }
 0x4a5   : > { %v2373_v12 = vadd.f32 %v2372_v9, %v4748_v20  ;;  %v2182_v14 = vadd.f32 %v2178_v52, %v2106_v5 }
 0x4a6   : > { %v2243_v15 = vpop.f32.mrf.mxu3 }
 0x4a7   : > { %v2403_v17 = vmul.f32 %v2401_v13, %v2373_v12  ;;  %v2244_v2 = vadd.f32 %v2243_v15, %v4721_v24  ;;  %v2451_v19 = vpop.f32.mrf.mxu0 }
 0x4a8   : > { %v2452_v49 = vadd.f32 %v2451_v19, %v2423_v18 }
 0x4a9   : > { %v2407_v25 = vadd.f32 %v2403_v17, %v2331_v51  ;;  %v2252_v26 = vmul.f32 %v2250_v1, %v2244_v2  ;;  %v2322_v27 = vpop.f32.mrf.mxu1  ;;  %v4773_v48 = vpop.permute.xlu0 %2721 }
 0x4aa   : > { %v2323_v39 = vadd.f32 %v2322_v27, %v2271_v53  ;;  %v2481_v42 = vmul.f32 %v2477_v10, %v2452_v49  ;;  %v2553_v53 = vperm.slane %v4717_v23, 0  ;;  %v2499_v9 = vpop.permute.xlu1 %2498 }
 0x4ab   : > { %v2256_v32 = vadd.f32 %v2252_v26, %v2180_v55  ;;  %v2483_v62 = vadd.f32 %v2479_v21, %v2407_v25  ;;  %v4783_v26 = vpop.permute.xlu2 %2797 }
 0x4ac   : > { %v2330_v46 = vmul.f32 %v2326_v22, %v2323_v39  ;;  %v3103_v39 = vld [vmem:[#allocation5 + $0x28] sm:$0xff] }
 0x4ad   : > { %v2375_v34 = vpop.f32.mrf.mxu2  ;;  %v2332_v36 = vadd.f32 %v2328_v30, %v2256_v32 }
 0x4ae   : > { %v2376_v37 = vadd.f32 %v2375_v34, %v2347_v28 }
 0x4af   : > { %v2246_v38 = vpop.f32.mrf.mxu3  ;;  %v2600_v24 = vpop.f32.mrf.mxu0 }
 0x4b0   : > { %v2405_v40 = vmul.f32 %v2401_v13, %v2376_v37  ;;  %v2247_v31 = vadd.f32 %v2246_v38, %v2195_v47  ;;  %v2601_v54 = vadd.f32 %v2600_v24, %v4761_v7  ;;  %v2781_v38 = vperm.slane %v4717_v23, 3 }
 0x4b1   : > { %v2471_v41 = vpop.f32.mrf.mxu1 }
 0x4b2   : > { %v2409_v43 = vadd.f32 %v2405_v40, %v2333_v8  ;;  %v2254_v45 = vmul.f32 %v2250_v1, %v2247_v31  ;;  %v2472_v59 = vadd.f32 %v2471_v41, %v4751_v29  ;;  %v2631_v3 = vmul.f32 %v2629_v58, %v2601_v54  ;;  %v4785_v27 = vpop.permute.xlu1 %2873 }
 0x4b4   : > { %v2258_v50 = vadd.f32 %v2254_v45, %v2182_v14  ;;  %v2485_v51 = vadd.f32 %v2481_v42, %v2409_v43  ;;  %v2480_v11 = vmul.f32 %v2478_v4, %v2472_v59  ;;  %v2575_v14 = vpop.permute.xlu0 %2574  ;;  %v2554_v42 = vperm.slane %v4737_v44, 0 }
 0x4b5   : > { %v2524_v52 = vpop.f32.mrf.mxu2 }
 0x4b6   : > { %v2525_v55 = vadd.f32 %v2524_v52, %v4759_v63  ;;  %v2334_v56 = vadd.f32 %v2330_v46, %v2258_v50  ;;  %v2630_v46 = vperm.slane %v4737_v44, 1 }
 0x4b7   : > { %v2395_v47 = vpop.f32.mrf.mxu3 }
 0x4b8   : > { %v2555_v35 = vmul.f32 %v2553_v53, %v2525_v55  ;;  %v2396_v61 = vadd.f32 %v2395_v47, %v4748_v20  ;;  %v2603_v0 = vpop.f32.mrf.mxu0  ;;  %v3101_v47 = vld [vmem:[#allocation5 + $0x10] sm:$0xff] }
 0x4b9   : > { %v2604_v16 = vadd.f32 %v2603_v0, %v2575_v14 }
 0x4ba   : > { %v2559_v6 = vadd.f32 %v2555_v35, %v2483_v62  ;;  %v2404_v5 = vmul.f32 %v2402_v57, %v2396_v61  ;;  %v2474_v8 = vpop.f32.mrf.mxu1  ;;  %v3099_v35 = vld [vmem:[#allocation5] sm:$0xff] }
 0x4bb   : > { %v2475_v1 = vadd.f32 %v2474_v8, %v2423_v18  ;;  %v2633_v22 = vmul.f32 %v2629_v58, %v2604_v16  ;;  %v2705_v18 = vperm.slane %v4717_v23, 2 }
 0x4bc   : > { %v2408_v12 = vadd.f32 %v2404_v5, %v2332_v36  ;;  %v2635_v13 = vadd.f32 %v2631_v3, %v2559_v6  ;;  %v3105_v36 = vld [vmem:[#allocation5 + $0x30] sm:$0xff] }
 0x4bd   : > { %v2482_v30 = vmul.f32 %v2478_v4, %v2475_v1  ;;  %3119 = vmatpush.xpose.msra.mxu2 %v3105_v36  ;;  %v2782_v36 = vperm.slane %v4737_v44, 3 }
 0x4be   : > { %v2527_v10 = vpop.f32.mrf.mxu2  ;;  %v2484_v15 = vadd.f32 %v2480_v11, %v2408_v12 }
 0x4bf   : > { %v2528_v17 = vadd.f32 %v2527_v10, %v2499_v9 }
 0x4c0   : > { %v2398_v29 = vpop.f32.mrf.mxu3  ;;  %v2752_v2 = vpop.f32.mrf.mxu0 }
 0x4c1   : > { %v2557_v20 = vmul.f32 %v2553_v53, %v2528_v17  ;;  %v2399_v19 = vadd.f32 %v2398_v29, %v2347_v28  ;;  %v2753_v49 = vadd.f32 %v2752_v2, %v4773_v48  ;;  %3120 = vmatpush.xpose.msra.mxu2 %v3103_v39  ;;  %v3106_v17 = vld [vmem:[#allocation5 + $0x38] sm:$0xff] }
 0x4c2   : > { %v2623_v21 = vpop.f32.mrf.mxu1  ;;  %3142 = vmatpush.xpose.msra.mxu3 %v3106_v17 }
 0x4c3   : > { %v2561_v33 = vadd.f32 %v2557_v20, %v2485_v51  ;;  %v2406_v25 = vmul.f32 %v2402_v57, %v2399_v19  ;;  %v2624_v40 = vadd.f32 %v2623_v21, %v4761_v7  ;;  %v2783_v45 = vmul.f32 %v2781_v38, %v2753_v49  ;;  %v2727_v57 = vpop.permute.xlu1 %2726  ;;  %v3104_v20 = vld [vmem:[#allocation5 + $0x8] sm:$0xff] }
 0x4c4   : > { %v2933_v19 = vperm.slane %v4717_v23, 5 }
 0x4c5   : > { %v2410_v32 = vadd.f32 %v2406_v25, %v2334_v56  ;;  %v2637_v62 = vadd.f32 %v2633_v22, %v2561_v33  ;;  %v2632_v54 = vmul.f32 %v2630_v46, %v2624_v40  ;;  %v2651_v56 = vpop.permute.xlu2 %2650  ;;  %3121 = vmatpush.xpose.msra.mxu2 %v3101_v47 }
 0x4c6   : > { %v2676_v34 = vpop.f32.mrf.mxu2  ;;  %3143 = vmatpush.xpose.msra.mxu3 %v3104_v20 }
 0x4c7   : > { %v2677_v37 = vadd.f32 %v2676_v34, %v4771_v60  ;;  %v2486_v28 = vadd.f32 %v2482_v30, %v2410_v32  ;;  %v2706_v32 = vperm.slane %v4737_v44, 2 }
 0x4c8   : > { %v2547_v24 = vpop.f32.mrf.mxu3 }
 0x4c9   : > { %v2707_v31 = vmul.f32 %v2705_v18, %v2677_v37  ;;  %v2548_v41 = vadd.f32 %v2547_v24, %v4759_v63  ;;  %v2755_v43 = vpop.f32.mrf.mxu0  ;;  %3122 = vmatpush.xpose.msra.mxu2 %v3099_v35 }
 0x4ca   : > { %v2756_v63 = vadd.f32 %v2755_v43, %v2727_v57 }
 0x4cb   : > { %v2711_v50 = vadd.f32 %v2707_v31, %v2635_v13  ;;  %v2556_v51 = vmul.f32 %v2554_v42, %v2548_v41  ;;  %v2626_v52 = vpop.f32.mrf.mxu1  ;;  %v4795_v13 = vpop.permute.xlu0 %2949 }
 0x4cc   : > { %v2627_v3 = vadd.f32 %v2626_v52, %v2575_v14  ;;  %v2785_v8 = vmul.f32 %v2781_v38, %v2756_v63  ;;  %v2857_v14 = vperm.slane %v4717_v23, 4 }
 0x4cd   : > { %v2560_v55 = vadd.f32 %v2556_v51, %v2484_v15  ;;  %v2787_v53 = vadd.f32 %v2783_v45, %v2711_v50  ;;  %v3100_v50 = vld [vmem:[#allocation5 + $0x18] sm:$0xff] }
 0x4ce   : > { %v2634_v10 = vmul.f32 %v2630_v46, %v2627_v3 }
 0x4cf   : > { %v2679_v7 = vpop.f32.mrf.mxu2  ;;  %v2636_v58 = vadd.f32 %v2632_v54, %v2560_v55  ;;  %v3026_v54 = vpop.permute.xlu2 %3025 }
 0x4d0   : > { %v2680_v59 = vadd.f32 %v2679_v7, %v2651_v56 }
 0x4d1   : > { %v2550_v61 = vpop.f32.mrf.mxu3  ;;  %v2904_v0 = vpop.f32.mrf.mxu0 }
 0x4d2   : > { %v2709_v4 = vmul.f32 %v2705_v18, %v2680_v59  ;;  %v2551_v6 = vadd.f32 %v2550_v61, %v2499_v9  ;;  %v2905_v2 = vadd.f32 %v2904_v0, %v4785_v27  ;;  %v2879_v18 = vpop.permute.xlu1 %2878 }
 0x4d3   : > { %v2775_v5 = vpop.f32.mrf.mxu1  ;;  %v2803_v39 = vpop.permute.xlu0 %2802 }
 0x4d4   : > { %v2713_v11 = vadd.f32 %v2709_v4, %v2637_v62  ;;  %v2558_v12 = vmul.f32 %v2554_v42, %v2551_v6  ;;  %v2776_v33 = vadd.f32 %v2775_v5, %v4773_v48  ;;  %v2935_v34 = vmul.f32 %v2933_v19, %v2905_v2  ;;  %v3102_v42 = vld [vmem:[#allocation5 + $0x20] sm:$0xff]  ;;  %v4021_v2 = vld [vmem:[%s4314_s2] ss:$0 sm:$0xff]  ;;  %s4945_s2 = smov (%p3228_p7), %s4944_s22 }
 0x4d5   : > { %3144 = vmatpush.xpose.msra.mxu3 %v3102_v42  ;;  %v2858_v4 = vperm.slane %v4737_v44, 4  ;;  %v3010_v42 = vperm.slane %v4737_v44, 6 }
 0x4d6   : > { %v2562_v15 = vadd.f32 %v2558_v12, %v2486_v28  ;;  %v2789_v16 = vadd.f32 %v2785_v8, %v2713_v11  ;;  %v2784_v28 = vmul.f32 %v2782_v36, %v2776_v33  ;;  %v3168_v11 = vld [vmem:[%s4341_s30] sm:$0xff]  ;;  %v3169_v33 = vld [vmem:[%s4341_s30 + $0x8] sm:$0xff]  ;;  %s4940_s30 = sld [smem:[#allocation24_spill]] (%p3228_p7) }
 0x4d7   : > { %v2828_v29 = vpop.f32.mrf.mxu2  ;;  %3899 = vmatmul.msk.f32.vlgmr.msra.gmra.mxu0 %vm3170_vm4, %v3168_v11 }
 0x4d8   : > { %v2829_v1 = vadd.f32 %v2828_v29, %v4783_v26  ;;  %v2638_v9 = vadd.f32 %v2634_v10, %v2562_v15  ;;  %v2934_v15 = vperm.slane %v4737_v44, 5 }
 0x4d9   : > { %v2699_v21 = vpop.f32.mrf.mxu3  ;;  %v2907_v22 = vpop.f32.mrf.mxu0  ;;  %3145 = vmatpush.xpose.msra.mxu3 %v3100_v50 }
 0x4da   : > { %v2859_v25 = vmul.f32 %v2857_v14, %v2829_v1  ;;  %v2700_v30 = vadd.f32 %v2699_v21, %v4771_v60  ;;  %v2908_v31 = vadd.f32 %v2907_v22, %v2879_v18  ;;  %v3207_v11 = vpop.permute.xlu1 %3206 }
 0x4db   : > { %v2778_v62 = vpop.f32.mrf.mxu1 }
 0x4dc   : > { %v2863_v49 = vadd.f32 %v2859_v25, %v2787_v53  ;;  %v2708_v37 = vmul.f32 %v2706_v32, %v2700_v30  ;;  %v2779_v43 = vadd.f32 %v2778_v62, %v2727_v57  ;;  %v2937_v55 = vmul.f32 %v2933_v19, %v2908_v31 }
 0x4dd   : > { %v3009_v57 = vperm.slane %v4717_v23, 6 }
 0x4de   : > { %v2712_v38 = vadd.f32 %v2708_v37, %v2636_v58  ;;  %v2939_v24 = vadd.f32 %v2935_v34, %v2863_v49  ;;  %v2786_v7 = vmul.f32 %v2782_v36, %v2779_v43 }
 0x4df   : > { %v2831_v40 = vpop.f32.mrf.mxu2  ;;  %3900 = vmatmul.msk.f32.gmra.mxu0 %vm3170_vm4, %v3169_v33  ;;  %v3235_v33 = vld [vmem:[%s4942_s26] sm:$0xff] (%p3228_p7) }
 0x4e0   : > { %v2832_v48 = vadd.f32 %v2831_v40, %v2803_v39  ;;  %v2788_v41 = vadd.f32 %v2784_v28, %v2712_v38 }
 0x4e1   : > { %v2702_v60 = vpop.f32.mrf.mxu3  ;;  %v3056_v51 = vpop.f32.mrf.mxu0 }
 0x4e2   : > { %v2861_v45 = vmul.f32 %v2857_v14, %v2832_v48  ;;  %v2703_v46 = vadd.f32 %v2702_v60, %v2651_v56  ;;  %v3057_v35 = vadd.f32 %v3056_v51, %v3026_v54  ;;  %v3085_v56 = vperm.slane %v4717_v23, 7 }
 0x4e3   : > { %v2927_v52 = vpop.f32.mrf.mxu1  ;;  %v4118_v23 = vmov 3  }
 0x4e4   : > { %v2865_v53 = vadd.f32 %v2861_v45, %v2789_v16  ;;  %v2710_v47 = vmul.f32 %v2706_v32, %v2703_v46  ;;  %v2928_v6 = vadd.f32 %v2927_v52, %v4785_v27  ;;  %v3087_v10 = vmul.f32 %v3085_v56, %v3057_v35  ;;  %4018 = vset.pattern.permute.xlu0 %v4118_v23  ;;  %v2955_v27 = vpop.permute.xlu2 %2954 }
 0x4e5   : > { %3219 = vperm.xlu0 %4018, %v4021_v2  }
 0x4e6   : > { %v2714_v58 = vadd.f32 %v2710_v47, %v2638_v9  ;;  %v2941_v63 = vadd.f32 %v2937_v55, %v2865_v53  ;;  %v2936_v1 = vmul.f32 %v2934_v15, %v2928_v6  ;;  %v3031_v9 = vpop.permute.xlu0 %3030 }
 0x4e7   : > { %v2980_v59 = vpop.f32.mrf.mxu2 }
 0x4e8   : > { %v2981_v61 = vadd.f32 %v2980_v59, %v4795_v13  ;;  %v2790_v0 = vadd.f32 %v2786_v7, %v2714_v58 }
 0x4e9   : > { %v2851_v3 = vpop.f32.mrf.mxu3  ;;  %v3059_v29 = vpop.f32.mrf.mxu0 }
 0x4ea   : > { %v3011_v5 = vmul.f32 %v3009_v57, %v2981_v61  ;;  %v2852_v8 = vadd.f32 %v2851_v3, %v4783_v26  ;;  %v3060_v19 = vadd.f32 %v3059_v29, %v3031_v9 }
 0x4eb   : > { %v2930_v12 = vpop.f32.mrf.mxu1 }
 0x4ec   : > { %v3015_v16 = vadd.f32 %v3011_v5, %v2939_v24  ;;  %v2860_v17 = vmul.f32 %v2858_v4, %v2852_v8  ;;  %v2931_v30 = vadd.f32 %v2930_v12, %v2879_v18  ;;  %v3089_v34 = vmul.f32 %v3085_v56, %v3060_v19  ;;  %v4020_v56 = vld [vmem:[%s4939_s24] ss:$0 sm:$0xff]  ;;  %v3246_v19 = vld [vmem:[%s4941_s6 + $0x28] sm:$0xff] (%p3228_p7) }
 0x4ed   : > { %v3086_v18 = vperm.slane %v4737_v44, 7 }
 0x4ee   : > { %v3091_v14 = vadd.f32 %v3087_v10, %v3015_v16  ;;  %v2864_v26 = vadd.f32 %v2860_v17, %v2788_v41  ;;  %v2938_v28 = vmul.f32 %v2934_v15, %v2931_v30  ;;  %v3335_v30 = vld [vmem:[%s4940_s30 + $0x20] sm:$0xff] (%p3228_p7) }
 0x4ef   : > { %v2983_v20 = vpop.f32.mrf.mxu2 }
 0x4f0   : > { %v2984_v21 = vadd.f32 %v2983_v20, %v2955_v27  ;;  %3123 = vmatmul.f32.vlgmr.msra.gmra.mxu2 %v3091_v14  ;;  %v2940_v22 = vadd.f32 %v2936_v1, %v2864_v26  ;;  %v3336_v20 = vld [vmem:[%s4940_s30 + $0x28] sm:$0xff] (%p3228_p7) }
 0x4f1   : > { %v2854_v25 = vpop.f32.mrf.mxu3 }
 0x4f2   : > { %v3013_v32 = vmul.f32 %v3009_v57, %v2984_v21  ;;  %v2855_v62 = vadd.f32 %v2854_v25, %v2803_v39  ;;  %v4120_v21 = vmov (%p3228_p7), 0   ;;  %v3238_v25 = vld [vmem:[%s4943_s0 + $0x18] sm:$0xff] (%p3228_p7) }
 0x4f3   : > { %v3079_v37 = vpop.f32.mrf.mxu1  ;;  %4023 = vset.pattern.permute.xlu1 (%p3228_p7), %v4120_v21  ;;  %4022 = vset.pattern.permute.xlu0 (%p3228_p7), %v4120_v21 }
 0x4f4   : > { %v2862_v36 = vmul.f32 %v2858_v4, %v2855_v62  ;;  %v3017_v49 = vadd.f32 %v3013_v32, %v2941_v63  ;;  %v3080_v48 = vadd.f32 %v3079_v37, %v3026_v54  ;;  %3370 = vperm.xlu1 (%p3228_p7), %4023, %v3336_v20   ;;  %3274 = vperm.xlu0 (%p3228_p7), %4022, %v3246_v19   ;;  %v3245_v32 = vld [vmem:[%s4941_s6 + $0x20] sm:$0xff] (%p3228_p7)  ;;  %v3244_v62 = vld [vmem:[%s4941_s6 + $0x18] sm:$0xff] (%p3228_p7)  ;;  %v3386_v19 = vld [vmem:[%s4946_s10 + $0x8] sm:$0xff] (%p3228_p7) }
 0x4f5   : > { %4024 = vset.pattern.permute.xlu2 (%p3228_p7), %v4120_v21  ;;  %v3334_v37 = vld [vmem:[%s4940_s30 + $0x18] sm:$0xff] (%p3228_p7)  ;;  %v3387_v21 = vld [vmem:[%s4946_s10 + $0x10] sm:$0xff] (%p3228_p7) }
 0x4f6   : > { %v2866_v38 = vadd.f32 %v2862_v36, %v2790_v0  ;;  %v3093_v24 = vadd.f32 %v3089_v34, %v3017_v49  ;;  %v3088_v60 = vmul.f32 %v3086_v18, %v3080_v48  ;;  %3365 = vperm.xlu2 (%p3228_p7), %4024, %v3335_v30   ;;  %v3236_v34 = vld [vmem:[%s4943_s0 + $0x8] sm:$0xff] (%p3228_p7)  ;;  %v3239_v36 = vld [vmem:[%s4943_s0 + $0x20] sm:$0xff] (%p3228_p7)  ;;  %v3243_v49 = vld [vmem:[%s4941_s6 + $0x10] sm:$0xff] (%p3228_p7) }
 0x4f7   : > { %v3241_v48 = vld [vmem:[%s4941_s6] sm:$0xff] (%p3228_p7) }
 0x4f8   : > { %3126 = vmatmul.f32.gmra.mxu2 %v3093_v24  ;;  %v2942_v40 = vadd.f32 %v2938_v28, %v2866_v38  ;;  %v3242_v28 = vld [vmem:[%s4941_s6 + $0x8] sm:$0xff] (%p3228_p7)  ;;  %v3237_v38 = vld [vmem:[%s4943_s0 + $0x10] sm:$0xff] (%p3228_p7) }
 0x4f9   : > { %v3003_v31 = vpop.f32.mrf.mxu3  ;;  %v3240_v24 = vld [vmem:[%s4943_s0 + $0x28] sm:$0xff] (%p3228_p7) }
 0x4fa   : > { %v3004_v41 = vadd.f32 %v3003_v31, %v4795_v13  ;;  %v4119_v13 = vmov 0.0   ;;  %v3332_v31 = vld [vmem:[%s4940_s30 + $0x8] sm:$0xff] (%p3228_p7) }
 0x4fb   : > { %v3082_v45 = vpop.f32.mrf.mxu1  ;;  %1423 = vst.msk [vmem:[#allocation3] sm:$0xff] %vm1422_vm14, %v4119_v13 }
 0x4fc   : > { %v3012_v39 = vmul.f32 %v3010_v42, %v3004_v41  ;;  %v3083_v51 = vadd.f32 %v3082_v45, %v3031_v9  ;;  %1424 = vst.msk [vmem:[#allocation3 + $0x8] sm:$0xff] %vm1422_vm14, %v4119_v13  ;;  %3269 = vperm.xlu0 (%p3228_p7), %4022, %v3245_v32   ;;  %3264 = vperm.xlu1 (%p3228_p7), %4023, %v3244_v62   ;;  %v3331_v41 = vld [vmem:[%s4940_s30] sm:$0xff] (%p3228_p7) }
 0x4fd   : > { %v3442_v45 = vld [vmem:[%s4272_s8] sm:$0xff] (%p3228_p7) }
 0x4fe   : > { %v3016_v43 = vadd.f32 %v3012_v39, %v2940_v22  ;;  %v3090_v53 = vmul.f32 %v3086_v18, %v3083_v51  ;;  %3259 = vperm.xlu2 (%p3228_p7), %4024, %v3243_v49   ;;  %v3390_v18 = vld [vmem:[%s4945_s2 + $0x10] sm:$0xff] (%p3228_p7) }
 0x4ff   : > { %v3444_v39 = vld [vmem:[%s4272_s8 + $0x10] sm:$0xff] (%p3228_p7) }
 0x500   : > { %v3092_v46 = vadd.f32 %v3088_v60, %v3016_v43  ;;  %v3443_v60 = vld [vmem:[%s4272_s8 + $0x8] sm:$0xff] (%p3228_p7)  ;;  %v3388_v43 = vld [vmem:[%s4945_s2] sm:$0xff] (%p3228_p7) }
 0x501   : > { %v3006_v50 = vpop.f32.mrf.mxu3 }
 0x502   : > { %v3007_v52 = vadd.f32 %v3006_v50, %v2955_v27  ;;  %3146 = vmatmul.f32.vlgmr.msra.gmra.mxu3 %v3092_v46  ;;  %v3095_v7 = vld [vmem:[#allocation3] sm:$0xff]  ;;  %v3212_v27 = vpop.permute.xlu2 %3211  ;;  %v3472_v46 = vld [vmem:[%s4282_s25 + $0x8] sm:$0xf] (%p3228_p7)  ;;  %v3471_v50 = vld [vmem:[%s4282_s25] sm:$0xff] (%p3228_p7) }
 0x503   : > { %v3096_v61 = vld [vmem:[#allocation3 + $0x8] sm:$0xff] }
 0x504   : > { %v3014_v55 = vmul.f32 %v3010_v42, %v3007_v52  ;;  %3360 = vperm.xlu0 (%p3228_p7), %4022, %v3334_v37   ;;  %3254 = vperm.xlu1 (%p3228_p7), %4023, %v3242_v28   ;;  %v3389_v42 = vld [vmem:[%s4944_s22 + $0x8] sm:$0xff] (%p3228_p7) }
 0x506   : > { %v3018_v47 = vadd.f32 %v3014_v55, %v2942_v40  ;;  %v3333_v40 = vld [vmem:[%s4940_s30 + $0x10] sm:$0xff] (%p3228_p7) }
 0x507   : > { %3355 = vperm.xlu2 (%p3228_p7), %4024, %v3333_v40  }
 0x508   : > { %v3094_v54 = vadd.f32 %v3090_v53, %v3018_v47 }
 0x50a   : > { %3149 = vmatmul.f32.gmra.mxu3 %v3094_v54 }
 0x50c   : > { %3350 = vperm.xlu1 (%p3228_p7), %4023, %v3332_v31   ;;  %3249 = vperm.xlu0 (%p3228_p7), %4022, %v3241_v48  }
 0x50f   : > { %3345 = vperm.xlu2 (%p3228_p7), %4024, %v3331_v41  }
 0x514   : > { %3398 = vperm.xlu1 (%p3228_p7), %4023, %v3389_v42   ;;  %3403 = vperm.xlu0 (%p3228_p7), %4022, %v3390_v18   ;;  %v3469_v42 = vld [vmem:[%s4277_s14] sm:$0xff] (%p3228_p7) }
 0x517   : > { %3460 = vperm.xlu2 (%p3228_p7), %4024, %v3444_v39   ;;  %v3470_v39 = vld [vmem:[%s4277_s14 + $0x8] sm:$0xf] (%p3228_p7) }
 0x51c   : > { %3455 = vperm.xlu1 (%p3228_p7), %4023, %v3443_v60   ;;  %3393 = vperm.xlu0 (%p3228_p7), %4022, %v3388_v43  }
 0x51f   : > { %3450 = vperm.xlu2 (%p3228_p7), %4024, %v3442_v45  }
 0x524   : > { %3480 = vperm.xlu1 (%p3228_p7), %4023, %v3472_v46   ;;  %3475 = vperm.xlu0 (%p3228_p7), %4022, %v3471_v50  }
 0x550   : > { %v3366_v55 = vpop.permute.xlu2 (%p3228_p7), %3365 }
 0x554   : > { %v3194_v3 = vpop.f32.mrf.mxu0 }
 0x557   : > { %v3220_v12 = vpop.permute.xlu0 %3219 }
 0x55c   : > { %v3197_v17 = vpop.f32.mrf.mxu0 }
 0x566   : > { %v3275_v51 = vpop.permute.xlu0 (%p3228_p7), %3274  ;;  %v3371_v52 = vpop.permute.xlu1 (%p3228_p7), %3370 }
 0x56e   : > { %v3270_v47 = vpop.permute.xlu0 (%p3228_p7), %3269  ;;  %v3265_v13 = vpop.permute.xlu1 (%p3228_p7), %3264 }
 0x573   : > { %v3124_v44 = vpop.f32.mrf.mxu2 }
 0x57b   : > { %v3127_v35 = vpop.f32.mrf.mxu2 }
 0x585   : > { %v3147_v58 = vpop.f32.mrf.mxu3 }
 0x586   : > { %v3148_v63 = vadd.f32 %v3147_v58, %v3124_v44  ;;  %v3260_v44 = vpop.permute.xlu2 (%p3228_p7), %3259 }
 0x588   : > { %v3153_v59 = vadd.f32 %v3148_v63, %v3095_v7  ;;  %v3361_v63 = vpop.permute.xlu0 (%p3228_p7), %3360 }
 0x58a   : > { %3155 = vst.msk [vmem:[#allocation3] sm:$0xff] %vm1422_vm14, %v3153_v59  ;;  %v3255_v59 = vpop.permute.xlu1 (%p3228_p7), %3254 }
 0x58d   : > { %v3150_v57 = vpop.f32.mrf.mxu3 }
 0x58e   : > { %v3151_v0 = vadd.f32 %v3150_v57, %v3127_v35  ;;  %v3356_v35 = vpop.permute.xlu2 (%p3228_p7), %3355 }
 0x590   : > { %v3154_v4 = vadd.f32 %v3151_v0, %v3096_v61 }
 0x591   : > { %v3160_v6 = vld [vmem:[#allocation3] sm:$0xff] }
 0x592   : > { %3156 = vst.msk [vmem:[#allocation3 + $0x8] sm:$0xff] %vm1422_vm14, %v3154_v4  ;;  %v3166_v5 = vmul.f32 %v4020_v56, %v3160_v6 }
 0x594   : > { %v3200_v8 = vadd.f32 %v3194_v3, %v3166_v5 }
 0x596   : > { %v3214_v10 = vadd.f32 %v3207_v11, %v3200_v8  ;;  %v3250_v8 = vpop.permute.xlu0 (%p3228_p7), %3249 }
 0x598   : > { %vm3216_vm5 = vcmp.ge.f32.partialorder %v3214_v10, 0.0  ;;  %v3222_v15 = vmul.f32 %v3220_v12, %v3214_v10 }
 0x599   : > { %v3161_v16 = vld [vmem:[#allocation3 + $0x8] sm:$0xff] }
 0x59a   : > { %v3224_v23 = vsel %vm3216_vm5, %v3214_v10, %v3222_v15  ;;  %v3167_v29 = vmul.f32 %v4020_v56, %v3161_v16  ;;  %v3351_v15 = vpop.permute.xlu1 (%p3228_p7), %3350 }
 0x59b   : > { %3226 = vst.msk [vmem:[#allocation2] sm:$0xff] %vm1422_vm14, %v3224_v23 }
 0x59c   : > { %v3201_v2 = vadd.f32 %v3197_v17, %v3167_v29 }
 0x59e   : > { %v3215_v1 = vadd.f32 %v3212_v27, %v3201_v2  ;;  %v3346_v27 = vpop.permute.xlu2 (%p3228_p7), %3345 }
 0x59f   : > { %3232 = sbr.rel (!%p3228_p7) target bundleno = 1913 (0x779), region = 164 }
 0x5a0   : > { %vm3217_vm6 = vcmp.ge.f32.partialorder %v3215_v1, 0.0  ;;  %v3223_v14 = vmul.f32 %v3220_v12, %v3215_v1 }
 0x5a2   : > { %v3225_v26 = vsel %vm3217_vm6, %v3215_v1, %v3223_v14  ;;  %v3233_v22 = vld [vmem:[#allocation2] sm:$0xff] (%p3228_p7) }
 0x5a3   : > { %3227 = vst.msk [vmem:[#allocation2 + $0x8] sm:$0xff] %vm1422_vm14, %v3225_v26 }
 0x5a6   : > { %v3461_v32 = vpop.permute.xlu2 %3460 }
 0x5aa   : > { %v3234_v9 = vld [vmem:[#allocation2 + $0x8] sm:$0xff] }
 0x5ab   : > { %3310 = vmatpush.msra.mxu0 %v3234_v9  ;;  %3931 = vmatpush.msra.mxu3 %v3234_v9  ;;  %v3385_v9 = vld [vmem:[%s4946_s10] sm:$0xff] }
 0x5ad   : > { %3311 = vmatpush.msra.mxu0 %v3233_v22  ;;  %3932 = vmatpush.msra.mxu3 %v3233_v22 }
 0x5ae   : > { %3902 = vmatmul.msk.f32.vlgmr.msra.gmra.mxu0 %vm3170_vm4, %v3235_v33  ;;  %3905 = vmatmul.msk.f32.vlgmr.msra.gmra.mxu3 %vm3170_vm4, %v3238_v25  ;;  %v3404_v33 = vpop.permute.xlu0 %3403  ;;  %v3399_v25 = vpop.permute.xlu1 %3398 }
 0x5af   : > { %v3451_v40 = vpop.permute.xlu2 %3450 }
 0x5b6   : > { %3903 = vmatmul.msk.f32.gmra.mxu0 %vm3170_vm4, %v3236_v34  ;;  %3906 = vmatmul.msk.f32.gmra.mxu3 %vm3170_vm4, %v3239_v36  ;;  %v3394_v34 = vpop.permute.xlu0 %3393  ;;  %v3456_v28 = vpop.permute.xlu1 %3455 }
 0x5be   : > { %3904 = vmatmul.msk.f32.gmra.mxu0 %vm3170_vm4, %v3237_v38  ;;  %3907 = vmatmul.msk.f32.gmra.mxu3 %vm3170_vm4, %v3240_v24  ;;  %v3476_v60 = vpop.permute.xlu0 %3475  ;;  %v3481_v46 = vpop.permute.xlu1 %3480 }
 0x62b   : > { %v3313_v53 = vpop.f32.mrf.mxu0 }
 0x62c   : > { %v3314_v16 = vadd.f32 %v3313_v53, %v3250_v8 }
 0x62e   : > { %v3373_v14 = vmul.f32 %v3346_v27, %v3314_v16  ;;  %vm3337_vm12 = vcmp.ge.f32.partialorder %v3314_v16, 0.0 }
 0x630   : > { %v3379_v20 = vsel %vm3337_vm12, %v3314_v16, %v3373_v14 }
 0x631   : > { %v3322_v54 = vpop.f32.mrf.mxu3 }
 0x632   : > { %v3323_v56 = vadd.f32 %v3322_v54, %v3265_v13 }
 0x633   : > { %v3316_v7 = vpop.f32.mrf.mxu0 }
 0x634   : > { %v3317_v11 = vadd.f32 %v3316_v7, %v3255_v59  ;;  %v3376_v10 = vmul.f32 %v3361_v63, %v3323_v56  ;;  %vm3340_vm9 = vcmp.ge.f32.partialorder %v3323_v56, 0.0 }
 0x636   : > { %v3374_v29 = vmul.f32 %v3351_v15, %v3317_v11  ;;  %v3382_v2 = vsel %vm3340_vm9, %v3323_v56, %v3376_v10  ;;  %vm3338_vm11 = vcmp.ge.f32.partialorder %v3317_v11, 0.0 }
 0x638   : > { %v3380_v26 = vsel %vm3338_vm11, %v3317_v11, %v3374_v29 }
 0x639   : > { %v3325_v58 = vpop.f32.mrf.mxu3 }
 0x63a   : > { %v3326_v61 = vadd.f32 %v3325_v58, %v3270_v47 }
 0x63b   : > { %v3319_v57 = vpop.f32.mrf.mxu0 }
 0x63c   : > { %v3320_v4 = vadd.f32 %v3319_v57, %v3260_v44  ;;  %v3377_v5 = vmul.f32 %v3366_v55, %v3326_v61  ;;  %vm3341_vm8 = vcmp.ge.f32.partialorder %v3326_v61, 0.0 }
 0x63e   : > { %v3383_v17 = vsel %vm3341_vm8, %v3326_v61, %v3377_v5  ;;  %v3375_v23 = vmul.f32 %v3356_v35, %v3320_v4  ;;  %vm3339_vm10 = vcmp.ge.f32.partialorder %v3320_v4, 0.0 }
 0x640   : > { %v3381_v1 = vsel %vm3339_vm10, %v3320_v4, %v3375_v23 }
 0x641   : > { %v3328_v0 = vpop.f32.mrf.mxu3 }
 0x642   : > { %v3329_v3 = vadd.f32 %v3328_v0, %v3275_v51 }
 0x644   : > { %vm3342_vm7 = vcmp.ge.f32.partialorder %v3329_v3, 0.0  ;;  %v3378_v6 = vmul.f32 %v3371_v52, %v3329_v3 }
 0x646   : > { %v3384_v12 = vsel %vm3342_vm7, %v3329_v3, %v3378_v6 }
 0x647   : > { %3426 = vmatpush.msra.mxu1 %v3384_v12 }
 0x649   : > { %3427 = vmatpush.msra.mxu1 %v3383_v17 }
 0x64b   : > { %3428 = vmatpush.msra.mxu1 %v3382_v2 }
 0x64d   : > { %3429 = vmatpush.msra.mxu1 %v3381_v1 }
 0x64f   : > { %3430 = vmatpush.msra.mxu1 %v3380_v26 }
 0x651   : > { %3431 = vmatpush.msra.mxu1 %v3379_v20 }
 0x652   : > { %3908 = vmatmul.msk.f32.vlgmr.msra.gmra.mxu1 %vm3406_vm13, %v3385_v9 }
 0x65a   : > { %3909 = vmatmul.msk.f32.gmra.mxu1 %vm3406_vm13, %v3386_v19 }
 0x662   : > { %3910 = vmatmul.msk.f32.gmra.mxu1 %vm3406_vm13, %v3387_v21 }
 0x6cf   : > { %v3433_v22 = vpop.f32.mrf.mxu1 }
 0x6d0   : > { %v3434_v49 = vadd.f32 %v3433_v22, %v3394_v34 }
 0x6d2   : > { %v3463_v48 = vmul.f32 %v3451_v40, %v3434_v49  ;;  %vm3445_vm1 = vcmp.ge.f32.partialorder %v3434_v49, 0.0 }
 0x6d4   : > { %v3466_v18 = vsel %vm3445_vm1, %v3434_v49, %v3463_v48 }
 0x6d7   : > { %v3436_v30 = vpop.f32.mrf.mxu1 }
 0x6d8   : > { %v3437_v62 = vadd.f32 %v3436_v30, %v3399_v25 }
 0x6da   : > { %v3464_v24 = vmul.f32 %v3456_v28, %v3437_v62  ;;  %vm3446_vm0 = vcmp.ge.f32.partialorder %v3437_v62, 0.0 }
 0x6dc   : > { %v3467_v41 = vsel %vm3446_vm0, %v3437_v62, %v3464_v24 }
 0x6df   : > { %v3439_v36 = vpop.f32.mrf.mxu1 }
 0x6e0   : > { %v3440_v37 = vadd.f32 %v3439_v36, %v3404_v33 }
 0x6e2   : > { %vm3447_vm15 = vcmp.ge.f32.partialorder %v3440_v37, 0.0  ;;  %v3465_v38 = vmul.f32 %v3461_v32, %v3440_v37 }
 0x6e4   : > { %v3468_v31 = vsel %vm3447_vm15, %v3440_v37, %v3465_v38 }
 0x6e5   : > { %3503 = vmatpush.msra.mxu2 %v3468_v31 }
 0x6e7   : > { %3504 = vmatpush.msra.mxu2 %v3467_v41 }
 0x6e9   : > { %3505 = vmatpush.msra.mxu2 %v3466_v18 }
 0x6ea   : > { %3911 = vmatmul.msk.f32.vlgmr.msra.gmra.mxu2 %vm3483_vm2, %v3469_v42 }
 0x6f2   : > { %3912 = vmatmul.msk.f32.gmra.mxu2 %vm3483_vm2, %v3470_v39 }
 0x76d   : > { %v3507_v43 = vpop.f32.mrf.mxu2 }
 0x76e   : > { %v3508_v45 = vadd.f32 %v3507_v43, %v3476_v60 }
 0x770   : > { %3513 = vst.msk [vmem:[#allocation6] sm:$0xff] %vm1422_vm14, %v3508_v45 }
 0x775   : > { %v3510_v50 = vpop.f32.mrf.mxu2 }
 0x776   : > { %v3511_v51 = vadd.f32 %v3510_v50, %v3481_v46 }
 0x778   : > { %3515 = vst.msk [vmem:[#allocation6 + $0x8] sm:$0xf] %vm3514_vm3, %v3511_v51 }
 0x779 PF: > { %s4947_s11 = sld [smem:[#allocation29_spill]]  ;;  %s4121_s12 = smov [#allocation6]  }
 0x77a   : > { %s4949_s16 = sld [smem:[#allocation27_spill]]  ;;  %s3521_s4 = sshll.u32 %s4121_s12, 4  ;;  %s3522_s4 = int_to_ptr.vmem [resolvable:$true] %s3521_s4 }
 0x77f   : > { %s4948_s15 = sadd.s32 4294967295, %s4947_s11  }
 0x780   : > { %p4870_p8 = scmp.eq.s32.totalorder %s4948_s15, 12  ;;  %s3523_s23 = sshll.u32 %s4949_s16, 4  ;;  %s3524_s23 = int_to_ptr.hbm [resolvable:$true] %s3523_s23 }
 0x781   : > { %s4039_s7 = sshra.s32 %s3524_s23, 4  ;;  %s4045_s26 = scalar_lea.hbm %s4949_s16, 16  ;;  %s4040_s7 = int_to_ptr.hbm [resolvable:$true] %s4039_s7 }
 0x782   : > { %s4041_s24 = scalar_lea.hbm %s4040_s7, 16  ;;  %p4046_p12 = scmp.lt.s32.totalorder %s4040_s7, %s4949_s16 }
 0x783   : > { %p4042_p9 = scmp.ne.s32.totalorder %s4040_s7, %s4041_s24  ;;  %p4047_p13 = scmp.lt.s32.totalorder %s4045_s26, %s4041_s24 }
 0x785   : > { %p4043_p10 = pnand %p4042_p9, %p4870_p8  ;;  %p4048_p0 = por %p4047_p13, %p4046_p12 }
 0x787   : > { %p4044_p11 = pneg %p4043_p10 }
 0x789   : > { %p4049_p1 = pnand %p4048_p0, %p4044_p11 }
 0x78b   : > { %4052 = shalt.err (!%p4049_p1)
}
 0x78c   : > { %s4122_s22 = smov 128   ;;  %s4123_s11 = smov 8  }
 0x78d   : > { %3934 = dma.vmem_to_hbm [thread:$0]  (%p4870_p8), %s3522_s4, 256, %s3524_s23, [#allocation7], %s4122_s22, %s4122_s22, %s4123_s11  }
 0x78e   : > { %4066 = dma.done.wait (%p4870_p8), [#allocation7], 256  }
 0x78f   : > { %4068 = vsyncadd (%p4870_p8), [#allocation7], 4294967040 }
 0x790 PF: > { %s4951_s15 = sld [smem:[#allocation29_spill]] }
 0x791   : > { %s4952_s22 = sld [smem:[#allocation28_spill]] }
 0x792   : > { %s4953_s23 = sld [smem:[#allocation30_spill]] }
 0x796   : > { %s74_s26 = sadd.s32 1, %s4951_s15  }
 0x797   : > { %p71_p2 = scmp.ge.s32.totalorder %s74_s26, 15  }
 0x799   :  { %73 = sbr.rel (!%p71_p2) target bundleno = 63 (0x3f), region = 265 }
 0x79e   :  { %3540 = vsyncpa [#allocation7], 1 }
 0x79f   :  { %3542 = vsyncpa [#allocation7 + $0x1], 1 }

</bundles_post_ra>
